<compile_context>
chip_gen: v6e
topology: v6e:2x2x1
jax: 0.10.0
libtpu: 0.0.40
codegen_flags: <defaults>
</compile_context>

<pallas_src>
import functools

import jax
import jax.numpy as jnp
from jax.experimental import pallas as pl
from jax.experimental.pallas import tpu as pltpu


def _round_up(x, m):
    return ((x + m - 1) // m) * m


# ----------------------------------------------------------------------------
# Pallas kernels
# ----------------------------------------------------------------------------
def _matmul_bias_act_kernel(x_ref, w_ref, b_ref, o_ref, *, act):
    """o = act(x @ w + b); x/w bf16, f32 accumulate, epilogue cast to o dtype."""
    y = jnp.dot(x_ref[...], w_ref[...], preferred_element_type=jnp.float32)
    y = y + b_ref[...]
    if act == "relu":
        y = jnp.maximum(y, 0.0)
    o_ref[...] = y.astype(o_ref.dtype)


_TM_CAP = 2048  # row-tile cap (multiple of 8)


def matmul_bias_act(x, w, b, act=None, out_dtype=jnp.float32):
    """Row-tiled Pallas matmul with fused bias + optional ReLU.

    N is zero-padded to the next multiple of 128 (lane-dense unmasked stores,
    replaces the previous block-diagonal kron fold); padded columns are sliced
    off after the call.  `out_dtype=bfloat16` for intermediate activations.
    """
    M, K = x.shape
    N = w.shape[1]
    Np = _round_up(N, 128)

    x = x.astype(jnp.bfloat16)          # cast BEFORE padding (pad bytes in bf16)
    Mp = _round_up(M, 8)
    if Mp <= _TM_CAP:
        TM = Mp                          # single tile, no extra row padding
    else:
        TM = _TM_CAP
        Mp = _round_up(Mp, TM)           # at most TM-1 padded rows
    if Mp != M:
        x = jnp.pad(x, ((0, Mp - M), (0, 0)))

    wp = jnp.pad(w, ((0, 0), (0, Np - N))).astype(jnp.bfloat16)
    bp = jnp.pad(b, (0, Np - N)).reshape(1, Np).astype(jnp.float32)

    out = pl.pallas_call(
        functools.partial(_matmul_bias_act_kernel, act=act),
        out_shape=jax.ShapeDtypeStruct((Mp, Np), out_dtype),
        grid_spec=pltpu.PrefetchScalarGridSpec(
            num_scalar_prefetch=0,
            grid=(Mp // TM,),
            in_specs=[
                pl.BlockSpec((TM, K), lambda i: (i, 0)),
                pl.BlockSpec((K, Np), lambda i: (0, 0)),
                pl.BlockSpec((1, Np), lambda i: (0, 0)),
            ],
            out_specs=pl.BlockSpec((TM, Np), lambda i: (i, 0)),
        ),
        compiler_params=pltpu.CompilerParams(
            dimension_semantics=("parallel",),
            vmem_limit_bytes=48 * 1024 * 1024,
        ),
    )(x, wp, bp)
    return out[:M, :N]


def _corr_kernel(yl_ref, yr_ref, o_ref, acc_sc, *, S, W):
    """Circular shift correlation, W in lanes, H tiled over the grid.

    yl_ref/yr_ref: [1, C, TH, W] bf16 latent slabs of one image.
    acc_sc: [C, S] f32 accumulator (resident across the H grid axis).
    o_ref: [1, C, S];  o[0, c, s] = sum_{h,w} yl[c,h,w] * yr[c,h,(w+s) % W].
    """
    h = pl.program_id(1)

    @pl.when(h == 0)
    def _init():
        acc_sc[...] = jnp.zeros_like(acc_sc)

    yl32 = yl_ref[0].astype(jnp.float32)                     # [C, TH, W]
    yr = yr_ref[0]                                           # [C, TH, W] bf16
    if S > 1:
        # append the wrap prefix once; each shift is then a static slice
        wide = jnp.concatenate([yr, yr[:, :, :S - 1]], axis=2)   # [C,TH,W+S-1]
    else:
        wide = yr

    parts = []
    for s in range(S):                    # S is small & static -> unrolled
        yr_s = wide[:, :, s:s + W].astype(jnp.float32)
        prod = yl32 * yr_s
        col = jnp.sum(jnp.sum(prod, axis=2), axis=1, keepdims=True)   # [C, 1]
        parts.append(col)
    slab = jnp.concatenate(parts, axis=1)                    # [C, S]
    acc_sc[...] = acc_sc[...] + slab

    @pl.when(h == pl.num_programs(1) - 1)
    def _store():
        o_ref[0] = acc_sc[...]


def _pick_th(H, cap=64):
    """Largest divisor of H that is a multiple of 8 and <= cap, else H."""
    for th in range(min(cap, H), 7, -1):
        if th % 8 == 0 and H % th == 0:
            return th
    return H


def shift_correlation(y_l, y_r, S):
    """corr[n, c, s] for all S circular shifts (bf16 reads, f32 accumulate)."""
    # [N,H,W,C] -> [N,C,H,W] so W maps to lanes (full-width vregs, XLU-friendly)
    yl = jnp.transpose(y_l, (0, 3, 1, 2)).astype(jnp.bfloat16)
    yr = jnp.transpose(y_r, (0, 3, 1, 2)).astype(jnp.bfloat16)
    N, C, H, W = yl.shape
    TH = _pick_th(H)
    return pl.pallas_call(
        functools.partial(_corr_kernel, S=S, W=W),
        out_shape=jax.ShapeDtypeStruct((N, C, S), jnp.float32),
        grid_spec=pltpu.PrefetchScalarGridSpec(
            num_scalar_prefetch=0,
            grid=(N, H // TH),
            in_specs=[
                pl.BlockSpec((1, C, TH, W), lambda n, h: (n, 0, h, 0)),
                pl.BlockSpec((1, C, TH, W), lambda n, h: (n, 0, h, 0)),
            ],
            out_specs=pl.BlockSpec((1, C, S), lambda n, h: (n, 0, 0)),
            scratch_shapes=[pltpu.VMEM((C, S), jnp.float32)],
        ),
        compiler_params=pltpu.CompilerParams(
            dimension_semantics=("parallel", "arbitrary"),
            vmem_limit_bytes=48 * 1024 * 1024,
        ),
    )(yl, yr)


# ----------------------------------------------------------------------------
# Conv glue (im2col / pixel-shuffle) — layout plumbing only
# ----------------------------------------------------------------------------
def im2col(x, k, stride, pad):
    """x:[N,H,W,C] -> ([N*Ho*Wo, k*k*C], (N,Ho,Wo)); patch order (dy,dx,Cin)."""
    N, H, W, C = x.shape
    xp = jnp.pad(x, ((0, 0), (pad, pad), (pad, pad), (0, 0)))
    Ho = (H + 2 * pad - k) // stride + 1
    Wo = (W + 2 * pad - k) // stride + 1
    patches = []
    for dy in range(k):
        for dx in range(k):
            patches.append(xp[:, dy:dy + stride * Ho:stride,
                               dx:dx + stride * Wo:stride, :])
    cols = jnp.stack(patches, axis=3)                 # [N,Ho,Wo,k*k,C]
    return cols.reshape(N * Ho * Wo, k * k * C), (N, Ho, Wo)


# TODO(synk): the 3x3/stride-2 convs still build their im2col matrix in the XLA
# wrapper (now in bf16, so half the previous amplification bytes); a direct
# in-kernel tap accumulation needs sublane-strided loads that are not cleanly
# expressible here, so only the matmul itself runs in Pallas.
def conv2d(x, w, b, *, k, stride, pad, act=None, out_dtype=jnp.float32):
    """NHWC conv via im2col + Pallas matmul. w:[k*k*Cin, Cout], b:[Cout]."""
    cols, (N, Ho, Wo) = im2col(x, k, stride, pad)
    y = matmul_bias_act(cols, w, b, act=act, out_dtype=out_dtype)
    return y.reshape(N, Ho, Wo, w.shape[1])


def deconv2x(x, w, b, *, act=None, out_dtype=jnp.float32):
    """Transposed conv, kernel 2 stride 2, as Pallas matmul + pixel shuffle.

    x:[N,H,W,Cin], w:[Cin, 4*Cout] (order dy,dx,Cout), b:[4*Cout]
    (an independent bias per 2x2 sub-pixel position).
    """
    N, H, W, Cin = x.shape
    Cout = w.shape[1] // 4
    y = matmul_bias_act(x.reshape(N * H * W, Cin), w, b, act=act,
                        out_dtype=out_dtype)
    y = y.reshape(N, H, W, 2, 2, Cout).transpose(0, 1, 3, 2, 4, 5)
    return y.reshape(N, 2 * H, 2 * W, Cout)


def warp(y, shift):
    """Per-channel horizontal shift: y_hat[n,h,w,c] = y[n,h,(w - s[n,c]) % W, c]."""
    # TODO(synk): per-(image,channel) dynamic gather kept in XLA; no clean
    # rectangular-tile Pallas equivalent.
    N, H, W, C = y.shape
    w_idx = jnp.arange(W)[None, None, :, None]
    idx = (w_idx - shift[:, None, None, :]) % W
    idx = jnp.broadcast_to(idx, (N, H, W, C))
    return jnp.take_along_axis(y, idx, axis=2)


# ----------------------------------------------------------------------------
# Model (parameters, encoder, decoder)
# ----------------------------------------------------------------------------
C_HID = 32   # analysis/synthesis hidden & latent channels
C_HYP = 16   # hyper-latent channels
L_MAX = 50   # disparity search range (clamped to latent width)


def init_params(key):
    def dense(key, fan_in, shape):
        return (jnp.sqrt(2.0 / fan_in) *
                jax.random.normal(key, shape, dtype=jnp.float32))
    ks = jax.random.split(key, 10)
    p = {}
    # analysis transform (shared for left/right): 3 -> 32 -> 32, each /2 spatial
    p["enc1_w"] = dense(ks[0], 9 * 3, (9 * 3, C_HID))
    p["enc1_b"] = jnp.zeros((C_HID,), jnp.float32)
    p["enc2_w"] = dense(ks[1], 9 * C_HID, (9 * C_HID, C_HID))
    p["enc2_b"] = jnp.zeros((C_HID,), jnp.float32)
    # hyper-analysis: 32 -> 16, /2 spatial
    p["hyp_w"] = dense(ks[2], 9 * C_HID, (9 * C_HID, C_HYP))
    p["hyp_b"] = jnp.zeros((C_HYP,), jnp.float32)
    # synthesis transform (shared): 32 -> 32 -> 3, each x2 spatial (deconv k2 s2)
    p["dec1_w"] = dense(ks[3], C_HID, (C_HID, 4 * C_HID))
    p["dec1_b"] = jnp.zeros((4 * C_HID,), jnp.float32)
    p["dec2_w"] = dense(ks[4], C_HID, (C_HID, 4 * 3))
    p["dec2_b"] = jnp.zeros((4 * 3,), jnp.float32)
    return p


def analysis(p, x):
    # intermediate activations (and the latent) kept in bf16: these matmuls are
    # memory-bound, so halving activation traffic is a near-1:1 win.
    h = conv2d(x, p["enc1_w"], p["enc1_b"], k=3, stride=2, pad=1, act="relu",
               out_dtype=jnp.bfloat16)
    y = conv2d(h, p["enc2_w"], p["enc2_b"], k=3, stride=2, pad=1, act=None,
               out_dtype=jnp.bfloat16)
    return y


def hyper(p, y):
    return conv2d(jnp.abs(y), p["hyp_w"], p["hyp_b"], k=3, stride=2, pad=1,
                  out_dtype=jnp.float32)


def synthesis(p, y):
    h = deconv2x(y, p["dec1_w"], p["dec1_b"], act="relu",
                 out_dtype=jnp.bfloat16)
    return deconv2x(h, p["dec2_w"], p["dec2_b"], act=None,
                    out_dtype=jnp.float32)


def estimate_shift(y_l, y_r):
    """Per-image, per-channel horizontal shift maximizing cross-correlation."""
    N, H, W, C = y_l.shape
    S = min(L_MAX, W)
    corr = shift_correlation(y_l, y_r, S)               # [N, C, S] (Pallas)
    return jnp.argmax(corr, axis=-1).astype(jnp.int32)  # [N, C]


def encoder_fwd(p, left, right):
    # NCHW -> NHWC, bf16 once at the boundary (MXU inputs, f32 accumulate)
    xl = jnp.transpose(left, (0, 2, 3, 1)).astype(jnp.bfloat16)
    xr = jnp.transpose(right, (0, 2, 3, 1)).astype(jnp.bfloat16)
    # Batch left+right through the shared transforms: one pallas_call per layer.
    x = jnp.concatenate([xl, xr], axis=0)
    y = analysis(p, x)                                  # bf16 latent
    z = hyper(p, y)
    y_l, y_r_full = jnp.split(y, 2, axis=0)
    z_l, z_r = jnp.split(z, 2, axis=0)
    shift = estimate_shift(y_l, y_r_full)
    y_r_res = y_r_full - warp(y_l, shift)          # right latent coded as residual
    return y_l, y_r_res, z_l, z_r, shift


def decoder_fwd(p, y_l, y_r_res, shift):
    y_r = warp(y_l, shift) + y_r_res
    # Batch left+right latents through the shared synthesis transform.
    y = jnp.concatenate([y_l, y_r], axis=0)
    dec = synthesis(p, y)
    dec_left, dec_right = jnp.split(dec, 2, axis=0)
    # NHWC -> NCHW
    return (jnp.transpose(dec_left, (0, 3, 1, 2)),
            jnp.transpose(dec_right, (0, 3, 1, 2)),
            shift)


@jax.jit
def all_model_forward(p, left, right):
    enc_yl, enc_yr, enc_zl, enc_zr, enc_shift = encoder_fwd(p, left, right)
    dec_left, dec_right, _ = decoder_fwd(p, enc_yl, enc_yr, enc_shift)
    return dec_left, dec_right


# TODO(synk): entropy coding / quantization and the exact SASIC layer config
# (GDN nonlinearities, checkpoint weights) have no clean Pallas equivalent here;
# the transforms are a deterministic synthetic stand-in with the same structure.

if __name__ == "__main__":
    params = init_params(jax.random.PRNGKey(42))

    key = jax.random.PRNGKey(0)
    k1, k2 = jax.random.split(key)
    N, C, H, W = 2, 3, 16, 16
    left = jax.random.normal(k1, (N, C, H, W), dtype=jnp.float32)
    # right view = horizontally shifted left + small noise (stereo-like)
    right = (jnp.roll(left, shift=-2, axis=3)
             + 0.05 * jax.random.normal(k2, (N, C, H, W), dtype=jnp.float32))

    dec_left, dec_right = all_model_forward(params, left, right)
    jax.block_until_ready((dec_left, dec_right))
    assert dec_left.shape == (N, 3, H, W) and dec_right.shape == (N, 3, H, W)
    assert bool(jnp.isfinite(dec_left).all()) and bool(jnp.isfinite(dec_right).all())
    print("KERNEL_OK")
</pallas_src>

<mosaic_0001>
module attributes {stable_mosaic.version = 11 : i64} {
  func.func @_matmul_bias_act_kernel(%arg0: i32, %arg1: memref<256x27xbf16, #tpu.memory_space<vmem>>, %arg2: memref<27x128xbf16, #tpu.memory_space<vmem>>, %arg3: memref<1x128xf32, #tpu.memory_space<vmem>>, %arg4: memref<256x128xbf16, #tpu.memory_space<vmem>>) attributes {dimension_semantics = [#tpu.dimension_semantics<parallel>], iteration_bounds = array<i64: 1>, scalar_prefetch = 0 : i64, scratch_operands = 0 : i64, tpu.core_type = #tpu.core_type<tc>, window_params = [{transform_indices = @transform_0, window_bounds = array<i64: 256, 27>}, {pipeline_mode = #tpu.pipeline_mode<synchronous>, transform_indices = @transform_1, window_bounds = array<i64: 27, 128>}, {pipeline_mode = #tpu.pipeline_mode<synchronous>, transform_indices = @transform_2, window_bounds = array<i64: 1, 128>}, {transform_indices = @transform_3, window_bounds = array<i64: 256, 128>}]} {
    %c0 = arith.constant 0 : index
    %c0_0 = arith.constant 0 : index
    %0 = vector.load %arg1[%c0, %c0_0] : memref<256x27xbf16, #tpu.memory_space<vmem>>, vector<256x27xbf16>
    %c0_1 = arith.constant 0 : index
    %c0_2 = arith.constant 0 : index
    %1 = vector.load %arg2[%c0_1, %c0_2] : memref<27x128xbf16, #tpu.memory_space<vmem>>, vector<27x128xbf16>
    %cst = arith.constant dense<0.000000e+00> : vector<256x128xf32>
    %2 = tpu.matmul %0, %1, %cst {dimension_numbers = #tpu.dot_dimension_numbers<[1], [0], [0], [1], [0, 0, 1, 1], [], []>} : vector<256x27xbf16>, vector<27x128xbf16>, vector<256x128xf32> -> vector<256x128xf32>
    %c0_3 = arith.constant 0 : index
    %c0_4 = arith.constant 0 : index
    %3 = vector.load %arg3[%c0_3, %c0_4] : memref<1x128xf32, #tpu.memory_space<vmem>>, vector<1x128xf32>
    %4 = vector.broadcast %3 : vector<1x128xf32> to vector<256x128xf32>
    %5 = arith.addf %2, %4 : vector<256x128xf32>
    %cst_5 = arith.constant 0.000000e+00 : f32
    %6 = vector.broadcast %cst_5 : f32 to vector<256x128xf32>
    %7 = arith.maximumf %5, %6 : vector<256x128xf32>
    %8 = arith.truncf %7 : vector<256x128xf32> to vector<256x128xbf16>
    %c0_6 = arith.constant 0 : index
    %c0_7 = arith.constant 0 : index
    %9 = vector.load %arg4[%c0_6, %c0_7] : memref<256x128xbf16, #tpu.memory_space<vmem>>, vector<256x128xbf16>
    tpu.vector_store %arg4[%c0_6, %c0_7], %8 {strides = array<i32>} : memref<256x128xbf16, #tpu.memory_space<vmem>>, vector<256x128xbf16>,
    return
  }
  func.func @transform_0(%arg0: i32) -> (i32, i32) {
    %c0_i32 = arith.constant 0 : i32
    %c0_i32_0 = arith.constant 0 : i32
    return %arg0, %c0_i32 : i32, i32
  }
  func.func @transform_1(%arg0: i32) -> (i32, i32) {
    %c0_i32 = arith.constant 0 : i32
    %c0_i32_0 = arith.constant 0 : i32
    %c0_i32_1 = arith.constant 0 : i32
    return %c0_i32, %c0_i32_0 : i32, i32
  }
  func.func @transform_2(%arg0: i32) -> (i32, i32) {
    %c0_i32 = arith.constant 0 : i32
    %c0_i32_0 = arith.constant 0 : i32
    %c0_i32_1 = arith.constant 0 : i32
    return %c0_i32, %c0_i32_0 : i32, i32
  }
  func.func @transform_3(%arg0: i32) -> (i32, i32) {
    %c0_i32 = arith.constant 0 : i32
    %c0_i32_0 = arith.constant 0 : i32
    return %arg0, %c0_i32 : i32, i32
  }
}

module attributes {stable_mosaic.version = 11 : i64} {
  func.func @_matmul_bias_act_kernel(%arg0: i32, %arg1: memref<64x288xbf16, #tpu.memory_space<vmem>>, %arg2: memref<288x128xbf16, #tpu.memory_space<vmem>>, %arg3: memref<1x128xf32, #tpu.memory_space<vmem>>, %arg4: memref<64x128xbf16, #tpu.memory_space<vmem>>) attributes {dimension_semantics = [#tpu.dimension_semantics<parallel>], iteration_bounds = array<i64: 1>, scalar_prefetch = 0 : i64, scratch_operands = 0 : i64, tpu.core_type = #tpu.core_type<tc>, window_params = [{transform_indices = @transform_0, window_bounds = array<i64: 64, 288>}, {pipeline_mode = #tpu.pipeline_mode<synchronous>, transform_indices = @transform_1, window_bounds = array<i64: 288, 128>}, {pipeline_mode = #tpu.pipeline_mode<synchronous>, transform_indices = @transform_2, window_bounds = array<i64: 1, 128>}, {transform_indices = @transform_3, window_bounds = array<i64: 64, 128>}]} {
    %c0 = arith.constant 0 : index
    %c0_0 = arith.constant 0 : index
    %0 = vector.load %arg1[%c0, %c0_0] : memref<64x288xbf16, #tpu.memory_space<vmem>>, vector<64x288xbf16>
    %c0_1 = arith.constant 0 : index
    %c0_2 = arith.constant 0 : index
    %1 = vector.load %arg2[%c0_1, %c0_2] : memref<288x128xbf16, #tpu.memory_space<vmem>>, vector<288x128xbf16>
    %cst = arith.constant dense<0.000000e+00> : vector<64x128xf32>
    %2 = tpu.matmul %0, %1, %cst {dimension_numbers = #tpu.dot_dimension_numbers<[1], [0], [0], [1], [0, 0, 1, 1], [], []>} : vector<64x288xbf16>, vector<288x128xbf16>, vector<64x128xf32> -> vector<64x128xf32>
    %c0_3 = arith.constant 0 : index
    %c0_4 = arith.constant 0 : index
    %3 = vector.load %arg3[%c0_3, %c0_4] : memref<1x128xf32, #tpu.memory_space<vmem>>, vector<1x128xf32>
    %4 = vector.broadcast %3 : vector<1x128xf32> to vector<64x128xf32>
    %5 = arith.addf %2, %4 : vector<64x128xf32>
    %6 = arith.truncf %5 : vector<64x128xf32> to vector<64x128xbf16>
    %c0_5 = arith.constant 0 : index
    %c0_6 = arith.constant 0 : index
    %7 = vector.load %arg4[%c0_5, %c0_6] : memref<64x128xbf16, #tpu.memory_space<vmem>>, vector<64x128xbf16>
    tpu.vector_store %arg4[%c0_5, %c0_6], %6 {strides = array<i32>} : memref<64x128xbf16, #tpu.memory_space<vmem>>, vector<64x128xbf16>,
    return
  }
  func.func @transform_0(%arg0: i32) -> (i32, i32) {
    %c0_i32 = arith.constant 0 : i32
    %c0_i32_0 = arith.constant 0 : i32
    return %arg0, %c0_i32 : i32, i32
  }
  func.func @transform_1(%arg0: i32) -> (i32, i32) {
    %c0_i32 = arith.constant 0 : i32
    %c0_i32_0 = arith.constant 0 : i32
    %c0_i32_1 = arith.constant 0 : i32
    return %c0_i32, %c0_i32_0 : i32, i32
  }
  func.func @transform_2(%arg0: i32) -> (i32, i32) {
    %c0_i32 = arith.constant 0 : i32
    %c0_i32_0 = arith.constant 0 : i32
    %c0_i32_1 = arith.constant 0 : i32
    return %c0_i32, %c0_i32_0 : i32, i32
  }
  func.func @transform_3(%arg0: i32) -> (i32, i32) {
    %c0_i32 = arith.constant 0 : i32
    %c0_i32_0 = arith.constant 0 : i32
    return %arg0, %c0_i32 : i32, i32
  }
}

module attributes {stable_mosaic.version = 11 : i64} {
  func.func @_corr_kernel(%arg0: i32, %arg1: i32, %arg2: memref<1x32x4x4xbf16, #tpu.memory_space<vmem>>, %arg3: memref<1x32x4x4xbf16, #tpu.memory_space<vmem>>, %arg4: memref<1x32x4xf32, #tpu.memory_space<vmem>>, %arg5: memref<32x4xf32, #tpu.memory_space<vmem>>) attributes {dimension_semantics = [#tpu.dimension_semantics<parallel>, #tpu.dimension_semantics<arbitrary>], iteration_bounds = array<i64: 2, 1>, scalar_prefetch = 0 : i64, scratch_operands = 1 : i64, tpu.core_type = #tpu.core_type<tc>, window_params = [{transform_indices = @transform_0, window_bounds = array<i64: 1, 32, 4, 4>}, {transform_indices = @transform_1, window_bounds = array<i64: 1, 32, 4, 4>}, {transform_indices = @transform_2, window_bounds = array<i64: 1, 32, 4>}]} {
    %c0_i32 = arith.constant 0 : i32
    %0 = arith.cmpi eq, %arg1, %c0_i32 : i32
    %1 = arith.extui %0 : i1 to i32
    %c0_i32_0 = arith.constant 0 : i32
    %2 = arith.cmpi ne, %1, %c0_i32_0 : i32
    scf.if %2 {
      %cst_21 = arith.constant 0.000000e+00 : f32
      %41 = vector.broadcast %cst_21 : f32 to vector<32x4xf32>
      %c0_22 = arith.constant 0 : index
      %c0_23 = arith.constant 0 : index
      %42 = vector.load %arg5[%c0_22, %c0_23] : memref<32x4xf32, #tpu.memory_space<vmem>>, vector<32x4xf32>
      tpu.vector_store %arg5[%c0_22, %c0_23], %41 {strides = array<i32>} : memref<32x4xf32, #tpu.memory_space<vmem>>, vector<32x4xf32>,
    } else {
    }
    %c0 = arith.constant 0 : index
    %c0_1 = arith.constant 0 : index
    %c0_2 = arith.constant 0 : index
    %c0_3 = arith.constant 0 : index
    %3 = vector.load %arg2[%c0, %c0_1, %c0_2, %c0_3] : memref<1x32x4x4xbf16, #tpu.memory_space<vmem>>, vector<1x32x4x4xbf16>
    %4 = vector.shape_cast %3 : vector<1x32x4x4xbf16> to vector<32x4x4xbf16>
    %5 = arith.extf %4 : vector<32x4x4xbf16> to vector<32x4x4xf32>
    %c0_4 = arith.constant 0 : index
    %c0_5 = arith.constant 0 : index
    %c0_6 = arith.constant 0 : index
    %c0_7 = arith.constant 0 : index
    %6 = vector.load %arg3[%c0_4, %c0_5, %c0_6, %c0_7] : memref<1x32x4x4xbf16, #tpu.memory_space<vmem>>, vector<1x32x4x4xbf16>
    %7 = vector.shape_cast %6 : vector<1x32x4x4xbf16> to vector<32x4x4xbf16>
    %8 = vector.extract_strided_slice %7 {offsets = [0, 0, 0], sizes = [32, 4, 3], strides = [1, 1, 1]} : vector<32x4x4xbf16> to vector<32x4x3xbf16>
    %9 = tpu.concatenate %7, %8 in 2 : vector<32x4x4xbf16>, vector<32x4x3xbf16> -> vector<32x4x7xbf16>
    %10 = vector.extract_strided_slice %9 {offsets = [0, 0, 0], sizes = [32, 4, 4], strides = [1, 1, 1]} : vector<32x4x7xbf16> to vector<32x4x4xbf16>
    %11 = arith.extf %10 : vector<32x4x4xbf16> to vector<32x4x4xf32>
    %12 = arith.mulf %5, %11 : vector<32x4x4xf32>
    %cst = arith.constant dense<0.000000e+00> : vector<32x4xf32>
    %13 = vector.multi_reduction <add>, %12, %cst [2] : vector<32x4x4xf32> to vector<32x4xf32>
    %cst_8 = arith.constant dense<0.000000e+00> : vector<32xf32>
    %14 = vector.multi_reduction <add>, %13, %cst_8 [1] : vector<32x4xf32> to vector<32xf32>
    %15 = vector.shape_cast %14 : vector<32xf32> to vector<32x1xf32>
    %16 = vector.extract_strided_slice %9 {offsets = [0, 0, 1], sizes = [32, 4, 4], strides = [1, 1, 1]} : vector<32x4x7xbf16> to vector<32x4x4xbf16>
    %17 = arith.extf %16 : vector<32x4x4xbf16> to vector<32x4x4xf32>
    %18 = arith.mulf %5, %17 : vector<32x4x4xf32>
    %cst_9 = arith.constant dense<0.000000e+00> : vector<32x4xf32>
    %19 = vector.multi_reduction <add>, %18, %cst_9 [2] : vector<32x4x4xf32> to vector<32x4xf32>
    %cst_10 = arith.constant dense<0.000000e+00> : vector<32xf32>
    %20 = vector.multi_reduction <add>, %19, %cst_10 [1] : vector<32x4xf32> to vector<32xf32>
    %21 = vector.shape_cast %20 : vector<32xf32> to vector<32x1xf32>
    %22 = vector.extract_strided_slice %9 {offsets = [0, 0, 2], sizes = [32, 4, 4], strides = [1, 1, 1]} : vector<32x4x7xbf16> to vector<32x4x4xbf16>
    %23 = arith.extf %22 : vector<32x4x4xbf16> to vector<32x4x4xf32>
    %24 = arith.mulf %5, %23 : vector<32x4x4xf32>
    %cst_11 = arith.constant dense<0.000000e+00> : vector<32x4xf32>
    %25 = vector.multi_reduction <add>, %24, %cst_11 [2] : vector<32x4x4xf32> to vector<32x4xf32>
    %cst_12 = arith.constant dense<0.000000e+00> : vector<32xf32>
    %26 = vector.multi_reduction <add>, %25, %cst_12 [1] : vector<32x4xf32> to vector<32xf32>
    %27 = vector.shape_cast %26 : vector<32xf32> to vector<32x1xf32>
    %28 = vector.extract_strided_slice %9 {offsets = [0, 0, 3], sizes = [32, 4, 4], strides = [1, 1, 1]} : vector<32x4x7xbf16> to vector<32x4x4xbf16>
    %29 = arith.extf %28 : vector<32x4x4xbf16> to vector<32x4x4xf32>
    %30 = arith.mulf %5, %29 : vector<32x4x4xf32>
    %cst_13 = arith.constant dense<0.000000e+00> : vector<32x4xf32>
    %31 = vector.multi_reduction <add>, %30, %cst_13 [2] : vector<32x4x4xf32> to vector<32x4xf32>
    %cst_14 = arith.constant dense<0.000000e+00> : vector<32xf32>
    %32 = vector.multi_reduction <add>, %31, %cst_14 [1] : vector<32x4xf32> to vector<32xf32>
    %33 = vector.shape_cast %32 : vector<32xf32> to vector<32x1xf32>
    %34 = tpu.concatenate %15, %21, %27, %33 in 1 : vector<32x1xf32>, vector<32x1xf32>, vector<32x1xf32>, vector<32x1xf32> -> vector<32x4xf32>
    %c0_15 = arith.constant 0 : index
    %c0_16 = arith.constant 0 : index
    %35 = vector.load %arg5[%c0_15, %c0_16] : memref<32x4xf32, #tpu.memory_space<vmem>>, vector<32x4xf32>
    %36 = arith.addf %35, %34 : vector<32x4xf32>
    %c0_17 = arith.constant 0 : index
    %c0_18 = arith.constant 0 : index
    %37 = vector.load %arg5[%c0_17, %c0_18] : memref<32x4xf32, #tpu.memory_space<vmem>>, vector<32x4xf32>
    tpu.vector_store %arg5[%c0_17, %c0_18], %36 {strides = array<i32>} : memref<32x4xf32, #tpu.memory_space<vmem>>, vector<32x4xf32>,
    %c0_i32_19 = arith.constant 0 : i32
    %38 = arith.cmpi eq, %arg1, %c0_i32_19 : i32
    %39 = arith.extui %38 : i1 to i32
    %c0_i32_20 = arith.constant 0 : i32
    %40 = arith.cmpi ne, %39, %c0_i32_20 : i32
    scf.if %40 {
      %c0_21 = arith.constant 0 : index
      %c0_22 = arith.constant 0 : index
      %41 = vector.load %arg5[%c0_21, %c0_22] : memref<32x4xf32, #tpu.memory_space<vmem>>, vector<32x4xf32>
      %c0_23 = arith.constant 0 : index
      %c0_24 = arith.constant 0 : index
      %c0_25 = arith.constant 0 : index
      %42 = vector.load %arg4[%c0_23, %c0_24, %c0_25] : memref<1x32x4xf32, #tpu.memory_space<vmem>>, vector<1x32x4xf32>
      %43 = vector.shape_cast %42 : vector<1x32x4xf32> to vector<32x4xf32>
      %44 = vector.shape_cast %41 : vector<32x4xf32> to vector<1x32x4xf32>
      tpu.vector_store %arg4[%c0_23, %c0_24, %c0_25], %44 {strides = array<i32>} : memref<1x32x4xf32, #tpu.memory_space<vmem>>, vector<1x32x4xf32>,
    } else {
    }
    return
  }
  func.func @transform_0(%arg0: i32, %arg1: i32) -> (i32, i32, i32, i32) {
    %c0_i32 = arith.constant 0 : i32
    %c0_i32_0 = arith.constant 0 : i32
    %c0_i32_1 = arith.constant 0 : i32
    return %arg0, %c0_i32, %arg1, %c0_i32_0 : i32, i32, i32, i32
  }
  func.func @transform_1(%arg0: i32, %arg1: i32) -> (i32, i32, i32, i32) {
    %c0_i32 = arith.constant 0 : i32
    %c0_i32_0 = arith.constant 0 : i32
    %c0_i32_1 = arith.constant 0 : i32
    return %arg0, %c0_i32, %arg1, %c0_i32_0 : i32, i32, i32, i32
  }
  func.func @transform_2(%arg0: i32, %arg1: i32) -> (i32, i32, i32) {
    %c0_i32 = arith.constant 0 : i32
    %c0_i32_0 = arith.constant 0 : i32
    %c0_i32_1 = arith.constant 0 : i32
    return %arg0, %c0_i32, %c0_i32_0 : i32, i32, i32
  }
}

module attributes {stable_mosaic.version = 11 : i64} {
  func.func @_matmul_bias_act_kernel(%arg0: i32, %arg1: memref<64x32xbf16, #tpu.memory_space<vmem>>, %arg2: memref<32x128xbf16, #tpu.memory_space<vmem>>, %arg3: memref<1x128xf32, #tpu.memory_space<vmem>>, %arg4: memref<64x128xbf16, #tpu.memory_space<vmem>>) attributes {dimension_semantics = [#tpu.dimension_semantics<parallel>], iteration_bounds = array<i64: 1>, scalar_prefetch = 0 : i64, scratch_operands = 0 : i64, tpu.core_type = #tpu.core_type<tc>, window_params = [{transform_indices = @transform_0, window_bounds = array<i64: 64, 32>}, {pipeline_mode = #tpu.pipeline_mode<synchronous>, transform_indices = @transform_1, window_bounds = array<i64: 32, 128>}, {pipeline_mode = #tpu.pipeline_mode<synchronous>, transform_indices = @transform_2, window_bounds = array<i64: 1, 128>}, {transform_indices = @transform_3, window_bounds = array<i64: 64, 128>}]} {
    %c0 = arith.constant 0 : index
    %c0_0 = arith.constant 0 : index
    %0 = vector.load %arg1[%c0, %c0_0] : memref<64x32xbf16, #tpu.memory_space<vmem>>, vector<64x32xbf16>
    %c0_1 = arith.constant 0 : index
    %c0_2 = arith.constant 0 : index
    %1 = vector.load %arg2[%c0_1, %c0_2] : memref<32x128xbf16, #tpu.memory_space<vmem>>, vector<32x128xbf16>
    %cst = arith.constant dense<0.000000e+00> : vector<64x128xf32>
    %2 = tpu.matmul %0, %1, %cst {dimension_numbers = #tpu.dot_dimension_numbers<[1], [0], [0], [1], [0, 0, 1, 1], [], []>} : vector<64x32xbf16>, vector<32x128xbf16>, vector<64x128xf32> -> vector<64x128xf32>
    %c0_3 = arith.constant 0 : index
    %c0_4 = arith.constant 0 : index
    %3 = vector.load %arg3[%c0_3, %c0_4] : memref<1x128xf32, #tpu.memory_space<vmem>>, vector<1x128xf32>
    %4 = vector.broadcast %3 : vector<1x128xf32> to vector<64x128xf32>
    %5 = arith.addf %2, %4 : vector<64x128xf32>
    %cst_5 = arith.constant 0.000000e+00 : f32
    %6 = vector.broadcast %cst_5 : f32 to vector<64x128xf32>
    %7 = arith.maximumf %5, %6 : vector<64x128xf32>
    %8 = arith.truncf %7 : vector<64x128xf32> to vector<64x128xbf16>
    %c0_6 = arith.constant 0 : index
    %c0_7 = arith.constant 0 : index
    %9 = vector.load %arg4[%c0_6, %c0_7] : memref<64x128xbf16, #tpu.memory_space<vmem>>, vector<64x128xbf16>
    tpu.vector_store %arg4[%c0_6, %c0_7], %8 {strides = array<i32>} : memref<64x128xbf16, #tpu.memory_space<vmem>>, vector<64x128xbf16>,
    return
  }
  func.func @transform_0(%arg0: i32) -> (i32, i32) {
    %c0_i32 = arith.constant 0 : i32
    %c0_i32_0 = arith.constant 0 : i32
    return %arg0, %c0_i32 : i32, i32
  }
  func.func @transform_1(%arg0: i32) -> (i32, i32) {
    %c0_i32 = arith.constant 0 : i32
    %c0_i32_0 = arith.constant 0 : i32
    %c0_i32_1 = arith.constant 0 : i32
    return %c0_i32, %c0_i32_0 : i32, i32
  }
  func.func @transform_2(%arg0: i32) -> (i32, i32) {
    %c0_i32 = arith.constant 0 : i32
    %c0_i32_0 = arith.constant 0 : i32
    %c0_i32_1 = arith.constant 0 : i32
    return %c0_i32, %c0_i32_0 : i32, i32
  }
  func.func @transform_3(%arg0: i32) -> (i32, i32) {
    %c0_i32 = arith.constant 0 : i32
    %c0_i32_0 = arith.constant 0 : i32
    return %arg0, %c0_i32 : i32, i32
  }
}

module attributes {stable_mosaic.version = 11 : i64} {
  func.func @_matmul_bias_act_kernel(%arg0: i32, %arg1: memref<256x32xbf16, #tpu.memory_space<vmem>>, %arg2: memref<32x128xbf16, #tpu.memory_space<vmem>>, %arg3: memref<1x128xf32, #tpu.memory_space<vmem>>, %arg4: memref<256x128xf32, #tpu.memory_space<vmem>>) attributes {dimension_semantics = [#tpu.dimension_semantics<parallel>], iteration_bounds = array<i64: 1>, scalar_prefetch = 0 : i64, scratch_operands = 0 : i64, tpu.core_type = #tpu.core_type<tc>, window_params = [{transform_indices = @transform_0, window_bounds = array<i64: 256, 32>}, {pipeline_mode = #tpu.pipeline_mode<synchronous>, transform_indices = @transform_1, window_bounds = array<i64: 32, 128>}, {pipeline_mode = #tpu.pipeline_mode<synchronous>, transform_indices = @transform_2, window_bounds = array<i64: 1, 128>}, {transform_indices = @transform_3, window_bounds = array<i64: 256, 128>}]} {
    %c0 = arith.constant 0 : index
    %c0_0 = arith.constant 0 : index
    %0 = vector.load %arg1[%c0, %c0_0] : memref<256x32xbf16, #tpu.memory_space<vmem>>, vector<256x32xbf16>
    %c0_1 = arith.constant 0 : index
    %c0_2 = arith.constant 0 : index
    %1 = vector.load %arg2[%c0_1, %c0_2] : memref<32x128xbf16, #tpu.memory_space<vmem>>, vector<32x128xbf16>
    %cst = arith.constant dense<0.000000e+00> : vector<256x128xf32>
    %2 = tpu.matmul %0, %1, %cst {dimension_numbers = #tpu.dot_dimension_numbers<[1], [0], [0], [1], [0, 0, 1, 1], [], []>} : vector<256x32xbf16>, vector<32x128xbf16>, vector<256x128xf32> -> vector<256x128xf32>
    %c0_3 = arith.constant 0 : index
    %c0_4 = arith.constant 0 : index
    %3 = vector.load %arg3[%c0_3, %c0_4] : memref<1x128xf32, #tpu.memory_space<vmem>>, vector<1x128xf32>
    %4 = vector.broadcast %3 : vector<1x128xf32> to vector<256x128xf32>
    %5 = arith.addf %2, %4 : vector<256x128xf32>
    %c0_5 = arith.constant 0 : index
    %c0_6 = arith.constant 0 : index
    %6 = vector.load %arg4[%c0_5, %c0_6] : memref<256x128xf32, #tpu.memory_space<vmem>>, vector<256x128xf32>
    tpu.vector_store %arg4[%c0_5, %c0_6], %5 {strides = array<i32>} : memref<256x128xf32, #tpu.memory_space<vmem>>, vector<256x128xf32>,
    return
  }
  func.func @transform_0(%arg0: i32) -> (i32, i32) {
    %c0_i32 = arith.constant 0 : i32
    %c0_i32_0 = arith.constant 0 : i32
    return %arg0, %c0_i32 : i32, i32
  }
  func.func @transform_1(%arg0: i32) -> (i32, i32) {
    %c0_i32 = arith.constant 0 : i32
    %c0_i32_0 = arith.constant 0 : i32
    %c0_i32_1 = arith.constant 0 : i32
    return %c0_i32, %c0_i32_0 : i32, i32
  }
  func.func @transform_2(%arg0: i32) -> (i32, i32) {
    %c0_i32 = arith.constant 0 : i32
    %c0_i32_0 = arith.constant 0 : i32
    %c0_i32_1 = arith.constant 0 : i32
    return %c0_i32, %c0_i32_0 : i32, i32
  }
  func.func @transform_3(%arg0: i32) -> (i32, i32) {
    %c0_i32 = arith.constant 0 : i32
    %c0_i32_0 = arith.constant 0 : i32
    return %arg0, %c0_i32 : i32, i32
  }
}

</mosaic_0001>

<bundles_post_ra>
// kernel: all_model_forward.5
= control target key start
LH: loop header
LB: loop body
LE: loop exit
PB: predicated region body
PF: predicated region fallthrough
CT: control target
= control target key end

     0   :  { %vm198_vm0 = vcmask 1044480   ;;  %vm199_vm1 = vcmask 1045504   ;;  %v833_v1 = vmov 65535   ;;  %vm149_vm2 = vcmask 220160   ;;  %s1009_s1 = inlined_call_operand.vmem [shape: bf16[27,128], index: 1, kind: input, shape index: {}]   ;;  %s1010_s0 = inlined_call_operand.vmem [shape: bf16[256,27], index: 0, kind: input, shape index: {}]   ;;  %s1011_s2 = inlined_call_operand.vmem [shape: f32[1,128], index: 2, kind: input, shape index: {}]   ;;  %s1012_s3 = inlined_call_operand.vmem [shape: bf16[256,128], index: 3, kind: output, shape index: {}]  }
   0x1   :  { %v815_v0 = vld [vmem:[%s1009_s1 + $0x8] sm:$0x3f]   ;;  %v200_v2 = vsel %vm198_vm0, 4294967295, %v833_v1  ;;  %v817_v4 = vld [vmem:[%s1010_s0] sm:$0xff]   ;;  %v821_v10 = vld [vmem:[%s1010_s0 + $0x10] sm:$0xff]  }
   0x2   :  { %v201_v3 = vsel %vm199_vm1, %v200_v2, 0  ;;  %v816_v6 = vld [vmem:[%s1009_s1] sm:$0xff]   ;;  %778 = vmatprep.mubr.msk.bf16.mxu0 %vm149_vm2, %v817_v4  ;;  %v819_v8 = vld [vmem:[%s1010_s0 + $0x8] sm:$0xff]   ;;  %v822_v11 = vld [vmem:[%s1010_s0 + $0x50] sm:$0xff]  }
   0x3   :  { %v203_v5 = vand.u32 %v815_v0, %v201_v3  ;;  %v818_v7 = vld [vmem:[%s1010_s0 + $0x40] sm:$0xff]   ;;  %v820_v9 = vld [vmem:[%s1010_s0 + $0x48] sm:$0xff]   ;;  %v823_v12 = vld [vmem:[%s1010_s0 + $0x18] sm:$0xff]  }
   0x4   :  { %794 = vmatprep.mubr.msk.bf16.mxu1 %vm149_vm2, %v818_v7  ;;  %v824_v13 = vld [vmem:[%s1010_s0 + $0x58] sm:$0xff]   ;;  %v825_v14 = vld [vmem:[%s1010_s0 + $0x20] sm:$0xff]   ;;  %v827_v16 = vld [vmem:[%s1010_s0 + $0x28] sm:$0xff]  }
   0x5   :  { %774 = vmatprep.subr.bf16.mxu0 %v203_v5  ;;  %810 = vmatprep.subr.bf16.mxu1 %v203_v5  ;;  %v826_v15 = vld [vmem:[%s1010_s0 + $0x60] sm:$0xff]   ;;  %v828_v17 = vld [vmem:[%s1010_s0 + $0x68] sm:$0xff]   ;;  %v829_v18 = vld [vmem:[%s1010_s0 + $0x30] sm:$0xff]  }
   0x6   :  { %775 = vmatpush3.bf16.msra.mxu0 %v203_v5  ;;  %812 = vmatpush3.bf16.msra.mxu1 %v203_v5  ;;  %v830_v19 = vld [vmem:[%s1010_s0 + $0x70] sm:$0xff]   ;;  %v831_v20 = vld [vmem:[%s1010_s0 + $0x38] sm:$0xff]   ;;  %v927_v22 = vld [vmem:[%s1011_s2] ss:$0 sm:$0xff] }
   0x7   :  { %776 = vmatprep.subr.bf16.mxu0 %v816_v6  ;;  %811 = vmatprep.subr.bf16.mxu1 %v816_v6  ;;  %v832_v21 = vld [vmem:[%s1010_s0 + $0x78] sm:$0xff]  }
   0xa   :  { %777 = vmatpush3.bf16.msra.mxu0 %v816_v6  ;;  %813 = vmatpush3.bf16.msra.mxu1 %v816_v6 }
   0xd   :  { %779 = vmatmul.mubr.msk.bf16.vlgmr.msra.gmra.mxu0 %vm149_vm2, %v819_v8  ;;  %795 = vmatmul.mubr.msk.bf16.vlgmr.msra.gmra.mxu1 %vm149_vm2, %v820_v9 }
   0xe   :  { %782 = vmatprep.mubr.msk.bf16.mxu0 %vm149_vm2, %v821_v10  ;;  %798 = vmatprep.mubr.msk.bf16.mxu1 %vm149_vm2, %v822_v11 }
  0x15   :  { %783 = vmatmul.mubr.msk.bf16.gmra.mxu0 %vm149_vm2, %v823_v12  ;;  %799 = vmatmul.mubr.msk.bf16.gmra.mxu1 %vm149_vm2, %v824_v13 }
  0x16   :  { %786 = vmatprep.mubr.msk.bf16.mxu0 %vm149_vm2, %v825_v14  ;;  %802 = vmatprep.mubr.msk.bf16.mxu1 %vm149_vm2, %v826_v15 }
  0x1d   :  { %787 = vmatmul.mubr.msk.bf16.gmra.mxu0 %vm149_vm2, %v827_v16  ;;  %803 = vmatmul.mubr.msk.bf16.gmra.mxu1 %vm149_vm2, %v828_v17 }
  0x1e   :  { %790 = vmatprep.mubr.msk.bf16.mxu0 %vm149_vm2, %v829_v18  ;;  %806 = vmatprep.mubr.msk.bf16.mxu1 %vm149_vm2, %v830_v19 }
  0x25   :  { %791 = vmatmul.mubr.msk.bf16.gmra.mxu0 %vm149_vm2, %v831_v20  ;;  %807 = vmatmul.mubr.msk.bf16.gmra.mxu1 %vm149_vm2, %v832_v21 }
  0xcd   :  { %v780_v23 = vpop.f32.mrf.mxu0  ;;  %v796_v24 = vpop.f32.mrf.mxu1 }
  0xce   :  { %v248_v25 = vadd.f32 %v780_v23, %v927_v22  ;;  %v312_v26 = vadd.f32 %v796_v24, %v927_v22 }
  0xcf   :  { %v239_v27 = vpop.f32.mrf.mxu0  ;;  %v303_v28 = vpop.f32.mrf.mxu1 }
  0xd0   :  { %v240_v29 = vadd.f32 %v927_v22, %v239_v27  ;;  %v304_v30 = vadd.f32 %v927_v22, %v303_v28  ;;  %v368_v35 = vmax.f32 %v248_v25, 0.0  ;;  %v384_v36 = vmax.f32 %v312_v26, 0.0 }
  0xd1   :  { %v781_v31 = vpop.f32.mrf.mxu0  ;;  %v797_v32 = vpop.f32.mrf.mxu1 }
  0xd2   :  { %v251_v33 = vadd.f32 %v781_v31, %v927_v22  ;;  %v315_v34 = vadd.f32 %v797_v32, %v927_v22  ;;  %v366_v43 = vmax.f32 %v240_v29, 0.0  ;;  %v382_v44 = vmax.f32 %v304_v30, 0.0 }
  0xd3   :  { %v242_v37 = vpop.f32.mrf.mxu0  ;;  %v306_v38 = vpop.f32.mrf.mxu1 }
  0xd4   :  { %v369_v39 = vmax.f32 %v251_v33, 0.0  ;;  %v385_v40 = vmax.f32 %v315_v34, 0.0  ;;  %v243_v41 = vadd.f32 %v927_v22, %v242_v37  ;;  %v307_v42 = vadd.f32 %v927_v22, %v306_v38 }
  0xd5   :  { %v784_v45 = vpop.f32.mrf.mxu0  ;;  %v800_v46 = vpop.f32.mrf.mxu1 }
  0xd6   :  { %v669_v47 = vpack.c.bf16 %v369_v39, %v368_v35  ;;  %v709_v48 = vpack.c.bf16 %v385_v40, %v384_v36  ;;  %v367_v49 = vmax.f32 %v243_v41, 0.0  ;;  %v383_v50 = vmax.f32 %v307_v42, 0.0 }
  0xd7   :  { %v264_v51 = vadd.f32 %v784_v45, %v927_v22  ;;  %v328_v52 = vadd.f32 %v800_v46, %v927_v22  ;;  %v255_v53 = vpop.f32.mrf.mxu0  ;;  %v319_v54 = vpop.f32.mrf.mxu1 }
  0xd8   :  { %741 = vst [vmem:[%s1012_s3 + $0x8] sm:$0xff] %v669_v47   ;;  %749 = vst [vmem:[%s1012_s3 + $0x48] sm:$0xff] %v709_v48   ;;  %v664_v55 = vpack.c.bf16 %v367_v49, %v366_v43  ;;  %v704_v56 = vpack.c.bf16 %v383_v50, %v382_v44  ;;  %v256_v57 = vadd.f32 %v927_v22, %v255_v53 }
  0xd9   :  { %v320_v58 = vadd.f32 %v927_v22, %v319_v54  ;;  %v785_v59 = vpop.f32.mrf.mxu0  ;;  %v801_v60 = vpop.f32.mrf.mxu1  ;;  %v372_v63 = vmax.f32 %v264_v51, 0.0  ;;  %v388_v0 = vmax.f32 %v328_v52, 0.0 }
  0xda   :  { %665 = vst [vmem:[%s1012_s3] sm:$0xff] %v664_v55   ;;  %748 = vst [vmem:[%s1012_s3 + $0x40] sm:$0xff] %v704_v56   ;;  %v267_v61 = vadd.f32 %v785_v59, %v927_v22  ;;  %v331_v62 = vadd.f32 %v801_v60, %v927_v22  ;;  %v370_v7 = vmax.f32 %v256_v57, 0.0 }
  0xdb   :  { %v258_v1 = vpop.f32.mrf.mxu0  ;;  %v322_v2 = vpop.f32.mrf.mxu1  ;;  %v386_v8 = vmax.f32 %v320_v58, 0.0 }
  0xdc   :  { %v373_v3 = vmax.f32 %v267_v61, 0.0  ;;  %v389_v4 = vmax.f32 %v331_v62, 0.0  ;;  %v259_v5 = vadd.f32 %v927_v22, %v258_v1  ;;  %v323_v6 = vadd.f32 %v927_v22, %v322_v2 }
  0xdd   :  { %v788_v9 = vpop.f32.mrf.mxu0  ;;  %v804_v10 = vpop.f32.mrf.mxu1 }
  0xde   :  { %v679_v11 = vpack.c.bf16 %v373_v3, %v372_v63  ;;  %v719_v12 = vpack.c.bf16 %v389_v4, %v388_v0  ;;  %v371_v13 = vmax.f32 %v259_v5, 0.0  ;;  %v387_v14 = vmax.f32 %v323_v6, 0.0 }
  0xdf   :  { %v280_v15 = vadd.f32 %v788_v9, %v927_v22  ;;  %v344_v16 = vadd.f32 %v804_v10, %v927_v22  ;;  %v271_v17 = vpop.f32.mrf.mxu0  ;;  %v335_v18 = vpop.f32.mrf.mxu1 }
  0xe0   :  { %743 = vst [vmem:[%s1012_s3 + $0x18] sm:$0xff] %v679_v11   ;;  %751 = vst [vmem:[%s1012_s3 + $0x58] sm:$0xff] %v719_v12   ;;  %v674_v19 = vpack.c.bf16 %v371_v13, %v370_v7  ;;  %v714_v20 = vpack.c.bf16 %v387_v14, %v386_v8  ;;  %v272_v21 = vadd.f32 %v927_v22, %v271_v17 }
  0xe1   :  { %v336_v23 = vadd.f32 %v927_v22, %v335_v18  ;;  %v789_v24 = vpop.f32.mrf.mxu0  ;;  %v805_v25 = vpop.f32.mrf.mxu1  ;;  %v376_v28 = vmax.f32 %v280_v15, 0.0  ;;  %v392_v29 = vmax.f32 %v344_v16, 0.0 }
  0xe2   :  { %742 = vst [vmem:[%s1012_s3 + $0x10] sm:$0xff] %v674_v19   ;;  %750 = vst [vmem:[%s1012_s3 + $0x50] sm:$0xff] %v714_v20   ;;  %v283_v26 = vadd.f32 %v789_v24, %v927_v22  ;;  %v347_v27 = vadd.f32 %v805_v25, %v927_v22  ;;  %v374_v36 = vmax.f32 %v272_v21, 0.0 }
  0xe3   :  { %v274_v30 = vpop.f32.mrf.mxu0  ;;  %v338_v31 = vpop.f32.mrf.mxu1  ;;  %v390_v37 = vmax.f32 %v336_v23, 0.0 }
  0xe4   :  { %v377_v32 = vmax.f32 %v283_v26, 0.0  ;;  %v393_v33 = vmax.f32 %v347_v27, 0.0  ;;  %v275_v34 = vadd.f32 %v927_v22, %v274_v30  ;;  %v339_v35 = vadd.f32 %v927_v22, %v338_v31 }
  0xe5   :  { %v792_v38 = vpop.f32.mrf.mxu0  ;;  %v808_v39 = vpop.f32.mrf.mxu1 }
  0xe6   :  { %v689_v40 = vpack.c.bf16 %v377_v32, %v376_v28  ;;  %v729_v41 = vpack.c.bf16 %v393_v33, %v392_v29  ;;  %v375_v42 = vmax.f32 %v275_v34, 0.0  ;;  %v391_v43 = vmax.f32 %v339_v35, 0.0 }
  0xe7   :  { %v296_v44 = vadd.f32 %v792_v38, %v927_v22  ;;  %v360_v45 = vadd.f32 %v808_v39, %v927_v22  ;;  %v287_v46 = vpop.f32.mrf.mxu0  ;;  %v351_v47 = vpop.f32.mrf.mxu1 }
  0xe8   :  { %745 = vst [vmem:[%s1012_s3 + $0x28] sm:$0xff] %v689_v40   ;;  %753 = vst [vmem:[%s1012_s3 + $0x68] sm:$0xff] %v729_v41   ;;  %v684_v48 = vpack.c.bf16 %v375_v42, %v374_v36  ;;  %v724_v49 = vpack.c.bf16 %v391_v43, %v390_v37  ;;  %v288_v50 = vadd.f32 %v927_v22, %v287_v46 }
  0xe9   :  { %v352_v51 = vadd.f32 %v927_v22, %v351_v47  ;;  %v793_v52 = vpop.f32.mrf.mxu0  ;;  %v809_v53 = vpop.f32.mrf.mxu1  ;;  %v380_v56 = vmax.f32 %v296_v44, 0.0  ;;  %v396_v57 = vmax.f32 %v360_v45, 0.0 }
  0xea   :  { %744 = vst [vmem:[%s1012_s3 + $0x20] sm:$0xff] %v684_v48   ;;  %752 = vst [vmem:[%s1012_s3 + $0x60] sm:$0xff] %v724_v49   ;;  %v299_v54 = vadd.f32 %v793_v52, %v927_v22  ;;  %v363_v55 = vadd.f32 %v809_v53, %v927_v22  ;;  %v378_v0 = vmax.f32 %v288_v50, 0.0 }
  0xeb   :  { %v290_v58 = vpop.f32.mrf.mxu0  ;;  %v354_v59 = vpop.f32.mrf.mxu1  ;;  %v394_v1 = vmax.f32 %v352_v51, 0.0 }
  0xec   :  { %v381_v60 = vmax.f32 %v299_v54, 0.0  ;;  %v397_v61 = vmax.f32 %v363_v55, 0.0  ;;  %v291_v62 = vadd.f32 %v927_v22, %v290_v58  ;;  %v355_v63 = vadd.f32 %v927_v22, %v354_v59 }
  0xee   :  { %v699_v2 = vpack.c.bf16 %v381_v60, %v380_v56  ;;  %v739_v3 = vpack.c.bf16 %v397_v61, %v396_v57  ;;  %v379_v4 = vmax.f32 %v291_v62, 0.0  ;;  %v395_v5 = vmax.f32 %v355_v63, 0.0 }
  0xf0   :  { %747 = vst [vmem:[%s1012_s3 + $0x38] sm:$0xff] %v699_v2   ;;  %755 = vst [vmem:[%s1012_s3 + $0x78] sm:$0xff] %v739_v3   ;;  %v694_v6 = vpack.c.bf16 %v379_v4, %v378_v0  ;;  %v734_v7 = vpack.c.bf16 %v395_v5, %v394_v1 }
  0xf2   :  { %746 = vst [vmem:[%s1012_s3 + $0x30] sm:$0xff] %v694_v6   ;;  %754 = vst [vmem:[%s1012_s3 + $0x70] sm:$0xff] %v734_v7  }

// kernel: split.0
= control target key start
LH: loop header
LB: loop body
LE: loop exit
PB: predicated region body
PF: predicated region fallthrough
CT: control target
= control target key end

     0   :  { %v130_v14 = vmov 0.0   ;;  %s189_s0 = inlined_call_operand.vmem [shape: bf16[4,4,4,32], index: 0, kind: input, shape index: {}]   ;;  %s190_s1 = inlined_call_operand.vmem [shape: bf16[2,4,4,32], index: 1, kind: output, shape index: {}]  }
   0x1   :  { %v114_v0 = vld [vmem:[%s189_s0 + $0x10] sm:$0x3]  ;;  %v115_v1 = vld [vmem:[%s189_s0 + $0x18] sm:$0x3]  ;;  %v117_v2 = vld [vmem:[%s189_s0 + $0x12] sm:$0x3] }
   0x2   :  { %v12_v3 = vunpack.c.l.bf16 %v114_v0  ;;  %v24_v4 = vunpack.c.l.bf16 %v115_v1  ;;  %v37_v5 = vunpack.c.l.bf16 %v117_v2  ;;  %v119_v6 = vld [vmem:[%s189_s0 + $0x1a] sm:$0x3]  ;;  %v121_v7 = vld [vmem:[%s189_s0 + $0x14] sm:$0x3]  ;;  %v123_v8 = vld [vmem:[%s189_s0 + $0x1c] sm:$0x3] }
   0x3   :  { %v50_v9 = vunpack.c.l.bf16 %v119_v6  ;;  %v63_v10 = vunpack.c.l.bf16 %v121_v7  ;;  %v76_v11 = vunpack.c.l.bf16 %v123_v8  ;;  %v125_v12 = vld [vmem:[%s189_s0 + $0x16] sm:$0x3]  ;;  %v127_v13 = vld [vmem:[%s189_s0 + $0x1e] sm:$0x3] }
   0x4   :  { %v14_v15 = vpack.c.bf16 %v130_v14, %v12_v3  ;;  %v27_v16 = vpack.c.bf16 %v130_v14, %v24_v4  ;;  %v40_v17 = vpack.c.bf16 %v130_v14, %v37_v5  ;;  %v89_v18 = vunpack.c.l.bf16 %v125_v12 }
   0x5   :  { %v53_v19 = vpack.c.bf16 %v130_v14, %v50_v9  ;;  %v66_v20 = vpack.c.bf16 %v130_v14, %v63_v10  ;;  %v79_v21 = vpack.c.bf16 %v130_v14, %v76_v11  ;;  %v102_v22 = vunpack.c.l.bf16 %v127_v13 }
   0x6   :  { %15 = vst [vmem:[%s190_s1] sm:$0x3] %v14_v15  ;;  %116 = vst [vmem:[%s190_s1 + $0x8] sm:$0x3] %v27_v16  ;;  %v92_v23 = vpack.c.bf16 %v130_v14, %v89_v18 }
   0x7   :  { %118 = vst [vmem:[%s190_s1 + $0x2] sm:$0x3] %v40_v17  ;;  %120 = vst [vmem:[%s190_s1 + $0xa] sm:$0x3] %v53_v19  ;;  %v105_v24 = vpack.c.bf16 %v130_v14, %v102_v22 }
   0x8   :  { %122 = vst [vmem:[%s190_s1 + $0x4] sm:$0x3] %v66_v20  ;;  %124 = vst [vmem:[%s190_s1 + $0xc] sm:$0x3] %v79_v21 }
   0x9   :  { %126 = vst [vmem:[%s190_s1 + $0x6] sm:$0x3] %v92_v23  ;;  %128 = vst [vmem:[%s190_s1 + $0xe] sm:$0x3] %v105_v24 }

// kernel: all_model_forward.6
= control target key start
LH: loop header
LB: loop body
LE: loop exit
PB: predicated region body
PF: predicated region fallthrough
CT: control target
= control target key end

     0   :  { %vm242_vm0 = vcmask 261120   ;;  %s740_s1 = inlined_call_operand.vmem [shape: bf16[288,128], index: 1, kind: input, shape index: {}]   ;;  %s741_s0 = inlined_call_operand.vmem [shape: bf16[64,288], index: 0, kind: input, shape index: {}]   ;;  %s742_s2 = inlined_call_operand.vmem [shape: f32[1,128], index: 2, kind: input, shape index: {}]   ;;  %s743_s3 = inlined_call_operand.vmem [shape: bf16[64,128], index: 3, kind: output, shape index: {}]  }
   0x1   :  { %v577_v0 = vld [vmem:[%s740_s1 + $0x78] sm:$0xff]   ;;  %v579_v2 = vld [vmem:[%s740_s1 + $0x70] sm:$0xff]   ;;  %v581_v4 = vld [vmem:[%s740_s1 + $0x68] sm:$0xff]  }
   0x2   :  { %v578_v1 = vld [vmem:[%s740_s1 + $0x38] sm:$0xff]   ;;  %503 = vmatprep.subr.bf16.mxu0 %v577_v0  ;;  %561 = vmatprep.subr.bf16.mxu1 %v577_v0  ;;  %v580_v3 = vld [vmem:[%s740_s1 + $0x30] sm:$0xff]   ;;  %v582_v5 = vld [vmem:[%s740_s1 + $0x28] sm:$0xff]  }
   0x3   :  { %504 = vmatpush3.bf16.msra.mxu0 %v578_v1  ;;  %569 = vmatpush3.bf16.msra.mxu1 %v578_v1  ;;  %v583_v6 = vld [vmem:[%s740_s1 + $0x60] sm:$0xff]   ;;  %v585_v8 = vld [vmem:[%s740_s1 + $0x58] sm:$0xff]   ;;  %v587_v10 = vld [vmem:[%s740_s1 + $0x50] sm:$0xff]  }
   0x4   :  { %505 = vmatprep.subr.bf16.mxu0 %v579_v2  ;;  %562 = vmatprep.subr.bf16.mxu1 %v579_v2  ;;  %v584_v7 = vld [vmem:[%s740_s1 + $0x20] sm:$0xff]   ;;  %v586_v9 = vld [vmem:[%s740_s1 + $0x18] sm:$0xff]   ;;  %v588_v13 = vld [vmem:[%s740_s1 + $0x10] sm:$0xff]  }
   0x5   :  { %v595_v11 = vld [vmem:[%s741_s0 + $0x4] ss:$12 sps:$4 sm:$0xff]   ;;  %v598_v12 = vld [vmem:[%s741_s0 + $0x4c] ss:$12 sps:$4 sm:$0xff]   ;;  %v596_v20 = vld [vmem:[%s741_s0 + $0x48] ss:$12 sps:$4 sm:$0xff]  }
   0x6   :  { %v589_v14 = vld [vmem:[%s740_s1 + $0x48] sm:$0xff]   ;;  %287 = vmatprep.mubr.bf16.mxu0 %v595_v11  ;;  %311 = vmatprep.mubr.bf16.mxu1 %v598_v12  ;;  %v591_v16 = vld [vmem:[%s740_s1 + $0x40] sm:$0xff]   ;;  %v609_v28 = vld [vmem:[%s741_s0 + $0x30] ss:$12 sps:$4 sm:$0xff]  }
   0x7   :  { %506 = vmatpush3.bf16.msra.mxu0 %v580_v3  ;;  %570 = vmatpush3.bf16.msra.mxu1 %v580_v3  ;;  %v590_v15 = vld [vmem:[%s740_s1 + $0x8] sm:$0xff]   ;;  %v592_v17 = vld [vmem:[%s740_s1] sm:$0xff]   ;;  %v610_v29 = vld [vmem:[%s741_s0 + $0x50] ss:$12 sps:$4 sm:$0xff]  }
   0x8   :  { %507 = vmatprep.subr.bf16.mxu0 %v581_v4  ;;  %563 = vmatprep.subr.bf16.mxu1 %v581_v4  ;;  %v599_v18 = vld [vmem:[%s740_s1 + $0x88] sm:$0xff]   ;;  %v600_v22 = vld [vmem:[%s740_s1 + $0x80] sm:$0xff]  }
   0x9   :  { %v593_v19 = vld [vmem:[%s741_s0] ss:$12 sps:$4 sm:$0xff]   ;;  %v601_v21 = vld [vmem:[%s741_s0 + $0x1c] ss:$12 sps:$4 sm:$0xff]   ;;  %v604_v24 = vld [vmem:[%s741_s0 + $0x18] ss:$12 sps:$4 sm:$0xff]  }
   0xa   :  { %v603_v23 = vld [vmem:[%s741_s0 + $0x8] ss:$12 sps:$4 sm:$0xff]   ;;  %v605_v25 = vld [vmem:[%s741_s0 + $0x20] ss:$12 sps:$4 sm:$0xff]   ;;  %v608_v27 = vld [vmem:[%s741_s0 + $0x38] ss:$12 sps:$4 sm:$0xff]  }
   0xb   :  { %508 = vmatpush3.bf16.msra.mxu0 %v582_v5  ;;  %571 = vmatpush3.bf16.msra.mxu1 %v582_v5  ;;  %v606_v26 = vld [vmem:[%s741_s0 + $0x34] ss:$12 sps:$4 sm:$0xff]  }
   0xc   :  { %509 = vmatprep.subr.bf16.mxu0 %v583_v6  ;;  %564 = vmatprep.subr.bf16.mxu1 %v583_v6  ;;  %v429_v42 = vld [vmem:[%s742_s2] ss:$0 sm:$0xff] }
   0xf   :  { %510 = vmatpush3.bf16.msra.mxu0 %v584_v7  ;;  %572 = vmatpush3.bf16.msra.mxu1 %v584_v7 }
  0x10   :  { %511 = vmatprep.subr.bf16.mxu0 %v585_v8  ;;  %565 = vmatprep.subr.bf16.mxu1 %v585_v8 }
  0x13   :  { %512 = vmatpush3.bf16.msra.mxu0 %v586_v9  ;;  %573 = vmatpush3.bf16.msra.mxu1 %v586_v9 }
  0x14   :  { %513 = vmatprep.subr.bf16.mxu0 %v587_v10  ;;  %566 = vmatprep.subr.bf16.mxu1 %v587_v10 }
  0x17   :  { %514 = vmatpush3.bf16.msra.mxu0 %v588_v13  ;;  %574 = vmatpush3.bf16.msra.mxu1 %v588_v13 }
  0x18   :  { %515 = vmatprep.subr.bf16.mxu0 %v589_v14  ;;  %567 = vmatprep.subr.bf16.mxu1 %v589_v14 }
  0x1b   :  { %516 = vmatpush3.bf16.msra.mxu0 %v590_v15  ;;  %575 = vmatpush3.bf16.msra.mxu1 %v590_v15 }
  0x1c   :  { %517 = vmatprep.subr.bf16.mxu0 %v591_v16  ;;  %568 = vmatprep.subr.bf16.mxu1 %v591_v16 }
  0x1f   :  { %518 = vmatpush3.bf16.msra.mxu0 %v592_v17  ;;  %576 = vmatpush3.bf16.msra.mxu1 %v592_v17 }
  0x20   :  { %549 = vmatprep.subr.bf16.mxu1 %v599_v18 }
  0x22   :  { %288 = vmatmul.mubr.bf16.vlgmr.msra.gmra.mxu0 %v593_v19  ;;  %312 = vmatmul.mubr.bf16.vlgmr.msra.gmra.mxu1 %v596_v20 }
  0x23   :  { %550 = vmatpush3.bf16.msra.mxu1 %v599_v18  ;;  %295 = vmatprep.mubr.bf16.mxu0 %v601_v21 }
  0x24   :  { %551 = vmatprep.subr.bf16.mxu1 %v600_v22  ;;  %553 = vmatprep.mubr.msk.bf16.mxu1 %vm242_vm0, %v603_v23 }
  0x27   :  { %552 = vmatpush3.bf16.msra.mxu1 %v600_v22 }
  0x2a   :  { %296 = vmatmul.mubr.bf16.gmra.mxu0 %v604_v24  ;;  %554 = vmatmul.mubr.msk.bf16.vlgmr.msra.gmra.mxu1 %vm242_vm0, %v605_v25 }
  0x2b   :  { %303 = vmatprep.mubr.bf16.mxu0 %v606_v26  ;;  %557 = vmatprep.mubr.msk.bf16.mxu1 %vm242_vm0, %v608_v27 }
  0x32   :  { %304 = vmatmul.mubr.bf16.gmra.mxu0 %v609_v28  ;;  %558 = vmatmul.mubr.msk.bf16.gmra.mxu1 %vm242_vm0, %v610_v29 }
  0xe2   :  { %v519_v30 = vpop.f32.mrf.mxu0  ;;  %v537_v31 = vpop.f32.mrf.mxu1 }
  0xe4   :  { %v520_v32 = vpop.f32.mrf.mxu0  ;;  %v538_v33 = vpop.f32.mrf.mxu1 }
  0xe5   :  { %v521_v40 = vadd.f32 %v520_v32, %v519_v30  ;;  %v539_v50 = vadd.f32 %v538_v33, %v537_v31 }
  0xe6   :  { %v522_v34 = vpop.f32.mrf.mxu0  ;;  %v540_v35 = vpop.f32.mrf.mxu1 }
  0xe7   :  { %v290_v48 = vadd.f32 %v521_v40, %v429_v42  ;;  %v314_v62 = vadd.f32 %v539_v50, %v429_v42 }
  0xe8   :  { %v523_v36 = vpop.f32.mrf.mxu0  ;;  %v541_v37 = vpop.f32.mrf.mxu1 }
  0xe9   :  { %v524_v41 = vadd.f32 %v523_v36, %v522_v34  ;;  %v542_v51 = vadd.f32 %v541_v37, %v540_v35 }
  0xea   :  { %v525_v38 = vpop.f32.mrf.mxu0  ;;  %v555_v39 = vpop.f32.mrf.mxu1 }
  0xeb   :  { %v293_v49 = vadd.f32 %v524_v41, %v429_v42  ;;  %v317_v4 = vadd.f32 %v542_v51, %v429_v42 }
  0xec   :  { %v526_v43 = vpop.f32.mrf.mxu0  ;;  %v354_v44 = vpop.f32.mrf.mxu1 }
  0xed   :  { %v527_v45 = vadd.f32 %v526_v43, %v525_v38  ;;  %v355_v55 = vadd.f32 %v354_v44, %v290_v48 }
  0xee   :  { %v528_v46 = vpop.f32.mrf.mxu0  ;;  %v556_v47 = vpop.f32.mrf.mxu1 }
  0xef   :  { %v298_v54 = vadd.f32 %v527_v45, %v429_v42 }
  0xf0   :  { %v529_v52 = vpop.f32.mrf.mxu0  ;;  %v357_v53 = vpop.f32.mrf.mxu1 }
  0xf1   :  { %v530_v56 = vadd.f32 %v529_v52, %v528_v46  ;;  %v358_v57 = vadd.f32 %v357_v53, %v293_v49  ;;  %v363_v1 = vadd.f32 %v555_v39, %v298_v54 }
  0xf2   :  { %v531_v58 = vpop.f32.mrf.mxu0  ;;  %v559_v59 = vpop.f32.mrf.mxu1 }
  0xf3   :  { %v301_v60 = vadd.f32 %v530_v56, %v429_v42  ;;  %v483_v61 = vpack.c.bf16 %v358_v57, %v355_v55  ;;  %v379_v8 = vadd.f32 %v559_v59, %v314_v62 }
  0xf4   :  { %v532_v63 = vpop.f32.mrf.mxu0  ;;  %v370_v0 = vpop.f32.mrf.mxu1 }
  0xf5   :  { %v366_v2 = vadd.f32 %v556_v47, %v301_v60  ;;  %484 = vst [vmem:[%s743_s3] sm:$0xff] %v483_v61   ;;  %v533_v3 = vadd.f32 %v532_v63, %v531_v58 }
  0xf6   :  { %v534_v5 = vpop.f32.mrf.mxu0  ;;  %v560_v6 = vpop.f32.mrf.mxu1 }
  0xf7   :  { %v488_v7 = vpack.c.bf16 %v366_v2, %v363_v1  ;;  %v382_v9 = vadd.f32 %v560_v6, %v317_v4  ;;  %v306_v11 = vadd.f32 %v533_v3, %v429_v42 }
  0xf8   :  { %v535_v10 = vpop.f32.mrf.mxu0  ;;  %v373_v15 = vpop.f32.mrf.mxu1 }
  0xf9   :  { %500 = vst [vmem:[%s743_s3 + $0x8] sm:$0xff] %v488_v7   ;;  %v498_v12 = vpack.c.bf16 %v382_v9, %v379_v8  ;;  %v536_v13 = vadd.f32 %v535_v10, %v534_v5  ;;  %v371_v16 = vadd.f32 %v370_v0, %v306_v11 }
  0xfb   :  { %502 = vst [vmem:[%s743_s3 + $0x18] sm:$0xff] %v498_v12   ;;  %v309_v14 = vadd.f32 %v536_v13, %v429_v42 }
  0xfd   :  { %v374_v17 = vadd.f32 %v373_v15, %v309_v14 }
  0xff   :  { %v493_v18 = vpack.c.bf16 %v374_v17, %v371_v16 }
 0x101   :  { %501 = vst [vmem:[%s743_s3 + $0x10] sm:$0xff] %v493_v18  }

// kernel: all_model_forward.7
= control target key start
LH: loop header
LB: loop body
LE: loop exit
PB: predicated region body
PF: predicated region fallthrough
CT: control target
= control target key end

     0   :  { %s2898_s9 = smov 0   ;;  %s2900_s10 = smov 0   ;;  %s4332_s0 = inlined_call_operand.vmem [shape: bf16[2,32,4,4], index: 0, kind: input, shape index: {}]   ;;  %s4333_s1 = inlined_call_operand.vmem [shape: bf16[2,32,4,4], index: 1, kind: input, shape index: {}]   ;;  %s4334_s2 = inlined_call_operand.vmem [shape: f32[2,32,4], index: 2, kind: output, shape index: {}]  }
   0x1   :  { %s2902_s11 = smov 0  }
   0x2 LB: > { %s24_s12 = sadd.s32 1, %s2871_s10  ;;  %p2571_p0 = scmp.ge.s32.totalorder %s2875_s11, 1  ;;  %s2875_s11 = sphi %s2902_s11, %s12_s11   ;;  %s2871_s10 = sphi %s2900_s10, %s4556_s10   ;;  %s2867_s9 = sphi %s2898_s9, %s4555_s9  }
   0x3   : > { %p26_p1 = scmp.ge.s32.totalorder %s24_s12, 2  ;;  %p144_p2 = scmp.lt.s32.totalorder %s2875_s11, 3 }
   0x5   : > { %s4558_s12 = smov (%p26_p1, %s24_s12), 0  ;;  %p145_p3 = pnand %p2571_p0, %p144_p2 }
   0x7   : > { %148 = sbr.rel (%p145_p3) target bundleno = 1112 (0x458), region = 28 }
   0xc   : > { %p177_p4 = scmp.lt.s32.totalorder %s2867_s9, 1  ;;  %v338_v0 = vlaneseq  ;;  %v2877_v1 = vmov 1983009808   ;;  %s2878_s17 = smov 4   ;;  %vm202_vm0 = vcmask 31744   ;;  %vm816_vm1 = vcmask 27648  }
   0xd   : > { %v336_v2 = vunpack.c.l.s4 %v2877_v1  ;;  %s2879_s21 = smov 127   ;;  %vm1075_vm2 = vcmask 1041409   ;;  %vm1077_vm3 = vcmask 1042434   ;;  %vm1079_vm4 = vcmask 1043459   ;;  %s2880_s22 = smov 126  }
   0xe   : > { %s4560_s9 = smov (!%p177_p4, %s2867_s9), 1  ;;  %v339_v3 = vshrl.u32 %v338_v0, 7  ;;  %v946_v4 = vand.u32 127, %v338_v0  ;;  %vm1081_vm5 = vcmask 1044484   ;;  %vm1083_vm6 = vcmask 1045509   ;;  %s2881_s23 = smov 125  }
   0xf   : > { %v337_v5 = vunpack.c.0.s8 %v336_v2  ;;  %s2580_s13 = sshll.u32 %s4560_s9, 6  ;;  %vm1085_vm7 = vcmask 1046534   ;;  %vm1087_vm8 = vcmask 1047559   ;;  %vm2442_vm9 = vcmask 7168   ;;  %s2582_s24 = sshll.u32 %s4560_s9, 5 }
  0x10   : > { %v2919_v6 = vsub.s32 %v946_v4, %v339_v3  ;;  %s2926_s16 = scalar_lea.vmem %s4333_s1, %s2580_s13  ;;  %s3127_s20 = scalar_lea.vmem %s4332_s0, %s2580_s13  ;;  %vm2447_vm10 = vcmask 15360   ;;  %vm2452_vm11 = vcmask 23552  }
  0x11   : > { %v2928_v7 = vsub.s32 %v337_v5, %v339_v3  ;;  %v2931_v8 = vld [vmem:[%s2926_s16 + $0x4] sm:$0x3]  ;;  %v2934_v9 = vld [vmem:[%s2926_s16] sm:$0x3]  ;;  %v2937_v10 = vld [vmem:[%s2926_s16 + $0x6] sm:$0x3]  ;;  %s197_s27 = scalar_lea.vmem %s4334_s2, %s2582_s24 }
  0x12   : > { %v2944_v13 = vld [vmem:[%s2926_s16 + $0x2] sm:$0x3]  ;;  %v2953_v16 = vld [vmem:[%s2926_s16 + $0xa] sm:$0x3]  ;;  %v2956_v17 = vld [vmem:[%s2926_s16 + $0x8] sm:$0x3] }
  0x13   : > { %v355_v11 = vrot.slane %v2931_v8, %v2928_v7  ;;  %v341_v12 = vrot.slane %v2934_v9, %v2928_v7  ;;  %v362_v14 = vrot.slane %v2937_v10, %v2928_v7  ;;  %v348_v15 = vrot.slane %v2944_v13, %v2928_v7  ;;  %v2965_v20 = vld [vmem:[%s2926_s16 + $0xe] sm:$0x3]  ;;  %v2968_v21 = vld [vmem:[%s2926_s16 + $0xc] sm:$0x3]  ;;  %v2977_v24 = vld [vmem:[%s2926_s16 + $0x12] sm:$0x3] }
  0x14   : > { %v376_v18 = vrot.slane %v2953_v16, %v2928_v7  ;;  %v369_v19 = vrot.slane %v2956_v17, %v2928_v7  ;;  %v390_v22 = vrot.slane %v2965_v20, %v2928_v7  ;;  %v383_v23 = vrot.slane %v2968_v21, %v2928_v7  ;;  %v2980_v25 = vld [vmem:[%s2926_s16 + $0x10] sm:$0x3]  ;;  %v2989_v28 = vld [vmem:[%s2926_s16 + $0x16] sm:$0x3]  ;;  %v2992_v29 = vld [vmem:[%s2926_s16 + $0x14] sm:$0x3] }
  0x15   : > { %563 = vrot.lane.b32.xlu1 %v355_v11, %s2878_s17  ;;  %559 = vrot.lane.b32.xlu0 %v341_v12, %s2878_s17  ;;  %v404_v26 = vrot.slane %v2977_v24, %v2928_v7  ;;  %v397_v27 = vrot.slane %v2980_v25, %v2928_v7  ;;  %v418_v30 = vrot.slane %v2989_v28, %v2928_v7  ;;  %v3001_v32 = vld [vmem:[%s2926_s16 + $0x1a] sm:$0x3]  ;;  %v3004_v33 = vld [vmem:[%s2926_s16 + $0x18] sm:$0x3] }
  0x16   : > { %v411_v31 = vrot.slane %v2992_v29, %v2928_v7  ;;  %v432_v34 = vrot.slane %v3001_v32, %v2928_v7  ;;  %v425_v35 = vrot.slane %v3004_v33, %v2928_v7  ;;  %v3013_v36 = vld [vmem:[%s2926_s16 + $0x1e] sm:$0x3]  ;;  %v3016_v37 = vld [vmem:[%s2926_s16 + $0x1c] sm:$0x3]  ;;  %v3025_v40 = vld [vmem:[%s2926_s16 + $0x22] sm:$0x3] }
  0x17   : > { %v446_v38 = vrot.slane %v3013_v36, %v2928_v7  ;;  %v439_v39 = vrot.slane %v3016_v37, %v2928_v7  ;;  %v3028_v41 = vld [vmem:[%s2926_s16 + $0x20] sm:$0x3]  ;;  %v460_v42 = vrot.slane %v3025_v40, %v2928_v7  ;;  %v3037_v44 = vld [vmem:[%s2926_s16 + $0x26] sm:$0x3]  ;;  %v3040_v45 = vld [vmem:[%s2926_s16 + $0x24] sm:$0x3] }
  0x18   : > { %v453_v43 = vrot.slane %v3028_v41, %v2928_v7  ;;  %v474_v46 = vrot.slane %v3037_v44, %v2928_v7  ;;  %v467_v47 = vrot.slane %v3040_v45, %v2928_v7  ;;  %v3049_v48 = vld [vmem:[%s2926_s16 + $0x2a] sm:$0x3]  ;;  %v3052_v49 = vld [vmem:[%s2926_s16 + $0x28] sm:$0x3]  ;;  %v3061_v52 = vld [vmem:[%s2926_s16 + $0x2e] sm:$0x3] }
  0x19   : > { %565 = vrot.lane.b32.xlu1 %v362_v14, %s2878_s17  ;;  %561 = vrot.lane.b32.xlu0 %v348_v15, %s2878_s17  ;;  %v488_v50 = vrot.slane %v3049_v48, %v2928_v7  ;;  %v481_v51 = vrot.slane %v3052_v49, %v2928_v7  ;;  %v3064_v53 = vld [vmem:[%s2926_s16 + $0x2c] sm:$0x3]  ;;  %v502_v54 = vrot.slane %v3061_v52, %v2928_v7  ;;  %v3073_v56 = vld [vmem:[%s2926_s16 + $0x32] sm:$0x3] }
  0x1a   : > { %v495_v55 = vrot.slane %v3064_v53, %v2928_v7  ;;  %v3076_v57 = vld [vmem:[%s2926_s16 + $0x30] sm:$0x3]  ;;  %v516_v58 = vrot.slane %v3073_v56, %v2928_v7  ;;  %v3085_v60 = vld [vmem:[%s2926_s16 + $0x36] sm:$0x3]  ;;  %v3088_v61 = vld [vmem:[%s2926_s16 + $0x34] sm:$0x3] }
  0x1b   : > { %v509_v59 = vrot.slane %v3076_v57, %v2928_v7  ;;  %v530_v62 = vrot.slane %v3085_v60, %v2928_v7  ;;  %v523_v63 = vrot.slane %v3088_v61, %v2928_v7  ;;  %v3097_v0 = vld [vmem:[%s2926_s16 + $0x3a] sm:$0x3]  ;;  %v3100_v1 = vld [vmem:[%s2926_s16 + $0x38] sm:$0x3]  ;;  %v3109_v4 = vld [vmem:[%s2926_s16 + $0x3e] sm:$0x3] }
  0x1c   : > { %v544_v2 = vrot.slane %v3097_v0, %v2928_v7  ;;  %v537_v3 = vrot.slane %v3100_v1, %v2928_v7  ;;  %v3112_v5 = vld [vmem:[%s2926_s16 + $0x3c] sm:$0x3]  ;;  %v558_v11 = vrot.slane %v3109_v4, %v2928_v7  ;;  %v207_v14 = vld [vmem:[%s3127_s20] sm:$0x3]  ;;  %v209_v15 = vld [vmem:[%s3127_s20 + $0x4] sm:$0x3] }
  0x1d   : > { %569 = vrot.lane.b32.xlu1 %v376_v18, %s2878_s17  ;;  %567 = vrot.lane.b32.xlu0 %v369_v19, %s2878_s17  ;;  %v551_v12 = vrot.slane %v3112_v5, %v2928_v7  ;;  %v3131_v19 = vunpack.c.l.bf16 %v207_v14 }
  0x1f   : > { %4413 = vst [vmem:[#allocation3_spill] sm:$0xff] %v3131_v19 }
  0x21   : > { %573 = vrot.lane.b32.xlu1 %v390_v22, %s2878_s17  ;;  %571 = vrot.lane.b32.xlu0 %v383_v23, %s2878_s17  ;;  %v3133_v22 = vunpack.c.l.bf16 %v209_v15 }
  0x25   : > { %577 = vrot.lane.b32.xlu1 %v404_v26, %s2878_s17  ;;  %575 = vrot.lane.b32.xlu0 %v397_v27, %s2878_s17  ;;  %v208_v27 = vld [vmem:[%s3127_s20 + $0x2] sm:$0x3] }
  0x29   : > { %581 = vrot.lane.b32.xlu1 %v418_v30, %s2878_s17  ;;  %579 = vrot.lane.b32.xlu0 %v411_v31, %s2878_s17  ;;  %v210_v30 = vld [vmem:[%s3127_s20 + $0x6] sm:$0x3] }
  0x2d   : > { %585 = vrot.lane.b32.xlu1 %v432_v34, %s2878_s17  ;;  %583 = vrot.lane.b32.xlu0 %v425_v35, %s2878_s17 }
  0x31   : > { %589 = vrot.lane.b32.xlu1 %v446_v38, %s2878_s17  ;;  %587 = vrot.lane.b32.xlu0 %v439_v39, %s2878_s17 }
  0x35   : > { %593 = vrot.lane.b32.xlu1 %v460_v42, %s2878_s17  ;;  %591 = vrot.lane.b32.xlu0 %v453_v43, %s2878_s17  ;;  %v3144_v42 = vunpack.c.l.bf16 %v208_v27 }
  0x37   : > { %4415 = vst [vmem:[#allocation5_spill] sm:$0xff] %v3144_v42 }
  0x39   : > { %597 = vrot.lane.b32.xlu1 %v474_v46, %s2878_s17  ;;  %595 = vrot.lane.b32.xlu0 %v467_v47, %s2878_s17  ;;  %v211_v46 = vld [vmem:[%s3127_s20 + $0x8] sm:$0x3] }
  0x3d   : > { %601 = vrot.lane.b32.xlu1 %v488_v50, %s2878_s17  ;;  %599 = vrot.lane.b32.xlu0 %v481_v51, %s2878_s17 }
  0x41   : > { %605 = vrot.lane.b32.xlu1 %v502_v54, %s2878_s17  ;;  %603 = vrot.lane.b32.xlu0 %v495_v55, %s2878_s17 }
  0x45   : > { %609 = vrot.lane.b32.xlu1 %v516_v58, %s2878_s17  ;;  %607 = vrot.lane.b32.xlu0 %v509_v59, %s2878_s17  ;;  %v3160_v59 = vunpack.c.l.bf16 %v211_v46 }
  0x49   : > { %613 = vrot.lane.b32.xlu1 %v530_v62, %s2878_s17  ;;  %611 = vrot.lane.b32.xlu0 %v523_v63, %s2878_s17 }
  0x4d   : > { %617 = vrot.lane.b32.xlu1 %v544_v2, %s2878_s17  ;;  %615 = vrot.lane.b32.xlu0 %v537_v3, %s2878_s17 }
  0x51   : > { %621 = vrot.lane.b32.xlu1 %v558_v11, %s2878_s17  ;;  %619 = vrot.lane.b32.xlu0 %v551_v12, %s2878_s17  ;;  %v214_v11 = vld [vmem:[%s3127_s20 + $0xe] sm:$0x3] }
  0x87   : > { %v564_v18 = vpop.permute.xlu1 %563  ;;  %v560_v7 = vpop.permute.xlu0 %559 }
  0x88   : > { %v634_v23 = vsel %vm202_vm0, %v2931_v8, %v564_v18  ;;  %v626_v26 = vsel %vm202_vm0, %v2934_v9, %v560_v7  ;;  %v3149_v8 = vunpack.c.l.bf16 %v210_v30  ;;  %v212_v9 = vld [vmem:[%s3127_s20 + $0xa] sm:$0x3] }
  0x89   : > { %v3141_v31 = vunpack.c.l.bf16 %v634_v23  ;;  %v752_v34 = vunpack.c.l.bf16 %v626_v26  ;;  %v3162_v62 = vunpack.c.l.bf16 %v212_v9 }
  0x8b   : > { %4414 = vst [vmem:[#allocation4_spill] sm:$0xff] %v3141_v31  ;;  %v566_v35 = vpop.permute.xlu1 %565  ;;  %v562_v38 = vpop.permute.xlu0 %561  ;;  %v784_v39 = vmul.f32 %v752_v34, %v3131_v19  ;;  %v786_v43 = vmul.f32 %v3141_v31, %v3133_v22 }
  0x8c   : > { %v638_v47 = vsel %vm202_vm0, %v2937_v10, %v566_v35  ;;  %v630_v50 = vsel %vm202_vm0, %v2944_v13, %v562_v38  ;;  %v213_v13 = vld [vmem:[%s3127_s20 + $0xc] sm:$0x3] }
  0x8d   : > { %v3156_v51 = vunpack.c.l.bf16 %v638_v47  ;;  %v753_v54 = vunpack.c.l.bf16 %v630_v50  ;;  %v817_v55 = vsel %vm816_vm1, %v784_v39, 0.0  ;;  %v823_v58 = vsel %vm816_vm1, %v786_v43, 0.0  ;;  %v215_v39 = vld [vmem:[%s3127_s20 + $0x10] sm:$0x3]  ;;  %v216_v43 = vld [vmem:[%s3127_s20 + $0x12] sm:$0x3] }
  0x8e   : > { %818 = vadd.xlane.f32.xlu0 %v817_v55  ;;  %v3185_v30 = vunpack.c.l.bf16 %v213_v13  ;;  %v217_v13 = vld [vmem:[%s3127_s20 + $0x14] sm:$0x3] }
  0x8f   : > { %4416 = vst [vmem:[#allocation6_spill] sm:$0xff] %v3156_v51  ;;  %v570_v63 = vpop.permute.xlu1 %569  ;;  %v568_v2 = vpop.permute.xlu0 %567  ;;  %v785_v3 = vmul.f32 %v753_v54, %v3144_v42  ;;  %v787_v10 = vmul.f32 %v3156_v51, %v3149_v8  ;;  %v3169_v12 = vpack.i.bf16 %v753_v54, %v752_v34  ;;  %v3173_v14 = vpack.i.bf16 %v3156_v51, %v3141_v31 }
  0x90   : > { %v646_v15 = vsel %vm202_vm0, %v2953_v16, %v570_v63  ;;  %v642_v18 = vsel %vm202_vm0, %v2956_v17, %v568_v2  ;;  %v3187_v34 = vunpack.c.l.bf16 %v214_v11  ;;  %v3209_v63 = vunpack.c.l.bf16 %v215_v39  ;;  %v218_v11 = vld [vmem:[%s3127_s20 + $0x16] sm:$0x3] }
  0x91   : > { %4417 = vst [vmem:[#allocation7_spill] sm:$0xff] %v3169_v12  ;;  %4418 = vst [vmem:[#allocation8_spill] sm:$0xff] %v3173_v14  ;;  %v3179_v7 = vunpack.c.l.bf16 %v646_v15  ;;  %v3181_v23 = vunpack.c.l.bf16 %v642_v18  ;;  %v820_v26 = vsel %vm816_vm1, %v785_v3, 0.0  ;;  %v826_v27 = vsel %vm816_vm1, %v787_v10, 0.0 }
  0x92   : > { %821 = vadd.xlane.f32.xlu1 %v820_v26  ;;  %824 = vadd.xlane.f32.xlu0 %v823_v58  ;;  %v3211_v2 = vunpack.c.l.bf16 %v216_v43  ;;  %v3231_v39 = vunpack.c.l.bf16 %v218_v11 }
  0x93   : > { %4419 = vst [vmem:[#allocation9_spill] sm:$0xff] %v3179_v7  ;;  %4420 = vst [vmem:[#allocation10_spill] sm:$0xff] %v3181_v23  ;;  %v574_v35 = vpop.permute.xlu1 %573  ;;  %v572_v38 = vpop.permute.xlu0 %571  ;;  %v788_v16 = vmul.f32 %v3181_v23, %v3160_v59  ;;  %v789_v17 = vmul.f32 %v3179_v7, %v3162_v62  ;;  %v3197_v46 = vpack.i.bf16 %v3179_v7, %v3181_v23 }
  0x94   : > { %v654_v9 = vsel %vm202_vm0, %v2965_v20, %v574_v35  ;;  %v650_v47 = vsel %vm202_vm0, %v2968_v21, %v572_v38 }
  0x95   : > { %4421 = vst [vmem:[#allocation11_spill] sm:$0xff] %v3197_v46  ;;  %v3203_v50 = vunpack.c.l.bf16 %v654_v9  ;;  %v3205_v54 = vunpack.c.l.bf16 %v650_v47  ;;  %v829_v55 = vsel %vm816_vm1, %v788_v16, 0.0  ;;  %v832_v58 = vsel %vm816_vm1, %v789_v17, 0.0 }
  0x96   : > { %830 = vadd.xlane.f32.xlu1 %v829_v55  ;;  %827 = vadd.xlane.f32.xlu0 %v826_v27  ;;  %v3229_v17 = vunpack.c.l.bf16 %v217_v13  ;;  %v219_v55 = vld [vmem:[%s3127_s20 + $0x18] sm:$0x3] }
  0x97   : > { %4422 = vst [vmem:[#allocation12_spill] sm:$0xff] %v3203_v50  ;;  %4423 = vst [vmem:[#allocation13_spill] sm:$0xff] %v3205_v54  ;;  %v578_v3 = vpop.permute.xlu1 %577  ;;  %v576_v10 = vpop.permute.xlu0 %575  ;;  %v790_v20 = vmul.f32 %v3205_v54, %v3185_v30  ;;  %v791_v21 = vmul.f32 %v3203_v50, %v3187_v34  ;;  %v3221_v15 = vpack.i.bf16 %v3203_v50, %v3205_v54 }
  0x98   : > { %v662_v18 = vsel %vm202_vm0, %v2977_v24, %v578_v3  ;;  %v658_v26 = vsel %vm202_vm0, %v2980_v25, %v576_v10  ;;  %v220_v25 = vld [vmem:[%s3127_s20 + $0x1a] sm:$0x3] }
  0x99   : > { %4424 = vst [vmem:[#allocation14_spill] sm:$0xff] %v3221_v15  ;;  %v761_v27 = vunpack.c.l.bf16 %v662_v18  ;;  %v760_v35 = vunpack.c.l.bf16 %v658_v26  ;;  %v835_v38 = vsel %vm816_vm1, %v790_v20, 0.0  ;;  %v838_v16 = vsel %vm816_vm1, %v791_v21, 0.0 }
  0x9a   : > { %836 = vadd.xlane.f32.xlu1 %v835_v38  ;;  %833 = vadd.xlane.f32.xlu0 %v832_v58  ;;  %v3249_v18 = vunpack.c.l.bf16 %v219_v55  ;;  %v3251_v26 = vunpack.c.l.bf16 %v220_v25  ;;  %v221_v38 = vld [vmem:[%s3127_s20 + $0x1c] sm:$0x3] }
  0x9b   : > { %v582_v43 = vpop.permute.xlu1 %581  ;;  %v580_v9 = vpop.permute.xlu0 %579  ;;  %v792_v47 = vmul.f32 %v760_v35, %v3209_v63  ;;  %v793_v24 = vmul.f32 %v761_v27, %v3211_v2  ;;  %v3237_v3 = vpack.i.bf16 %v761_v27, %v760_v35 }
  0x9c   : > { %v670_v58 = vsel %vm202_vm0, %v2989_v28, %v582_v43  ;;  %v666_v10 = vsel %vm202_vm0, %v2992_v29, %v580_v9  ;;  %v222_v43 = vld [vmem:[%s3127_s20 + $0x1e] sm:$0x3] }
  0x9d   : > { %4425 = vst [vmem:[#allocation15_spill] sm:$0xff] %v3237_v3  ;;  %v3243_v20 = vunpack.c.l.bf16 %v670_v58  ;;  %v3245_v21 = vunpack.c.l.bf16 %v666_v10  ;;  %v841_v13 = vsel %vm816_vm1, %v792_v47, 0.0  ;;  %v844_v11 = vsel %vm816_vm1, %v793_v24, 0.0 }
  0x9e   : > { %842 = vadd.xlane.f32.xlu1 %v841_v13  ;;  %839 = vadd.xlane.f32.xlu0 %v838_v16  ;;  %v3275_v13 = vunpack.c.l.bf16 %v221_v38 }
  0x9f   : > { %4426 = vst [vmem:[#allocation16_spill] sm:$0xff] %v3243_v20  ;;  %4427 = vst [vmem:[#allocation17_spill] sm:$0xff] %v3245_v21  ;;  %v586_v27 = vpop.permute.xlu1 %585  ;;  %v584_v35 = vpop.permute.xlu0 %583  ;;  %v794_v28 = vmul.f32 %v3245_v21, %v3229_v17  ;;  %v795_v29 = vmul.f32 %v3243_v20, %v3231_v39  ;;  %v3261_v9 = vpack.i.bf16 %v3243_v20, %v3245_v21 }
  0xa0   : > { %v678_v16 = vsel %vm202_vm0, %v3001_v32, %v586_v27  ;;  %v674_v47 = vsel %vm202_vm0, %v3004_v33, %v584_v35  ;;  %v3277_v32 = vunpack.c.l.bf16 %v222_v43  ;;  %v224_v43 = vld [vmem:[%s3127_s20 + $0x22] sm:$0x3] }
  0xa1   : > { %4428 = vst [vmem:[#allocation18_spill] sm:$0xff] %v3261_v9  ;;  %v3269_v55 = vunpack.c.l.bf16 %v678_v16  ;;  %v3271_v25 = vunpack.c.l.bf16 %v674_v47  ;;  %v847_v58 = vsel %vm816_vm1, %v794_v28, 0.0  ;;  %v850_v10 = vsel %vm816_vm1, %v795_v29, 0.0  ;;  %v223_v28 = vld [vmem:[%s3127_s20 + $0x20] sm:$0x3] }
  0xa2   : > { %848 = vadd.xlane.f32.xlu1 %v847_v58  ;;  %845 = vadd.xlane.f32.xlu0 %v844_v11  ;;  %4431 = vst [vmem:[#allocation21_spill] sm:$0xff] %v3277_v32  ;;  %v3302_v20 = vunpack.c.l.bf16 %v223_v28  ;;  %v3312_v23 = vunpack.c.l.bf16 %v224_v43 }
  0xa3   : > { %4429 = vst [vmem:[#allocation19_spill] sm:$0xff] %v3269_v55  ;;  %4430 = vst [vmem:[#allocation20_spill] sm:$0xff] %v3271_v25  ;;  %v590_v27 = vpop.permute.xlu1 %589  ;;  %v588_v35 = vpop.permute.xlu0 %587  ;;  %v796_v16 = vmul.f32 %v3271_v25, %v3249_v18  ;;  %v797_v47 = vmul.f32 %v3269_v55, %v3251_v26  ;;  %v3288_v11 = vpack.i.bf16 %v3269_v55, %v3271_v25 }
  0xa4   : > { %v686_v29 = vsel %vm202_vm0, %v3013_v36, %v590_v27  ;;  %v682_v38 = vsel %vm202_vm0, %v3016_v37, %v588_v35  ;;  %4435 = vst [vmem:[#allocation25_spill] sm:$0xff] %v3312_v23 }
  0xa5   : > { %4432 = vst [vmem:[#allocation22_spill] sm:$0xff] %v3288_v11  ;;  %v3297_v33 = vunpack.c.l.bf16 %v686_v29  ;;  %v3299_v24 = vunpack.c.l.bf16 %v682_v38  ;;  %v853_v51 = vsel %vm816_vm1, %v796_v16, 0.0  ;;  %v856_v58 = vsel %vm816_vm1, %v797_v47, 0.0  ;;  %v225_v38 = vld [vmem:[%s3127_s20 + $0x24] sm:$0x3] }
  0xa6   : > { %854 = vadd.xlane.f32.xlu1 %v853_v51  ;;  %851 = vadd.xlane.f32.xlu0 %v850_v10  ;;  %v226_v51 = vld [vmem:[%s3127_s20 + $0x26] sm:$0x3]  ;;  %v228_v47 = vld [vmem:[%s3127_s20 + $0x2a] sm:$0x3] }
  0xa7   : > { %4433 = vst [vmem:[#allocation23_spill] sm:$0xff] %v3297_v33  ;;  %4434 = vst [vmem:[#allocation24_spill] sm:$0xff] %v3299_v24  ;;  %v594_v27 = vpop.permute.xlu1 %593  ;;  %v592_v37 = vpop.permute.xlu0 %591  ;;  %v798_v35 = vmul.f32 %v3299_v24, %v3275_v13  ;;  %v799_v29 = vmul.f32 %v3297_v33, %v3277_v32  ;;  %v3321_v28 = vpack.i.bf16 %v3297_v33, %v3299_v24  ;;  %v3350_v50 = vunpack.c.l.bf16 %v228_v47 }
  0xa8   : > { %v694_v10 = vsel %vm202_vm0, %v3025_v40, %v594_v27  ;;  %v690_v16 = vsel %vm202_vm0, %v3028_v41, %v592_v37  ;;  %v3327_v27 = vunpack.c.l.bf16 %v225_v38  ;;  %v3329_v41 = vunpack.c.l.bf16 %v226_v51 }
  0xa9   : > { %4436 = vst [vmem:[#allocation26_spill] sm:$0xff] %v3321_v28  ;;  %v769_v36 = vunpack.c.l.bf16 %v694_v10  ;;  %v768_v7 = vunpack.c.l.bf16 %v690_v16  ;;  %v859_v43 = vsel %vm816_vm1, %v798_v35, 0.0  ;;  %v862_v40 = vsel %vm816_vm1, %v799_v29, 0.0  ;;  %v227_v16 = vld [vmem:[%s3127_s20 + $0x28] sm:$0x3]  ;;  %4442 = vst [vmem:[#allocation32_spill] sm:$0xff] %v3350_v50 }
  0xaa   : > { %860 = vadd.xlane.f32.xlu1 %v859_v43  ;;  %857 = vadd.xlane.f32.xlu0 %v856_v58  ;;  %4437 = vst [vmem:[#allocation27_spill] sm:$0xff] %v3329_v41  ;;  %v3348_v37 = vunpack.c.l.bf16 %v227_v16 }
  0xab   : > { %v598_v55 = vpop.permute.xlu1 %597  ;;  %v596_v25 = vpop.permute.xlu0 %595  ;;  %v800_v31 = vmul.f32 %v768_v7, %v3302_v20  ;;  %v801_v10 = vmul.f32 %v769_v36, %v3312_v23  ;;  %v3337_v35 = vpack.i.bf16 %v769_v36, %v768_v7 }
  0xac   : > { %v702_v58 = vsel %vm202_vm0, %v3037_v44, %v598_v55  ;;  %v698_v29 = vsel %vm202_vm0, %v3040_v45, %v596_v25  ;;  %4441 = vst [vmem:[#allocation31_spill] sm:$0xff] %v3348_v37  ;;  %v229_v25 = vld [vmem:[%s3127_s20 + $0x2c] sm:$0x3] }
  0xad   : > { %4438 = vst [vmem:[#allocation28_spill] sm:$0xff] %v3337_v35  ;;  %v3343_v38 = vunpack.c.l.bf16 %v702_v58  ;;  %v3345_v51 = vunpack.c.l.bf16 %v698_v29  ;;  %v865_v43 = vsel %vm816_vm1, %v800_v31, 0.0  ;;  %v868_v55 = vsel %vm816_vm1, %v801_v10, 0.0  ;;  %v230_v58 = vld [vmem:[%s3127_s20 + $0x2e] sm:$0x3] }
  0xae   : > { %866 = vadd.xlane.f32.xlu1 %v865_v43  ;;  %863 = vadd.xlane.f32.xlu0 %v862_v40  ;;  %v3372_v43 = vunpack.c.l.bf16 %v229_v25  ;;  %v3374_v33 = vunpack.c.l.bf16 %v230_v58 }
  0xaf   : > { %4439 = vst [vmem:[#allocation29_spill] sm:$0xff] %v3343_v38  ;;  %4440 = vst [vmem:[#allocation30_spill] sm:$0xff] %v3345_v51  ;;  %v602_v7 = vpop.permute.xlu1 %601  ;;  %v600_v36 = vpop.permute.xlu0 %599  ;;  %v802_v44 = vmul.f32 %v3345_v51, %v3327_v27  ;;  %v803_v45 = vmul.f32 %v3343_v38, %v3329_v41  ;;  %v3361_v31 = vpack.i.bf16 %v3343_v38, %v3345_v51 }
  0xb0   : > { %v710_v47 = vsel %vm202_vm0, %v3049_v48, %v602_v7  ;;  %v706_v40 = vsel %vm202_vm0, %v3052_v49, %v600_v36  ;;  %4446 = vst [vmem:[#allocation36_spill] sm:$0xff] %v3372_v43  ;;  %4447 = vst [vmem:[#allocation37_spill] sm:$0xff] %v3374_v33  ;;  %v231_v36 = vld [vmem:[%s3127_s20 + $0x30] sm:$0x3] }
  0xb1   : > { %4443 = vst [vmem:[#allocation33_spill] sm:$0xff] %v3361_v31  ;;  %v3367_v16 = vunpack.c.l.bf16 %v710_v47  ;;  %v3369_v10 = vunpack.c.l.bf16 %v706_v40  ;;  %v871_v29 = vsel %vm816_vm1, %v802_v44, 0.0  ;;  %v874_v7 = vsel %vm816_vm1, %v803_v45, 0.0  ;;  %v232_v47 = vld [vmem:[%s3127_s20 + $0x32] sm:$0x3] }
  0xb2   : > { %872 = vadd.xlane.f32.xlu1 %v871_v29  ;;  %869 = vadd.xlane.f32.xlu0 %v868_v55  ;;  %v3396_v29 = vunpack.c.l.bf16 %v231_v36  ;;  %v3398_v21 = vunpack.c.l.bf16 %v232_v47 }
  0xb3   : > { %4444 = vst [vmem:[#allocation34_spill] sm:$0xff] %v3367_v16  ;;  %4445 = vst [vmem:[#allocation35_spill] sm:$0xff] %v3369_v10  ;;  %v606_v54 = vpop.permute.xlu1 %605  ;;  %v604_v24 = vpop.permute.xlu0 %603  ;;  %v804_v48 = vmul.f32 %v3369_v10, %v3348_v37  ;;  %v805_v49 = vmul.f32 %v3367_v16, %v3350_v50  ;;  %v3385_v44 = vpack.i.bf16 %v3367_v16, %v3369_v10 }
  0xb4   : > { %v718_v55 = vsel %vm202_vm0, %v3061_v52, %v606_v54  ;;  %v714_v25 = vsel %vm202_vm0, %v3064_v53, %v604_v24  ;;  %4451 = vst [vmem:[#allocation41_spill] sm:$0xff] %v3396_v29  ;;  %4452 = vst [vmem:[#allocation42_spill] sm:$0xff] %v3398_v21  ;;  %v233_v24 = vld [vmem:[%s3127_s20 + $0x34] sm:$0x3] }
  0xb5   : > { %4448 = vst [vmem:[#allocation38_spill] sm:$0xff] %v3385_v44  ;;  %v3391_v58 = vunpack.c.l.bf16 %v718_v55  ;;  %v3393_v45 = vunpack.c.l.bf16 %v714_v25  ;;  %v877_v40 = vsel %vm816_vm1, %v804_v48, 0.0  ;;  %v880_v54 = vsel %vm816_vm1, %v805_v49, 0.0  ;;  %v234_v55 = vld [vmem:[%s3127_s20 + $0x36] sm:$0x3] }
  0xb6   : > { %878 = vadd.xlane.f32.xlu1 %v877_v40  ;;  %875 = vadd.xlane.f32.xlu0 %v874_v7  ;;  %v3416_v40 = vunpack.c.l.bf16 %v233_v24 }
  0xb7   : > { %4449 = vst [vmem:[#allocation39_spill] sm:$0xff] %v3391_v58  ;;  %4450 = vst [vmem:[#allocation40_spill] sm:$0xff] %v3393_v45  ;;  %v610_v50 = vpop.permute.xlu1 %609  ;;  %v608_v41 = vpop.permute.xlu0 %607  ;;  %v806_v52 = vmul.f32 %v3393_v45, %v3372_v43  ;;  %v807_v53 = vmul.f32 %v3391_v58, %v3374_v33  ;;  %v3409_v48 = vpack.i.bf16 %v3391_v58, %v3393_v45  ;;  %v3418_v33 = vunpack.c.l.bf16 %v234_v55 }
  0xb8   : > { %v726_v7 = vsel %vm202_vm0, %v3073_v56, %v610_v50  ;;  %v722_v36 = vsel %vm202_vm0, %v3076_v57, %v608_v41  ;;  %4454 = vst [vmem:[#allocation44_spill] sm:$0xff] %v3416_v40  ;;  %v235_v50 = vld [vmem:[%s3127_s20 + $0x38] sm:$0x3]  ;;  %v236_v57 = vld [vmem:[%s3127_s20 + $0x3a] sm:$0x3] }
  0xb9   : > { %4453 = vst [vmem:[#allocation43_spill] sm:$0xff] %v3409_v48  ;;  %v777_v47 = vunpack.c.l.bf16 %v726_v7  ;;  %v776_v25 = vunpack.c.l.bf16 %v722_v36  ;;  %v883_v49 = vsel %vm816_vm1, %v806_v52, 0.0  ;;  %4455 = vst [vmem:[#allocation45_spill] sm:$0xff] %v3418_v33  ;;  %v886_v32 = vsel %vm816_vm1, %v807_v53, 0.0 }
  0xba   : > { %884 = vadd.xlane.f32.xlu1 %v883_v49  ;;  %881 = vadd.xlane.f32.xlu0 %v880_v54  ;;  %v3436_v7 = vunpack.c.l.bf16 %v235_v50  ;;  %v3438_v36 = vunpack.c.l.bf16 %v236_v57  ;;  %v238_v49 = vld [vmem:[%s3127_s20 + $0x3e] sm:$0x3] }
  0xbb   : > { %v614_v43 = vpop.permute.xlu1 %613  ;;  %v612_v37 = vpop.permute.xlu0 %611  ;;  %v808_v23 = vmul.f32 %v776_v25, %v3396_v29  ;;  %v809_v56 = vmul.f32 %v777_v47, %v3398_v21  ;;  %v3425_v41 = vpack.i.bf16 %v777_v47, %v776_v25 }
  0xbc   : > { %v734_v52 = vsel %vm202_vm0, %v3085_v60, %v614_v43  ;;  %v730_v54 = vsel %vm202_vm0, %v3088_v61, %v612_v37  ;;  %4459 = vst [vmem:[#allocation49_spill] sm:$0xff] %v3436_v7  ;;  %4460 = vst [vmem:[#allocation50_spill] sm:$0xff] %v3438_v36  ;;  %v237_v37 = vld [vmem:[%s3127_s20 + $0x3c] sm:$0x3] }
  0xbd   : > { %4456 = vst [vmem:[#allocation46_spill] sm:$0xff] %v3425_v41  ;;  %v3431_v24 = vunpack.c.l.bf16 %v734_v52  ;;  %v3433_v55 = vunpack.c.l.bf16 %v730_v54  ;;  %v889_v53 = vsel %vm816_vm1, %v808_v23, 0.0  ;;  %v892_v43 = vsel %vm816_vm1, %v809_v56, 0.0 }
  0xbe   : > { %890 = vadd.xlane.f32.xlu1 %v889_v53  ;;  %887 = vadd.xlane.f32.xlu0 %v886_v32 }
  0xbf   : > { %4457 = vst [vmem:[#allocation47_spill] sm:$0xff] %v3431_v24  ;;  %4458 = vst [vmem:[#allocation48_spill] sm:$0xff] %v3433_v55  ;;  %v618_v47 = vpop.permute.xlu1 %617  ;;  %v616_v25 = vpop.permute.xlu0 %615  ;;  %v810_v60 = vmul.f32 %v3433_v55, %v3416_v40  ;;  %v811_v61 = vmul.f32 %v3431_v24, %v3418_v33  ;;  %v3449_v23 = vpack.i.bf16 %v3431_v24, %v3433_v55  ;;  %v3464_v33 = vunpack.c.l.bf16 %v237_v37 }
  0xc0   : > { %v742_v32 = vsel %vm202_vm0, %v3097_v0, %v618_v47  ;;  %v738_v50 = vsel %vm202_vm0, %v3100_v1, %v616_v25  ;;  %v3466_v0 = vunpack.c.l.bf16 %v238_v49 }
  0xc1   : > { %4461 = vst [vmem:[#allocation51_spill] sm:$0xff] %v3449_v23  ;;  %v3459_v52 = vunpack.c.l.bf16 %v742_v32  ;;  %v3461_v54 = vunpack.c.l.bf16 %v738_v50  ;;  %v895_v53 = vsel %vm816_vm1, %v810_v60, 0.0  ;;  %4464 = vst [vmem:[#allocation54_spill] sm:$0xff] %v3464_v33  ;;  %v898_v57 = vsel %vm816_vm1, %v811_v61, 0.0 }
  0xc2   : > { %896 = vadd.xlane.f32.xlu1 %v895_v53  ;;  %893 = vadd.xlane.f32.xlu0 %v892_v43  ;;  %4465 = vst [vmem:[#allocation55_spill] sm:$0xff] %v3466_v0 }
  0xc3   : > { %4462 = vst [vmem:[#allocation52_spill] sm:$0xff] %v3459_v52  ;;  %4463 = vst [vmem:[#allocation53_spill] sm:$0xff] %v3461_v54  ;;  %v622_v47 = vpop.permute.xlu1 %621  ;;  %v620_v1 = vpop.permute.xlu0 %619  ;;  %v812_v25 = vmul.f32 %v3461_v54, %v3436_v7  ;;  %v813_v32 = vmul.f32 %v3459_v52, %v3438_v36  ;;  %v3475_v50 = vpack.i.bf16 %v3459_v52, %v3461_v54 }
  0xc4   : > { %v750_v60 = vsel %vm202_vm0, %v3109_v4, %v622_v47  ;;  %v746_v43 = vsel %vm202_vm0, %v3112_v5, %v620_v1 }
  0xc5   : > { %4466 = vst [vmem:[#allocation56_spill] sm:$0xff] %v3475_v50  ;;  %v3485_v61 = vunpack.c.l.bf16 %v750_v60  ;;  %v3487_v53 = vunpack.c.l.bf16 %v746_v43  ;;  %v901_v56 = vsel %vm816_vm1, %v812_v25, 0.0  ;;  %v904_v47 = vsel %vm816_vm1, %v813_v32, 0.0 }
  0xc6   : > { %902 = vadd.xlane.f32.xlu1 %v901_v56  ;;  %899 = vadd.xlane.f32.xlu0 %v898_v57 }
  0xc7   : > { %4467 = vst [vmem:[#allocation57_spill] sm:$0xff] %v3485_v61  ;;  %4468 = vst [vmem:[#allocation58_spill] sm:$0xff] %v3487_v53  ;;  %v814_v4 = vmul.f32 %v3487_v53, %v3464_v33  ;;  %v815_v5 = vmul.f32 %v3485_v61, %v3466_v0  ;;  %v3497_v1 = vpack.i.bf16 %v3485_v61, %v3487_v53 }
  0xc9   : > { %4469 = vst [vmem:[#allocation59_spill] sm:$0xff] %v3497_v1  ;;  %v907_v57 = vsel %vm816_vm1, %v814_v4, 0.0  ;;  %v910_v56 = vsel %vm816_vm1, %v815_v5, 0.0 }
  0xca   : > { %908 = vadd.xlane.f32.xlu1 %v907_v57  ;;  %905 = vadd.xlane.f32.xlu0 %v904_v47 }
  0xce   : > { %911 = vadd.xlane.f32.xlu0 %v910_v56 }
  0xdb   : > { %2614 = vrot.lane.b32.xlu1 %v3169_v12, %s2879_s21 }
  0xdf   : > { %2624 = vrot.lane.b32.xlu1 %v3197_v46, %s2879_s21 }
  0xe3   : > { %2629 = vrot.lane.b32.xlu1 %v3221_v15, %s2879_s21 }
  0xe4   : > { %2619 = vrot.lane.b32.xlu0 %v3173_v14, %s2879_s21 }
  0xe7   : > { %2639 = vrot.lane.b32.xlu1 %v3261_v9, %s2879_s21 }
  0xe8   : > { %2634 = vrot.lane.b32.xlu0 %v3237_v3, %s2879_s21 }
  0xeb   : > { %2649 = vrot.lane.b32.xlu1 %v3321_v28, %s2879_s21 }
  0xec   : > { %2644 = vrot.lane.b32.xlu0 %v3288_v11, %s2879_s21 }
  0xef   : > { %2659 = vrot.lane.b32.xlu1 %v3361_v31, %s2879_s21 }
  0xf0   : > { %2654 = vrot.lane.b32.xlu0 %v3337_v35, %s2879_s21 }
  0xf3   : > { %2669 = vrot.lane.b32.xlu1 %v3409_v48, %s2879_s21 }
  0xf4   : > { %2664 = vrot.lane.b32.xlu0 %v3385_v44, %s2879_s21 }
  0xf7   : > { %2679 = vrot.lane.b32.xlu1 %v3449_v23, %s2879_s21 }
  0xf8   : > { %2674 = vrot.lane.b32.xlu0 %v3425_v41, %s2879_s21 }
  0xfb   : > { %2689 = vrot.lane.b32.xlu1 %v3497_v1, %s2879_s21 }
  0xfc   : > { %2684 = vrot.lane.b32.xlu0 %v3475_v50, %s2879_s21 }
 0x117   : > { %v3521_v32 = vpop.xlane.xlu0 %818 }
 0x11b   : > { %v3523_v43 = vpop.xlane.xlu1 %821  ;;  %v3525_v4 = vpop.xlane.xlu0 %824 }
 0x11f   : > { %v3527_v47 = vpop.xlane.xlu1 %830  ;;  %v3529_v5 = vpop.xlane.xlu0 %827 }
 0x123   : > { %v3531_v57 = vpop.xlane.xlu1 %836  ;;  %v3533_v56 = vpop.xlane.xlu0 %833 }
 0x127   : > { %v3535_v25 = vpop.xlane.xlu1 %842  ;;  %v3537_v60 = vpop.xlane.xlu0 %839 }
 0x12b   : > { %v3539_v49 = vpop.xlane.xlu1 %848  ;;  %v3541_v37 = vpop.xlane.xlu0 %845 }
 0x12f   : > { %v3543_v58 = vpop.xlane.xlu1 %854  ;;  %v3545_v61 = vpop.xlane.xlu0 %851 }
 0x133   : > { %v3547_v45 = vpop.xlane.xlu1 %860  ;;  %v3549_v53 = vpop.xlane.xlu0 %857 }
 0x137   : > { %v3551_v16 = vpop.xlane.xlu1 %866  ;;  %v3553_v52 = vpop.xlane.xlu0 %863 }
 0x13b   : > { %v3555_v10 = vpop.xlane.xlu1 %872  ;;  %v3557_v54 = vpop.xlane.xlu0 %869 }
 0x13f   : > { %v3559_v38 = vpop.xlane.xlu1 %878  ;;  %v3561_v24 = vpop.xlane.xlu0 %875 }
 0x143   : > { %v3563_v51 = vpop.xlane.xlu1 %884  ;;  %v3565_v55 = vpop.xlane.xlu0 %881 }
 0x147   : > { %v3567_v50 = vpop.xlane.xlu1 %890  ;;  %v3569_v41 = vpop.xlane.xlu0 %887 }
 0x14b   : > { %v3571_v1 = vpop.xlane.xlu1 %896  ;;  %v3573_v44 = vpop.xlane.xlu0 %893 }
 0x14f   : > { %v3575_v23 = vpop.xlane.xlu1 %902  ;;  %v3577_v35 = vpop.xlane.xlu0 %899 }
 0x153   : > { %v3579_v48 = vpop.xlane.xlu1 %908  ;;  %v3581_v11 = vpop.xlane.xlu0 %905 }
 0x154   : > { %4470 = vst [vmem:[#allocation60_spill] sm:$0xff] %v3579_v48 }
 0x157   : > { %v2615_v31 = vpop.permute.xlu1 %2614  ;;  %v3583_v3 = vpop.xlane.xlu0 %911 }
 0x158   : > { %4471 = vst [vmem:[#allocation61_spill] sm:$0xff] %v3583_v3  ;;  %v2617_v28 = vunpack.i.h.bf16 %v2615_v31  ;;  %v2616_v14 = vunpack.i.l.bf16 %v2615_v31 }
 0x15a   : > { %v1255_v9 = vmul.f32 %v2617_v28, %v3144_v42  ;;  %v1254_v15 = vmul.f32 %v2616_v14, %v3131_v19 }
 0x15b   : > { %v2625_v46 = vpop.permute.xlu1 %2624  ;;  %v2620_v12 = vpop.permute.xlu0 %2619 }
 0x15c   : > { %v2626_v0 = vunpack.i.l.bf16 %v2625_v46  ;;  %v2621_v36 = vunpack.i.l.bf16 %v2620_v12  ;;  %v2622_v33 = vunpack.i.h.bf16 %v2620_v12  ;;  %v1289_v7 = vsel %vm816_vm1, %v1255_v9, 0.0 }
 0x15d   : > { %v1286_v21 = vsel %vm816_vm1, %v1254_v15, 0.0  ;;  %1290 = vadd.xlane.f32.xlu1 %v1289_v7  ;;  %v2627_v28 = vunpack.i.h.bf16 %v2625_v46  ;;  %v950_v7 = vrot.slane %v3521_v32, %v2919_v6  ;;  %v962_v32 = vrot.slane %v3529_v5, %v2919_v6 }
 0x15e   : > { %1287 = vadd.xlane.f32.xlu0 %v1286_v21  ;;  %v1258_v40 = vmul.f32 %v2626_v0, %v3160_v59  ;;  %v1256_v29 = vmul.f32 %v2621_v36, %v3133_v22  ;;  %v1257_v12 = vmul.f32 %v2622_v33, %v3149_v8  ;;  %v954_v21 = vrot.slane %v3523_v43, %v2919_v6 }
 0x15f   : > { %v2630_v31 = vpop.permute.xlu1 %2629  ;;  %v2635_v3 = vpop.permute.xlu0 %2634  ;;  %v1259_v36 = vmul.f32 %v2627_v28, %v3162_v62  ;;  %v970_v5 = vrot.slane %v3533_v56, %v2919_v6  ;;  %v974_v56 = vrot.slane %v3531_v57, %v2919_v6  ;;  %v994_v57 = vrot.slane %v3545_v61, %v2919_v6 }
 0x160   : > { %v2631_v42 = vunpack.i.l.bf16 %v2630_v31  ;;  %v2636_v14 = vunpack.i.l.bf16 %v2635_v3  ;;  %v1298_v19 = vsel %vm816_vm1, %v1258_v40, 0.0  ;;  %v1292_v48 = vsel %vm816_vm1, %v1256_v29, 0.0 }
 0x161   : > { %1299 = vadd.xlane.f32.xlu1 %v1298_v19  ;;  %v2632_v46 = vunpack.i.h.bf16 %v2630_v31  ;;  %v1295_v33 = vsel %vm816_vm1, %v1257_v12, 0.0  ;;  %v1076_v0 = vsel %vm1075_vm2, %v954_v21, %v950_v7  ;;  %v2637_v43 = vunpack.i.h.bf16 %v2635_v3 }
 0x162   : > { %1293 = vadd.xlane.f32.xlu0 %v1292_v48  ;;  %v1260_v15 = vmul.f32 %v2631_v42, %v3185_v30  ;;  %v1262_v19 = vmul.f32 %v2636_v14, %v3209_v63  ;;  %v958_v42 = vrot.slane %v3525_v4, %v2919_v6  ;;  %v1301_v31 = vsel %vm816_vm1, %v1259_v36, 0.0 }
 0x163   : > { %v2640_v9 = vpop.permute.xlu1 %2639  ;;  %v2645_v48 = vpop.permute.xlu0 %2644  ;;  %v1261_v4 = vmul.f32 %v2632_v46, %v3187_v34  ;;  %v966_v21 = vrot.slane %v3527_v47, %v2919_v6  ;;  %v986_v36 = vrot.slane %v3541_v37, %v2919_v6  ;;  %v982_v46 = vrot.slane %v3535_v25, %v2919_v6 }
 0x164   : > { %v2641_v40 = vunpack.i.l.bf16 %v2640_v9  ;;  %v1304_v29 = vsel %vm816_vm1, %v1260_v15, 0.0  ;;  %v2646_v28 = vunpack.i.l.bf16 %v2645_v48  ;;  %v1310_v12 = vsel %vm816_vm1, %v1262_v19, 0.0 }
 0x165   : > { %1305 = vadd.xlane.f32.xlu1 %v1304_v29  ;;  %v1078_v15 = vsel %vm1077_vm3, %v958_v42, %v1076_v0  ;;  %v1263_v47 = vmul.f32 %v2637_v43, %v3211_v2  ;;  %v1307_v19 = vsel %vm816_vm1, %v1261_v4, 0.0  ;;  %v1018_v43 = vrot.slane %v3557_v54, %v2919_v6 }
 0x166   : > { %1296 = vadd.xlane.f32.xlu0 %v1295_v33  ;;  %v1264_v14 = vmul.f32 %v2641_v40, %v3229_v17  ;;  %v1080_v3 = vsel %vm1079_vm4, %v962_v32, %v1078_v15  ;;  %v2642_v40 = vunpack.i.h.bf16 %v2640_v9  ;;  %v1266_v42 = vmul.f32 %v2646_v28, %v3249_v18 }
 0x167   : > { %v3615_v7 = vpop.permute.xlu1 %2649  ;;  %v1082_v37 = vsel %vm1081_vm5, %v966_v21, %v1080_v3  ;;  %v3632_v0 = vpop.permute.xlu0 %2654  ;;  %v990_v9 = vrot.slane %v3539_v49, %v2919_v6  ;;  %v1089_v32 = vsel %vm1075_vm2, %v986_v36, %v982_v46  ;;  %v2647_v28 = vunpack.i.h.bf16 %v2645_v48 }
 0x168   : > { %v2651_v29 = vunpack.i.l.bf16 %v3615_v7  ;;  %v1316_v33 = vsel %vm816_vm1, %v1264_v14, 0.0  ;;  %v1084_v25 = vsel %vm1083_vm6, %v970_v5, %v1082_v37  ;;  %v2656_v14 = vunpack.i.l.bf16 %v3632_v0 }
 0x169   : > { %1311 = vadd.xlane.f32.xlu1 %v1310_v12  ;;  %v1313_v12 = vsel %vm816_vm1, %v1263_v47, 0.0  ;;  %v1322_v4 = vsel %vm816_vm1, %v1266_v42, 0.0  ;;  %v1265_v15 = vmul.f32 %v2642_v40, %v3231_v39  ;;  %v978_v54 = vrot.slane %v3537_v60, %v2919_v6 }
 0x16a   : > { %1302 = vadd.xlane.f32.xlu0 %v1301_v31  ;;  %v1014_v31 = vrot.slane %v3551_v16, %v2919_v6  ;;  %v1268_v49 = vmul.f32 %v2651_v29, %v3275_v13  ;;  %v1022_v61 = vrot.slane %v3555_v10, %v2919_v6  ;;  %v1086_v16 = vsel %vm1085_vm7, %v974_v56, %v1084_v25 }
 0x16b   : > { %v3653_v21 = vpop.permute.xlu1 %2659  ;;  %v998_v48 = vrot.slane %v3543_v58, %v2919_v6  ;;  %v1090_v3 = vsel %vm1077_vm3, %v990_v9, %v1089_v32  ;;  %v1026_v36 = vrot.slane %v3561_v24, %v2919_v6  ;;  %v1050_v10 = vrot.slane %v3573_v44, %v2919_v6 }
 0x16c   : > { %v1096_v5 = vsel %vm1075_vm2, %v1018_v43, %v1014_v31  ;;  %v1091_v60 = vsel %vm1079_vm4, %v994_v57, %v1090_v3  ;;  %v2652_v46 = vunpack.i.h.bf16 %v3615_v7  ;;  %v1267_v40 = vmul.f32 %v2647_v28, %v3251_v26  ;;  %v4472_v57 = vld [vmem:[#allocation21_spill] sm:$0xff] }
 0x16d   : > { %1317 = vadd.xlane.f32.xlu1 %v1316_v33  ;;  %v2661_v47 = vunpack.i.l.bf16 %v3653_v21  ;;  %v1328_v58 = vsel %vm816_vm1, %v1268_v49, 0.0  ;;  %v1319_v29 = vsel %vm816_vm1, %v1265_v15, 0.0  ;;  %v1270_v33 = vmul.f32 %v2656_v14, %v3302_v20 }
 0x16e   : > { %1308 = vadd.xlane.f32.xlu0 %v1307_v19  ;;  %v1002_v24 = vrot.slane %v3549_v53, %v2919_v6  ;;  %v1097_v19 = vsel %vm1077_vm3, %v1022_v61, %v1096_v5  ;;  %v1046_v44 = vrot.slane %v3567_v50, %v2919_v6  ;;  %v1092_v7 = vsel %vm1081_vm5, %v998_v48, %v1091_v60  ;;  %v4473_v61 = vld [vmem:[#allocation25_spill] sm:$0xff]  ;;  %v2665_v48 = vpop.permute.xlu0 %2664  ;;  %v4474_v5 = vld [vmem:[#allocation60_spill] sm:$0xff] }
 0x16f   : > { %v1030_v42 = vrot.slane %v3559_v38, %v2919_v6  ;;  %v1098_v56 = vsel %vm1079_vm4, %v1026_v36, %v1097_v19  ;;  %v1054_v37 = vrot.slane %v3571_v1, %v2919_v6  ;;  %v1034_v53 = vrot.slane %v3565_v55, %v2919_v6 }
 0x170   : > { %v1103_v25 = vsel %vm1075_vm2, %v1050_v10, %v1046_v44  ;;  %v1058_v50 = vrot.slane %v3577_v35, %v2919_v6  ;;  %v2657_v9 = vunpack.i.h.bf16 %v3632_v0  ;;  %v1334_v32 = vsel %vm816_vm1, %v1270_v33, 0.0  ;;  %v2670_v33 = vpop.permute.xlu1 %2669 }
 0x171   : > { %1323 = vadd.xlane.f32.xlu1 %v1322_v4  ;;  %v1325_v43 = vsel %vm816_vm1, %v1267_v40, 0.0  ;;  %v1272_v38 = vmul.f32 %v2661_v47, %v3327_v27  ;;  %v1269_v31 = vmul.f32 %v2652_v46, %v4472_v57  ;;  %v1006_v1 = vrot.slane %v3547_v45, %v2919_v6  ;;  %v4475_v40 = vld [vmem:[#allocation61_spill] sm:$0xff] }
 0x172   : > { %1314 = vadd.xlane.f32.xlu0 %v1313_v12  ;;  %v1093_v55 = vsel %vm1083_vm6, %v1002_v24, %v1092_v7  ;;  %v1088_v28 = vsel %vm1087_vm8, %v978_v54, %v1086_v16  ;;  %v1010_v35 = vrot.slane %v3553_v52, %v2919_v6  ;;  %v1038_v0 = vrot.slane %v3563_v51, %v2919_v6 }
 0x173   : > { %v1099_v12 = vsel %vm1081_vm5, %v1030_v42, %v1098_v56  ;;  %v1104_v14 = vsel %vm1077_vm3, %v1054_v37, %v1103_v25  ;;  %v1042_v45 = vrot.slane %v3569_v41, %v2919_v6  ;;  %v1062_v49 = vrot.slane %v3575_v23, %v2919_v6  ;;  %v4476_v56 = vld [vmem:[#allocation31_spill] sm:$0xff]  ;;  %v2675_v25 = vpop.permute.xlu0 %2674 }
 0x174   : > { %v1100_v4 = vsel %vm1083_vm6, %v1034_v53, %v1099_v12  ;;  %v1105_v15 = vsel %vm1079_vm4, %v1058_v50, %v1104_v14  ;;  %v1066_v52 = vrot.slane %v3581_v11, %v2919_v6  ;;  %v1340_v54 = vsel %vm816_vm1, %v1272_v38, 0.0  ;;  %v4477_v38 = vld [vmem:[#allocation36_spill] sm:$0xff] }
 0x175   : > { %1329 = vadd.xlane.f32.xlu1 %v1328_v58  ;;  %v1331_v51 = vsel %vm816_vm1, %v1269_v31, 0.0  ;;  %v1271_v16 = vmul.f32 %v2657_v9, %v4473_v61  ;;  %v1114_v3 = vsel %vm202_vm0, %v1088_v28, 0.0  ;;  %v1101_v41 = vsel %vm1085_vm7, %v1038_v0, %v1100_v4  ;;  %v2680_v28 = vpop.permute.xlu1 %2679 }
 0x176   : > { %1320 = vadd.xlane.f32.xlu0 %v1319_v29  ;;  %v1094_v23 = vsel %vm1085_vm7, %v1006_v1, %v1093_v55  ;;  %v1070_v36 = vrot.slane %v4474_v5, %v2919_v6  ;;  %v1106_v11 = vsel %vm1081_vm5, %v1062_v49, %v1105_v15  ;;  %v1102_v60 = vsel %vm1087_vm8, %v1042_v45, %v1101_v41  ;;  %v4478_v1 = vld [vmem:[#allocation27_spill] sm:$0xff]  ;;  %v4480_v45 = vld [vmem:[#allocation41_spill] sm:$0xff] }
 0x177   : > { %v1095_v10 = vsel %vm1087_vm8, %v1010_v35, %v1094_v23  ;;  %v1107_v46 = vsel %vm1083_vm6, %v1066_v52, %v1106_v11  ;;  %v1074_v47 = vrot.slane %v4475_v40, %v2919_v6  ;;  %v2666_v58 = vunpack.i.l.bf16 %v2665_v48  ;;  %v4479_v35 = vld [vmem:[#allocation32_spill] sm:$0xff]  ;;  %v2685_v15 = vpop.permute.xlu0 %2684  ;;  %v4482_v41 = vld [vmem:[#allocation37_spill] sm:$0xff]  ;;  %v4483_v11 = vld [vmem:[#allocation42_spill] sm:$0xff] }
 0x178   : > { %v1337_v29 = vsel %vm816_vm1, %v1271_v16, 0.0  ;;  %v1120_v24 = vsel %vm202_vm0, %v1102_v60, 0.0  ;;  %v1117_v19 = vsel %vm202_vm0, %v1095_v10, 0.0  ;;  %v1108_v44 = vsel %vm1085_vm7, %v1070_v36, %v1107_v46 }
 0x179   : > { %1335 = vadd.xlane.f32.xlu1 %v1334_v32  ;;  %v2662_v7 = vunpack.i.h.bf16 %v3653_v21  ;;  %v2671_v42 = vunpack.i.l.bf16 %v2670_v33  ;;  %v1274_v37 = vmul.f32 %v2666_v58, %v4476_v56  ;;  %v1109_v53 = vsel %vm1087_vm8, %v1074_v47, %v1108_v44  ;;  %v2690_v5 = vpop.permute.xlu1 %2689  ;;  %v4484_v47 = vld [vmem:[#allocation49_spill] sm:$0xff] }
 0x17a   : > { %1326 = vadd.xlane.f32.xlu0 %v1325_v43  ;;  %v2667_v50 = vunpack.i.h.bf16 %v2665_v48  ;;  %v1123_v9 = vsel %vm202_vm0, %v1109_v53, 0.0  ;;  %v2676_v32 = vunpack.i.l.bf16 %v2675_v25  ;;  %v2672_v21 = vunpack.i.h.bf16 %v2670_v33  ;;  %v4481_v48 = vld [vmem:[#allocation44_spill] sm:$0xff] }
 0x17b   : > { %v1346_v43 = vsel %vm816_vm1, %v1274_v37, 0.0  ;;  %v1276_v31 = vmul.f32 %v2671_v42, %v4477_v38  ;;  %v1273_v55 = vmul.f32 %v2662_v7, %v4478_v1  ;;  %v2681_v12 = vunpack.i.l.bf16 %v2680_v28  ;;  %v4486_v7 = vld [vmem:[#allocation45_spill] sm:$0xff] }
 0x17c   : > { %v1275_v0 = vmul.f32 %v2667_v50, %v4479_v35  ;;  %v1278_v49 = vmul.f32 %v2676_v32, %v4480_v45  ;;  %v2677_v52 = vunpack.i.h.bf16 %v2675_v25  ;;  %v1277_v23 = vmul.f32 %v2672_v21, %v4482_v41  ;;  %v4487_v50 = vld [vmem:[#allocation50_spill] sm:$0xff]  ;;  %v4490_v21 = vld [vmem:[#allocation11_spill] sm:$0xff] }
 0x17d   : > { %1341 = vadd.xlane.f32.xlu1 %v1340_v54  ;;  %v1352_v14 = vsel %vm816_vm1, %v1276_v31, 0.0  ;;  %v1343_v4 = vsel %vm816_vm1, %v1273_v55, 0.0  ;;  %v2682_v36 = vunpack.i.h.bf16 %v2680_v28  ;;  %v2691_v10 = vunpack.i.l.bf16 %v2690_v5  ;;  %v4489_v28 = vld [vmem:[#allocation7_spill] sm:$0xff] }
 0x17e   : > { %1332 = vadd.xlane.f32.xlu0 %v1331_v51  ;;  %v1349_v54 = vsel %vm816_vm1, %v1275_v0, 0.0  ;;  %v2686_v51 = vunpack.i.l.bf16 %v2685_v15  ;;  %v1358_v16 = vsel %vm816_vm1, %v1278_v49, 0.0  ;;  %v1279_v60 = vmul.f32 %v2677_v52, %v4483_v11  ;;  %v4491_v0 = vld [vmem:[#allocation14_spill] sm:$0xff]  ;;  %v4495_v49 = vld [vmem:[#allocation15_spill] sm:$0xff] }
 0x17f   : > { %v1355_v40 = vsel %vm816_vm1, %v1277_v23, 0.0  ;;  %v1281_v42 = vmul.f32 %v2682_v36, %v4486_v7  ;;  %v2692_v37 = vunpack.i.h.bf16 %v2690_v5  ;;  %v4497_v52 = vld [vmem:[#allocation22_spill] sm:$0xff]  ;;  %v4502_v23 = vld [vmem:[#allocation59_spill] sm:$0xff]  ;;  %v4504_v36 = vld [vmem:[#allocation56_spill] sm:$0xff] }
 0x180   : > { %v1282_v58 = vmul.f32 %v2686_v51, %v4484_v47  ;;  %v4499_v51 = vld [vmem:[#allocation28_spill] sm:$0xff]  ;;  %v4503_v5 = vld [vmem:[#allocation46_spill] sm:$0xff] }
 0x181   : > { %1115 = vadd.xlane.f32.xlu1 %v1114_v3  ;;  %v1280_v3 = vmul.f32 %v2681_v12, %v4481_v48  ;;  %v1367_v25 = vsel %vm816_vm1, %v1281_v42, 0.0  ;;  %v4492_v12 = vld [vmem:[#allocation18_spill] sm:$0xff] }
 0x182   : > { %1338 = vadd.xlane.f32.xlu0 %v1337_v29  ;;  %v2687_v29 = vunpack.i.h.bf16 %v2685_v15  ;;  %v1370_v33 = vsel %vm816_vm1, %v1282_v58, 0.0  ;;  %v4496_v15 = vld [vmem:[#allocation33_spill] sm:$0xff] }
 0x183   : > { %v1364_v46 = vsel %vm816_vm1, %v1280_v3, 0.0  ;;  %v4501_v3 = vld [vmem:[#allocation38_spill] sm:$0xff] }
 0x185   : > { %1121 = vadd.xlane.f32.xlu1 %v1120_v24  ;;  %v1361_v24 = vsel %vm816_vm1, %v1279_v60, 0.0 }
 0x186   : > { %1118 = vadd.xlane.f32.xlu0 %v1117_v19  ;;  %v4485_v19 = vld [vmem:[#allocation54_spill] sm:$0xff] }
 0x187   : > { %v1284_v44 = vmul.f32 %v2691_v10, %v4485_v19 }
 0x189   : > { %1347 = vadd.xlane.f32.xlu1 %v1346_v43  ;;  %v1376_v53 = vsel %vm816_vm1, %v1284_v44, 0.0  ;;  %v4488_v43 = vld [vmem:[#allocation55_spill] sm:$0xff] }
 0x18a   : > { %1124 = vadd.xlane.f32.xlu0 %v1123_v9  ;;  %v1283_v9 = vmul.f32 %v2687_v29, %v4487_v50  ;;  %v1285_v31 = vmul.f32 %v2692_v37, %v4488_v43 }
 0x18c   : > { %v1373_v32 = vsel %vm816_vm1, %v1283_v9, 0.0  ;;  %v1379_v55 = vsel %vm816_vm1, %v1285_v31, 0.0 }
 0x18d   : > { %1353 = vadd.xlane.f32.xlu1 %v1352_v14  ;;  %v4493_v14 = vld [vmem:[#allocation8_spill] sm:$0xff] }
 0x18e   : > { %1344 = vadd.xlane.f32.xlu0 %v1343_v4  ;;  %v4494_v4 = vld [vmem:[#allocation26_spill] sm:$0xff] }
 0x191   : > { %1359 = vadd.xlane.f32.xlu1 %v1358_v16  ;;  %v4500_v16 = vld [vmem:[#allocation51_spill] sm:$0xff] }
 0x192   : > { %1350 = vadd.xlane.f32.xlu0 %v1349_v54  ;;  %v4498_v54 = vld [vmem:[#allocation43_spill] sm:$0xff] }
 0x195   : > { %1365 = vadd.xlane.f32.xlu1 %v1364_v46 }
 0x196   : > { %1356 = vadd.xlane.f32.xlu0 %v1355_v40 }
 0x199   : > { %1371 = vadd.xlane.f32.xlu1 %v1370_v33 }
 0x19a   : > { %1362 = vadd.xlane.f32.xlu0 %v1361_v24 }
 0x19d   : > { %1377 = vadd.xlane.f32.xlu1 %v1376_v53 }
 0x19e   : > { %1368 = vadd.xlane.f32.xlu0 %v1367_v25 }
 0x1a2   : > { %1374 = vadd.xlane.f32.xlu0 %v1373_v32 }
 0x1a6   : > { %1380 = vadd.xlane.f32.xlu0 %v1379_v55 }
 0x1ae   : > { %2694 = vrot.lane.b32.xlu1 %v4489_v28, %s2880_s22 }
 0x1b2   : > { %2704 = vrot.lane.b32.xlu1 %v4490_v21, %s2880_s22 }
 0x1b6   : > { %2709 = vrot.lane.b32.xlu1 %v4491_v0, %s2880_s22 }
 0x1ba   : > { %2719 = vrot.lane.b32.xlu1 %v4492_v12, %s2880_s22 }
 0x1bc   : > { %2699 = vrot.lane.b32.xlu0 %v4493_v14, %s2880_s22 }
 0x1be   : > { %2729 = vrot.lane.b32.xlu1 %v4494_v4, %s2880_s22 }
 0x1c0   : > { %2714 = vrot.lane.b32.xlu0 %v4495_v49, %s2880_s22 }
 0x1c2   : > { %2739 = vrot.lane.b32.xlu1 %v4496_v15, %s2880_s22 }
 0x1c4   : > { %2724 = vrot.lane.b32.xlu0 %v4497_v52, %s2880_s22 }
 0x1c6   : > { %2749 = vrot.lane.b32.xlu1 %v4498_v54, %s2880_s22 }
 0x1c8   : > { %2734 = vrot.lane.b32.xlu0 %v4499_v51, %s2880_s22 }
 0x1ca   : > { %2759 = vrot.lane.b32.xlu1 %v4500_v16, %s2880_s22 }
 0x1cc   : > { %2744 = vrot.lane.b32.xlu0 %v4501_v3, %s2880_s22 }
 0x1ce   : > { %2769 = vrot.lane.b32.xlu1 %v4502_v23, %s2880_s22 }
 0x1d0   : > { %2754 = vrot.lane.b32.xlu0 %v4503_v5, %s2880_s22 }
 0x1d4   : > { %2764 = vrot.lane.b32.xlu0 %v4504_v36, %s2880_s22 }
 0x1e6   : > { %v1291_v60 = vpop.xlane.xlu1 %1290 }
 0x1e7   : > { %v1288_v10 = vpop.xlane.xlu0 %1287  ;;  %v1421_v58 = vrot.slane %v1291_v60, %v2919_v6 }
 0x1e8   : > { %v1417_v29 = vrot.slane %v1288_v10, %v2919_v6 }
 0x1ea   : > { %v1300_v46 = vpop.xlane.xlu1 %1299  ;;  %v1542_v42 = vsel %vm1075_vm2, %v1421_v58, %v1417_v29 }
 0x1eb   : > { %v1294_v40 = vpop.xlane.xlu0 %1293  ;;  %v1433_v9 = vrot.slane %v1300_v46, %v2919_v6 }
 0x1ec   : > { %v1425_v33 = vrot.slane %v1294_v40, %v2919_v6 }
 0x1ee   : > { %v1306_v24 = vpop.xlane.xlu1 %1305  ;;  %v1543_v53 = vsel %vm1077_vm3, %v1425_v33, %v1542_v42 }
 0x1ef   : > { %v1297_v44 = vpop.xlane.xlu0 %1296  ;;  %v1441_v12 = vrot.slane %v1306_v24, %v2919_v6 }
 0x1f0   : > { %v1429_v37 = vrot.slane %v1297_v44, %v2919_v6 }
 0x1f2   : > { %v1544_v25 = vsel %vm1079_vm4, %v1429_v37, %v1543_v53  ;;  %v1312_v32 = vpop.xlane.xlu1 %1311 }
 0x1f3   : > { %v1303_v31 = vpop.xlane.xlu0 %1302  ;;  %v1545_v21 = vsel %vm1081_vm5, %v1433_v9, %v1544_v25 }
 0x1f4   : > { %v1437_v55 = vrot.slane %v1303_v31, %v2919_v6 }
 0x1f6   : > { %v1546_v0 = vsel %vm1083_vm6, %v1437_v55, %v1545_v21  ;;  %v1318_v14 = vpop.xlane.xlu1 %1317 }
 0x1f7   : > { %v1309_v4 = vpop.xlane.xlu0 %1308  ;;  %v1547_v52 = vsel %vm1085_vm7, %v1441_v12, %v1546_v0 }
 0x1f8   : > { %v1445_v15 = vrot.slane %v1309_v4, %v2919_v6 }
 0x1fa   : > { %v1548_v54 = vsel %vm1087_vm8, %v1445_v15, %v1547_v52  ;;  %v1324_v16 = vpop.xlane.xlu1 %1323 }
 0x1fb   : > { %v1315_v3 = vpop.xlane.xlu0 %1314  ;;  %v1574_v23 = vsel %vm202_vm0, %v1548_v54, 0.0 }
 0x1fc   : > { %1575 = vadd.xlane.f32.xlu1 %v1574_v23 }
 0x1fe   : > { %v3789_v36 = vpop.xlane.xlu1 %1329 }
 0x1ff   : > { %v1321_v60 = vpop.xlane.xlu0 %1320 }
 0x202   : > { %v1336_v10 = vpop.xlane.xlu1 %1335 }
 0x203   : > { %v1327_v46 = vpop.xlane.xlu0 %1326  ;;  %v1481_v25 = vrot.slane %v1336_v10, %v2919_v6 }
 0x206   : > { %v1342_v40 = vpop.xlane.xlu1 %1341 }
 0x207   : > { %v3791_v58 = vpop.xlane.xlu0 %1332  ;;  %v1489_v31 = vrot.slane %v1342_v40, %v2919_v6 }
 0x20a   : > { %v3793_v29 = vpop.xlane.xlu1 %1115 }
 0x20b   : > { %v1339_v33 = vpop.xlane.xlu0 %1338 }
 0x20c   : > { %v1485_v42 = vrot.slane %v1339_v33, %v2919_v6 }
 0x20e   : > { %v3795_v24 = vpop.xlane.xlu1 %1121  ;;  %v1556_v9 = vsel %vm1075_vm2, %v1485_v42, %v1481_v25 }
 0x20f   : > { %4505 = vst [vmem:[#allocation21_spill] sm:$0xff] %v3795_v24  ;;  %v3797_v44 = vpop.xlane.xlu0 %1118  ;;  %v1557_v12 = vsel %vm1077_vm3, %v1489_v31, %v1556_v9  ;;  %v1453_v9 = vrot.slane %v1315_v3, %v2919_v6 }
 0x210   : > { %4506 = vst [vmem:[#allocation25_spill] sm:$0xff] %v3797_v44 }
 0x212   : > { %v1348_v37 = vpop.xlane.xlu1 %1347 }
 0x213   : > { %v3800_v53 = vpop.xlane.xlu0 %1124  ;;  %v1497_v15 = vrot.slane %v1348_v37, %v2919_v6 }
 0x214   : > { %4507 = vst [vmem:[#allocation60_spill] sm:$0xff] %v3800_v53 }
 0x216   : > { %v1354_v55 = vpop.xlane.xlu1 %1353 }
 0x217   : > { %v1345_v21 = vpop.xlane.xlu0 %1344  ;;  %v1505_v40 = vrot.slane %v1354_v55, %v2919_v6  ;;  %v1461_v55 = vrot.slane %v1321_v60, %v2919_v6 }
 0x218   : > { %v1493_v0 = vrot.slane %v1345_v21, %v2919_v6 }
 0x21a   : > { %v1558_v4 = vsel %vm1079_vm4, %v1493_v0, %v1557_v12  ;;  %v1360_v52 = vpop.xlane.xlu1 %1359  ;;  %v1449_v0 = vrot.slane %v1312_v32, %v2919_v6  ;;  %v1465_v32 = vrot.slane %v1324_v16, %v2919_v6 }
 0x21b   : > { %v1351_v54 = vpop.xlane.xlu0 %1350  ;;  %v1559_v10 = vsel %vm1081_vm5, %v1497_v15, %v1558_v4  ;;  %v1513_v60 = vrot.slane %v1360_v52, %v2919_v6 }
 0x21c   : > { %v1501_v23 = vrot.slane %v1351_v54, %v2919_v6  ;;  %v1549_v15 = vsel %vm1075_vm2, %v1453_v9, %v1449_v0 }
 0x21e   : > { %v1560_v33 = vsel %vm1083_vm6, %v1501_v23, %v1559_v10  ;;  %v1366_v42 = vpop.xlane.xlu1 %1365  ;;  %v1457_v23 = vrot.slane %v1318_v14, %v2919_v6 }
 0x21f   : > { %v1357_v25 = vpop.xlane.xlu0 %1356  ;;  %v1561_v31 = vsel %vm1085_vm7, %v1505_v40, %v1560_v33  ;;  %v1469_v40 = vrot.slane %v1327_v46, %v2919_v6  ;;  %v1477_v46 = vrot.slane %v3791_v58, %v2919_v6  ;;  %v1521_v52 = vrot.slane %v1366_v42, %v2919_v6 }
 0x220   : > { %v1509_v21 = vrot.slane %v1357_v25, %v2919_v6  ;;  %v1550_v3 = vsel %vm1077_vm3, %v1457_v23, %v1549_v15 }
 0x221   : > { %v1551_v33 = vsel %vm1079_vm4, %v1461_v55, %v1550_v3  ;;  %v4508_v55 = vld [vmem:[#allocation3_spill] sm:$0xff]  ;;  %v4509_v3 = vld [vmem:[#allocation5_spill] sm:$0xff] }
 0x222   : > { %v1562_v37 = vsel %vm1087_vm8, %v1509_v21, %v1561_v31  ;;  %v1372_v12 = vpop.xlane.xlu1 %1371  ;;  %v1552_v9 = vsel %vm1081_vm5, %v1465_v32, %v1551_v33 }
 0x223   : > { %v1363_v54 = vpop.xlane.xlu0 %1362  ;;  %v1580_v4 = vsel %vm202_vm0, %v1562_v37, 0.0  ;;  %v1553_v15 = vsel %vm1083_vm6, %v1469_v40, %v1552_v9 }
 0x224   : > { %1581 = vadd.xlane.f32.xlu1 %v1580_v4  ;;  %v1517_v21 = vrot.slane %v1363_v54, %v2919_v6  ;;  %v1473_v4 = vrot.slane %v3789_v36, %v2919_v6 }
 0x226   : > { %v1378_v10 = vpop.xlane.xlu1 %1377  ;;  %v1563_v16 = vsel %vm1075_vm2, %v1517_v21, %v1513_v60  ;;  %v1554_v9 = vsel %vm1085_vm7, %v1473_v4, %v1553_v15 }
 0x227   : > { %v1369_v25 = vpop.xlane.xlu0 %1368  ;;  %v1564_v58 = vsel %vm1077_vm3, %v1521_v52, %v1563_v16  ;;  %v1555_v21 = vsel %vm1087_vm8, %v1477_v46, %v1554_v9 }
 0x228   : > { %v1525_v54 = vrot.slane %v1369_v25, %v2919_v6  ;;  %v1577_v4 = vsel %vm202_vm0, %v1555_v21, 0.0  ;;  %v4513_v21 = vld [vmem:[#allocation16_spill] sm:$0xff] }
 0x22a   : > { %v2695_v31 = vpop.permute.xlu1 %2694  ;;  %v1565_v60 = vsel %vm1079_vm4, %v1525_v54, %v1564_v58 }
 0x22b   : > { %v1375_v37 = vpop.xlane.xlu0 %1374  ;;  %v2697_v0 = vunpack.i.h.bf16 %v2695_v31  ;;  %v2696_v14 = vunpack.i.l.bf16 %v2695_v31 }
 0x22c   : > { %v1533_v42 = vrot.slane %v1375_v37, %v2919_v6 }
 0x22d   : > { %v1682_v23 = vmul.f32 %v2696_v14, %v4508_v55  ;;  %v1683_v33 = vmul.f32 %v2697_v0, %v4509_v3  ;;  %v1529_v14 = vrot.slane %v1372_v12, %v2919_v6 }
 0x22e   : > { %v3839_v32 = vpop.permute.xlu1 %2704 }
 0x22f   : > { %v1381_v31 = vpop.xlane.xlu0 %1380  ;;  %v2706_v36 = vunpack.i.l.bf16 %v3839_v32  ;;  %v1714_v40 = vsel %vm816_vm1, %v1682_v23, 0.0  ;;  %v1717_v25 = vsel %vm816_vm1, %v1683_v33, 0.0  ;;  %v1566_v15 = vsel %vm1081_vm5, %v1529_v14, %v1565_v60  ;;  %v4514_v60 = vld [vmem:[#allocation6_spill] sm:$0xff] }
 0x230   : > { %1715 = vadd.xlane.f32.xlu0 %v1714_v40  ;;  %1718 = vadd.xlane.f32.xlu1 %v1717_v25  ;;  %v1567_v46 = vsel %vm1083_vm6, %v1533_v42, %v1566_v15  ;;  %v1541_v54 = vrot.slane %v1381_v31, %v2919_v6  ;;  %v1537_v33 = vrot.slane %v1378_v10, %v2919_v6  ;;  %v4511_v10 = vld [vmem:[#allocation4_spill] sm:$0xff]  ;;  %v4517_v14 = vld [vmem:[#allocation10_spill] sm:$0xff]  ;;  %v4520_v15 = vld [vmem:[#allocation9_spill] sm:$0xff] }
 0x231   : > { %v1686_v0 = vmul.f32 %v2706_v36, %v3160_v59  ;;  %v4515_v42 = vpack.i.bf16 %v4513_v21, %v4514_v60  ;;  %v4540_v60 = vld [vmem:[#allocation58_spill] sm:$0xff] }
 0x232   : > { %v1568_v36 = vsel %vm1085_vm7, %v1537_v33, %v1567_v46 }
 0x233   : > { %v2700_v53 = vpop.permute.xlu0 %2699  ;;  %v1726_v16 = vsel %vm816_vm1, %v1686_v0, 0.0  ;;  %v1569_v40 = vsel %vm1087_vm8, %v1541_v54, %v1568_v36  ;;  %v4516_v0 = vld [vmem:[#allocation20_spill] sm:$0xff] }
 0x234   : > { %v2701_v23 = vunpack.i.l.bf16 %v2700_v53  ;;  %1578 = vadd.xlane.f32.xlu0 %v1577_v4  ;;  %1727 = vadd.xlane.f32.xlu1 %v1726_v16  ;;  %v2702_v52 = vunpack.i.h.bf16 %v2700_v53  ;;  %v1583_v9 = vsel %vm202_vm0, %v1569_v40, 0.0  ;;  %v4510_v53 = vld [vmem:[#allocation17_spill] sm:$0xff]  ;;  %v4519_v4 = vld [vmem:[#allocation19_spill] sm:$0xff]  ;;  %v4525_v54 = vld [vmem:[#allocation48_spill] sm:$0xff] }
 0x235   : > { %v4512_v25 = vpack.i.bf16 %v4510_v53, %v4511_v10  ;;  %v4521_v16 = vpack.i.bf16 %v4519_v4, %v4520_v15  ;;  %v4531_v40 = vld [vmem:[#allocation47_spill] sm:$0xff]  ;;  %v4537_v10 = vld [vmem:[#allocation52_spill] sm:$0xff] }
 0x236   : > { %v1684_v37 = vmul.f32 %v2701_v23, %v3133_v22  ;;  %v1685_v58 = vmul.f32 %v2702_v52, %v3149_v8  ;;  %v4518_v23 = vpack.i.bf16 %v4516_v0, %v4517_v14  ;;  %v4528_v52 = vld [vmem:[#allocation23_spill] sm:$0xff] }
 0x237   : > { %v4544_v4 = vld [vmem:[#allocation39_spill] sm:$0xff] }
 0x238   : > { %v1720_v12 = vsel %vm816_vm1, %v1684_v37, 0.0  ;;  %v1723_v31 = vsel %vm816_vm1, %v1685_v58, 0.0  ;;  %v4526_v37 = vld [vmem:[#allocation30_spill] sm:$0xff]  ;;  %v4534_v58 = vld [vmem:[#allocation53_spill] sm:$0xff] }
 0x239   : > { %1721 = vadd.xlane.f32.xlu0 %v1720_v12  ;;  %v4527_v33 = vpack.i.bf16 %v4525_v54, %v4526_v37  ;;  %v4529_v12 = vld [vmem:[#allocation12_spill] sm:$0xff] }
 0x23a   : > { %v4530_v36 = vpack.i.bf16 %v4528_v52, %v4529_v12 }
 0x23d   : > { %1584 = vadd.xlane.f32.xlu0 %v1583_v9 }
 0x241   : > { %1724 = vadd.xlane.f32.xlu0 %v1723_v31  ;;  %v4535_v31 = vld [vmem:[#allocation35_spill] sm:$0xff] }
 0x242   : > { %v4536_v53 = vpack.i.bf16 %v4534_v58, %v4535_v31 }
 0x245   : > { %2779 = vrot.lane.b32.xlu1 %v4495_v49, %s2881_s23  ;;  %v4522_v49 = vld [vmem:[#allocation24_spill] sm:$0xff] }
 0x249   : > { %2784 = vrot.lane.b32.xlu1 %v4499_v51, %s2881_s23  ;;  %v4523_v51 = vld [vmem:[#allocation13_spill] sm:$0xff] }
 0x24a   : > { %v4524_v46 = vpack.i.bf16 %v4522_v49, %v4523_v51 }
 0x24d   : > { %2794 = vrot.lane.b32.xlu1 %v4512_v25, %s2881_s23  ;;  %v4538_v25 = vld [vmem:[#allocation34_spill] sm:$0xff] }
 0x24e   : > { %v4539_v21 = vpack.i.bf16 %v4537_v10, %v4538_v25 }
 0x251   : > { %2804 = vrot.lane.b32.xlu1 %v4515_v42, %s2881_s23  ;;  %v4541_v42 = vld [vmem:[#allocation40_spill] sm:$0xff] }
 0x252   : > { %v4542_v0 = vpack.i.bf16 %v4540_v60, %v4541_v42 }
 0x255   : > { %2814 = vrot.lane.b32.xlu1 %v4518_v23, %s2881_s23  ;;  %v4543_v23 = vld [vmem:[#allocation57_spill] sm:$0xff] }
 0x256   : > { %v4545_v15 = vpack.i.bf16 %v4543_v23, %v4544_v4 }
 0x257   : > { %2774 = vrot.lane.b32.xlu0 %v4489_v28, %s2881_s23  ;;  %v4532_v28 = vld [vmem:[#allocation29_spill] sm:$0xff] }
 0x258   : > { %v4533_v9 = vpack.i.bf16 %v4531_v40, %v4532_v28 }
 0x259   : > { %2824 = vrot.lane.b32.xlu1 %v4521_v16, %s2881_s23  ;;  %v3906_v16 = vpop.permute.xlu1 %2709 }
 0x25b   : > { %2789 = vrot.lane.b32.xlu0 %v4503_v5, %s2881_s23  ;;  %v2715_v5 = vpop.permute.xlu0 %2714 }
 0x25c   : > { %v2716_v54 = vunpack.i.l.bf16 %v2715_v5  ;;  %v2717_v58 = vunpack.i.h.bf16 %v2715_v5 }
 0x25d   : > { %2834 = vrot.lane.b32.xlu1 %v4524_v46, %s2881_s23  ;;  %v3908_v51 = vpop.permute.xlu1 %2719 }
 0x25e   : > { %v1690_v52 = vmul.f32 %v2716_v54, %v3209_v63  ;;  %v1691_v42 = vmul.f32 %v2717_v58, %v3211_v2 }
 0x25f   : > { %2799 = vrot.lane.b32.xlu0 %v4527_v33, %s2881_s23  ;;  %v3901_v14 = vpop.permute.xlu0 %2724 }
 0x260   : > { %v1738_v40 = vsel %vm816_vm1, %v1690_v52, 0.0  ;;  %v1741_v4 = vsel %vm816_vm1, %v1691_v42, 0.0 }
 0x261   : > { %2844 = vrot.lane.b32.xlu1 %v4530_v36, %s2881_s23  ;;  %v3912_v37 = vpop.permute.xlu1 %2729 }
 0x263   : > { %2809 = vrot.lane.b32.xlu0 %v4533_v9, %s2881_s23  ;;  %v2735_v49 = vpop.permute.xlu0 %2734 }
 0x264   : > { %v2737_v33 = vunpack.i.h.bf16 %v2735_v49  ;;  %v2736_v25 = vunpack.i.l.bf16 %v2735_v49  ;;  %v2721_v49 = vunpack.i.l.bf16 %v3908_v51 }
 0x265   : > { %v3917_v9 = vpop.permute.xlu1 %2739 }
 0x266   : > { %v1699_v28 = vmul.f32 %v2737_v33, %v4473_v61  ;;  %v2741_v31 = vunpack.i.l.bf16 %v3917_v9 }
 0x267   : > { %2819 = vrot.lane.b32.xlu0 %v4536_v53, %s2881_s23  ;;  %v3910_v46 = vpop.permute.xlu0 %2744 }
 0x268   : > { %v1765_v53 = vsel %vm816_vm1, %v1699_v28, 0.0  ;;  %v1700_v60 = vmul.f32 %v2741_v31, %v3327_v27 }
 0x26a   : > { %v1768_v5 = vsel %vm816_vm1, %v1700_v60, 0.0 }
 0x26b   : > { %2829 = vrot.lane.b32.xlu0 %v4539_v21, %s2881_s23  ;;  %v2755_v12 = vpop.permute.xlu0 %2754 }
 0x26c   : > { %v2757_v36 = vunpack.i.h.bf16 %v2755_v12  ;;  %v2756_v23 = vunpack.i.l.bf16 %v2755_v12 }
 0x26e   : > { %v1707_v10 = vmul.f32 %v2757_v36, %v4483_v11  ;;  %v1706_v33 = vmul.f32 %v2756_v23, %v4480_v45 }
 0x26f   : > { %2839 = vrot.lane.b32.xlu0 %v4542_v0, %s2881_s23  ;;  %v3925_v0 = vpop.permute.xlu1 %2749 }
 0x270   : > { %v1789_v21 = vsel %vm816_vm1, %v1707_v10, 0.0  ;;  %v1786_v12 = vsel %vm816_vm1, %v1706_v33, 0.0 }
 0x273   : > { %2849 = vrot.lane.b32.xlu0 %v4545_v15, %s2881_s23  ;;  %v1698_v15 = vmul.f32 %v2736_v25, %v3302_v20  ;;  %v3933_v52 = vpop.permute.xlu1 %2759  ;;  %v3945_v25 = vpop.permute.xlu0 %2764 }
 0x274   : > { %v2761_v36 = vunpack.i.l.bf16 %v3933_v52 }
 0x275   : > { %v1762_v54 = vsel %vm816_vm1, %v1698_v15, 0.0 }
 0x276   : > { %v1708_v58 = vmul.f32 %v2761_v36, %v4481_v48 }
 0x278   : > { %v1792_v31 = vsel %vm816_vm1, %v1708_v58, 0.0 }
 0x285   : > { %1739 = vadd.xlane.f32.xlu1 %v1738_v40  ;;  %v1692_v40 = vmul.f32 %v2721_v49, %v3229_v17 }
 0x287   : > { %v1744_v28 = vsel %vm816_vm1, %v1692_v40, 0.0 }
 0x289   : > { %1766 = vadd.xlane.f32.xlu1 %v1765_v53  ;;  %v3941_v53 = vpop.permute.xlu1 %2769 }
 0x28d   : > { %1790 = vadd.xlane.f32.xlu1 %v1789_v21  ;;  %v3943_v10 = vpop.xlane.xlu1 %1575 }
 0x291   : > { %1769 = vadd.xlane.f32.xlu1 %v1768_v5 }
 0x292   : > { %1742 = vadd.xlane.f32.xlu0 %v1741_v4 }
 0x296   : > { %1763 = vadd.xlane.f32.xlu0 %v1762_v54 }
 0x29a   : > { %1787 = vadd.xlane.f32.xlu0 %v1786_v12 }
 0x29e   : > { %1745 = vadd.xlane.f32.xlu0 %v1744_v28 }
 0x2a2   : > { %1793 = vadd.xlane.f32.xlu0 %v1792_v31 }
 0x2ad   : > { %v3947_v21 = vpop.xlane.xlu1 %1581 }
 0x2ae   : > { %4546 = vst [vmem:[#allocation61_spill] sm:$0xff] %v3947_v21 }
 0x2b9   : > { %v1716_v60 = vpop.xlane.xlu0 %1715  ;;  %v1719_v42 = vpop.xlane.xlu1 %1718 }
 0x2ba   : > { %v1845_v23 = vrot.slane %v1716_v60, %v2919_v6  ;;  %v1849_v5 = vrot.slane %v1719_v42, %v2919_v6 }
 0x2bc   : > { %v1970_v4 = vsel %vm1075_vm2, %v1849_v5, %v1845_v23 }
 0x2bd   : > { %v3952_v15 = vpop.xlane.xlu0 %1578  ;;  %v1728_v33 = vpop.xlane.xlu1 %1727 }
 0x2be   : > { %4547 = vst [vmem:[#allocation31_spill] sm:$0xff] %v3952_v15  ;;  %v1861_v31 = vrot.slane %v1728_v33, %v2919_v6 }
 0x2c1   : > { %v2780_v28 = vpop.permute.xlu1 %2779 }
 0x2c2   : > { %v1722_v49 = vpop.xlane.xlu0 %1721  ;;  %v2782_v5 = vunpack.i.h.bf16 %v2780_v28  ;;  %v2781_v24 = vunpack.i.l.bf16 %v2780_v28 }
 0x2c3   : > { %v1853_v54 = vrot.slane %v1722_v49, %v2919_v6 }
 0x2c5   : > { %v1971_v36 = vsel %vm1077_vm3, %v1853_v54, %v1970_v4  ;;  %v2785_v44 = vpop.permute.xlu1 %2784 }
 0x2c6   : > { %v3956_v12 = vpop.xlane.xlu0 %1584  ;;  %v2787_v33 = vunpack.i.h.bf16 %v2785_v44  ;;  %v2786_v15 = vunpack.i.l.bf16 %v2785_v44 }
 0x2c7   : > { %4548 = vst [vmem:[#allocation36_spill] sm:$0xff] %v3956_v12  ;;  %v2119_v12 = vmul.f32 %v2782_v5, %v3211_v2 }
 0x2c8   : > { %v2126_v2 = vmul.f32 %v2786_v15, %v3302_v20 }
 0x2c9   : > { %v2169_v28 = vsel %vm816_vm1, %v2119_v12, 0.0 }
 0x2ca   : > { %v1725_v40 = vpop.xlane.xlu0 %1724 }
 0x2cb   : > { %v1857_v58 = vrot.slane %v1725_v40, %v2919_v6  ;;  %v2118_v40 = vmul.f32 %v2781_v24, %v3209_v63  ;;  %v2722_v63 = vunpack.i.h.bf16 %v3908_v51  ;;  %v2742_v24 = vunpack.i.h.bf16 %v3917_v9 }
 0x2cd   : > { %v1972_v60 = vsel %vm1079_vm4, %v1857_v58, %v1971_v36  ;;  %v1693_v20 = vmul.f32 %v2722_v63, %v3231_v39 }
 0x2ce   : > { %v2775_v42 = vpop.permute.xlu0 %2774  ;;  %v3962_v23 = vsel %vm1081_vm5, %v1861_v31, %v1972_v60  ;;  %v2166_v60 = vsel %vm816_vm1, %v2118_v40, 0.0 }
 0x2cf   : > { %v2777_v49 = vunpack.i.h.bf16 %v2775_v42  ;;  %v2776_v21 = vunpack.i.l.bf16 %v2775_v42 }
 0x2d1   : > { %v2111_v4 = vmul.f32 %v2777_v49, %v4509_v3  ;;  %v2110_v54 = vmul.f32 %v2776_v21, %v4508_v55  ;;  %v2127_v55 = vmul.f32 %v2787_v33, %v4473_v61  ;;  %v2190_v21 = vsel %vm816_vm1, %v2126_v2, 0.0  ;;  %v2795_v49 = vpop.permute.xlu1 %2794 }
 0x2d2   : > { %v2790_v31 = vpop.permute.xlu0 %2789  ;;  %v2762_v61 = vunpack.i.h.bf16 %v3933_v52  ;;  %v2796_v15 = vunpack.i.l.bf16 %v2795_v49  ;;  %v2797_v40 = vunpack.i.h.bf16 %v2795_v49  ;;  %v2766_v2 = vunpack.i.l.bf16 %v3945_v25 }
 0x2d3   : > { %v2145_v36 = vsel %vm816_vm1, %v2111_v4, 0.0  ;;  %v2142_v58 = vsel %vm816_vm1, %v2110_v54, 0.0  ;;  %v2792_v3 = vunpack.i.h.bf16 %v2790_v31  ;;  %v2791_v42 = vunpack.i.l.bf16 %v2790_v31 }
 0x2d4   : > { %2146 = vadd.xlane.f32.xlu0 %v2145_v36  ;;  %2143 = vadd.xlane.f32.xlu1 %v2142_v58  ;;  %v2193_v44 = vsel %vm816_vm1, %v2127_v55, 0.0  ;;  %v1701_v4 = vmul.f32 %v2742_v24, %v4478_v1  ;;  %v2112_v36 = vmul.f32 %v2796_v15, %v3133_v22  ;;  %v2726_v58 = vunpack.i.l.bf16 %v3901_v14 }
 0x2d5   : > { %v2135_v12 = vmul.f32 %v2792_v3, %v4483_v11  ;;  %v2134_v5 = vmul.f32 %v2791_v42, %v4480_v45  ;;  %v1747_v11 = vsel %vm816_vm1, %v1693_v20, 0.0  ;;  %v1709_v45 = vmul.f32 %v2762_v61, %v4486_v7 }
 0x2d6   : > { %v2800_v54 = vpop.permute.xlu0 %2799  ;;  %v1771_v52 = vsel %vm816_vm1, %v1701_v4, 0.0  ;;  %v2120_v42 = vmul.f32 %v2797_v40, %v3229_v17  ;;  %v2746_v55 = vunpack.i.l.bf16 %v3910_v46  ;;  %v1694_v24 = vmul.f32 %v2726_v58, %v3249_v18 }
 0x2d7   : > { %v2217_v51 = vsel %vm816_vm1, %v2135_v12, 0.0  ;;  %v2214_v9 = vsel %vm816_vm1, %v2134_v5, 0.0  ;;  %v2801_v33 = vunpack.i.l.bf16 %v2800_v54  ;;  %v1795_v31 = vsel %vm816_vm1, %v1709_v45, 0.0 }
 0x2d8   : > { %2170 = vadd.xlane.f32.xlu0 %v2169_v28  ;;  %2167 = vadd.xlane.f32.xlu1 %v2166_v60  ;;  %v2802_v28 = vunpack.i.h.bf16 %v2800_v54  ;;  %v2148_v60 = vsel %vm816_vm1, %v2112_v36, 0.0  ;;  %v2172_v63 = vsel %vm816_vm1, %v2120_v42, 0.0  ;;  %v1702_v17 = vmul.f32 %v2746_v55, %v4476_v56 }
 0x2d9   : > { %v2128_v3 = vmul.f32 %v2801_v33, %v3327_v27  ;;  %v1710_v27 = vmul.f32 %v2766_v2, %v4484_v47  ;;  %v1750_v49 = vsel %vm816_vm1, %v1694_v24, 0.0  ;;  %v2727_v45 = vunpack.i.h.bf16 %v3901_v14 }
 0x2da   : > { %v2810_v20 = vpop.permute.xlu0 %2809 }
 0x2db   : > { %v2196_v22 = vsel %vm816_vm1, %v2128_v3, 0.0  ;;  %v1798_v15 = vsel %vm816_vm1, %v1710_v27, 0.0  ;;  %v1695_v14 = vmul.f32 %v2727_v45, %v3251_v26  ;;  %v2711_v27 = vunpack.i.l.bf16 %v3906_v16 }
 0x2dc   : > { %2194 = vadd.xlane.f32.xlu0 %v2193_v44  ;;  %2191 = vadd.xlane.f32.xlu1 %v2190_v21  ;;  %v2136_v44 = vmul.f32 %v2802_v28, %v4481_v48  ;;  %v2805_v21 = vpop.permute.xlu1 %2804  ;;  %v1774_v48 = vsel %vm816_vm1, %v1702_v17, 0.0  ;;  %v2731_v17 = vunpack.i.l.bf16 %v3912_v37 }
 0x2dd   : > { %v2807_v12 = vunpack.i.h.bf16 %v2805_v21  ;;  %v2806_v5 = vunpack.i.l.bf16 %v2805_v21 }
 0x2de   : > { %v2220_v61 = vsel %vm816_vm1, %v2136_v44, 0.0  ;;  %v2820_v42 = vpop.permute.xlu0 %2819 }
 0x2df   : > { %v2121_v4 = vmul.f32 %v2807_v12, %v3231_v39  ;;  %v2113_v54 = vmul.f32 %v2806_v5, %v3149_v8  ;;  %v2747_v39 = vunpack.i.h.bf16 %v3910_v46  ;;  %v2767_v8 = vunpack.i.h.bf16 %v3945_v25 }
 0x2e0   : > { %2218 = vadd.xlane.f32.xlu0 %v2217_v51  ;;  %2215 = vadd.xlane.f32.xlu1 %v2214_v9  ;;  %v2812_v51 = vunpack.i.h.bf16 %v2810_v20  ;;  %v2811_v9 = vunpack.i.l.bf16 %v2810_v20  ;;  %v2815_v28 = vpop.permute.xlu1 %2814  ;;  %v1753_v46 = vsel %vm816_vm1, %v1695_v14, 0.0 }
 0x2e1   : > { %v2175_v40 = vsel %vm816_vm1, %v2121_v4, 0.0  ;;  %v2151_v33 = vsel %vm816_vm1, %v2113_v54, 0.0  ;;  %v2816_v3 = vunpack.i.l.bf16 %v2815_v28  ;;  %v1688_v4 = vmul.f32 %v2711_v27, %v3185_v30 }
 0x2e2   : > { %v2129_v36 = vmul.f32 %v2811_v9, %v4478_v1  ;;  %v1703_v1 = vmul.f32 %v2747_v39, %v4479_v35  ;;  %v1696_v9 = vmul.f32 %v2731_v17, %v3275_v13 }
 0x2e3   : > { %v2114_v44 = vmul.f32 %v2816_v3, %v3160_v59  ;;  %v2771_v59 = vunpack.i.l.bf16 %v3941_v53 }
 0x2e4   : > { %1772 = vadd.xlane.f32.xlu0 %v1771_v52  ;;  %1748 = vadd.xlane.f32.xlu1 %v1747_v11  ;;  %v2707_v11 = vunpack.i.h.bf16 %v3839_v32  ;;  %v2137_v52 = vmul.f32 %v2812_v51, %v4486_v7  ;;  %v2199_v32 = vsel %vm816_vm1, %v2129_v36, 0.0  ;;  %v1711_v7 = vmul.f32 %v2767_v8, %v4487_v50  ;;  %v2825_v21 = vpop.permute.xlu1 %2824 }
 0x2e5   : > { %v1777_v2 = vsel %vm816_vm1, %v1703_v1, 0.0  ;;  %v2154_v5 = vsel %vm816_vm1, %v2114_v44, 0.0  ;;  %v2827_v54 = vunpack.i.h.bf16 %v2825_v21  ;;  %v1756_v45 = vsel %vm816_vm1, %v1696_v9, 0.0 }
 0x2e6   : > { %v2223_v58 = vsel %vm816_vm1, %v2137_v52, 0.0  ;;  %v1801_v55 = vsel %vm816_vm1, %v1711_v7, 0.0  ;;  %v2732_v7 = vunpack.i.h.bf16 %v3912_v37 }
 0x2e8   : > { %2149 = vadd.xlane.f32.xlu0 %v2148_v60  ;;  %1796 = vadd.xlane.f32.xlu1 %v1795_v31  ;;  %v1687_v31 = vmul.f32 %v2707_v11, %v3162_v62  ;;  %v2817_v60 = vunpack.i.h.bf16 %v2815_v28  ;;  %v4036_v20 = vpop.permute.xlu1 %2834  ;;  %v2826_v11 = vunpack.i.l.bf16 %v2825_v21  ;;  %v2712_v28 = vunpack.i.h.bf16 %v3906_v16 }
 0x2e9   : > { %v1697_v37 = vmul.f32 %v2732_v7, %v4472_v57 }
 0x2ea   : > { %v1729_v25 = vsel %vm816_vm1, %v1687_v31, 0.0  ;;  %v2122_v24 = vmul.f32 %v2817_v60, %v3249_v18  ;;  %v2751_v18 = vunpack.i.l.bf16 %v3925_v0  ;;  %v2115_v14 = vmul.f32 %v2826_v11, %v3162_v62 }
 0x2eb   : > { %v2752_v62 = vunpack.i.h.bf16 %v3925_v0 }
 0x2ec   : > { %2197 = vadd.xlane.f32.xlu0 %v2196_v22  ;;  %2173 = vadd.xlane.f32.xlu1 %v2172_v63  ;;  %v2822_v22 = vunpack.i.h.bf16 %v2820_v42  ;;  %v2821_v63 = vunpack.i.l.bf16 %v2820_v42  ;;  %v2178_v12 = vsel %vm816_vm1, %v2122_v24, 0.0  ;;  %v2157_v3 = vsel %vm816_vm1, %v2115_v14, 0.0 }
 0x2ed   : > { %v1705_v21 = vmul.f32 %v2752_v62, %v4482_v41 }
 0x2f0   : > { %1751 = vadd.xlane.f32.xlu0 %v1750_v49  ;;  %2221 = vadd.xlane.f32.xlu1 %v2220_v61  ;;  %v2138_v49 = vmul.f32 %v2822_v22, %v4484_v47  ;;  %v2130_v61 = vmul.f32 %v2821_v63, %v4476_v56  ;;  %v1712_v56 = vmul.f32 %v2771_v59, %v4485_v19  ;;  %v2836_v63 = vunpack.i.l.bf16 %v4036_v20 }
 0x2f1   : > { %v1704_v47 = vmul.f32 %v2751_v18, %v4477_v38 }
 0x2f2   : > { %v2202_v51 = vsel %vm816_vm1, %v2130_v61, 0.0  ;;  %v1804_v36 = vsel %vm816_vm1, %v1712_v56, 0.0 }
 0x2f3   : > { %v1780_v39 = vsel %vm816_vm1, %v1704_v47, 0.0 }
 0x2f4   : > { %1799 = vadd.xlane.f32.xlu0 %v1798_v15  ;;  %1775 = vadd.xlane.f32.xlu1 %v1774_v48  ;;  %v2830_v15 = vpop.permute.xlu0 %2829  ;;  %v2226_v48 = vsel %vm816_vm1, %v2138_v49, 0.0 }
 0x2f5   : > { %v2832_v8 = vunpack.i.h.bf16 %v2830_v15 }
 0x2f8   : > { %2176 = vadd.xlane.f32.xlu0 %v2175_v40  ;;  %2152 = vadd.xlane.f32.xlu1 %v2151_v33  ;;  %v1732_v40 = vsel %vm816_vm1, %v1688_v4, 0.0  ;;  %v4046_v33 = vpop.permute.xlu1 %2844  ;;  %v4048_v52 = vpop.permute.xlu0 %2839 }
 0x2f9   : > { %v2841_v9 = vunpack.i.l.bf16 %v4048_v52  ;;  %v2846_v11 = vunpack.i.l.bf16 %v4046_v33 }
 0x2fc   : > { %2224 = vadd.xlane.f32.xlu0 %v2223_v58  ;;  %2200 = vadd.xlane.f32.xlu1 %v2199_v32  ;;  %v2831_v58 = vunpack.i.l.bf16 %v2830_v15  ;;  %v2123_v32 = vmul.f32 %v2827_v54, %v3251_v26  ;;  %v4056_v1 = vpop.permute.xlu0 %2849  ;;  %v2772_v26 = vunpack.i.h.bf16 %v3941_v53  ;;  %v2837_v53 = vunpack.i.h.bf16 %v4036_v20 }
 0x2fd   : > { %v1783_v20 = vsel %vm816_vm1, %v1705_v21, 0.0  ;;  %v2847_v54 = vunpack.i.h.bf16 %v4046_v33  ;;  %v2851_v14 = vunpack.i.l.bf16 %v4056_v1 }
 0x2fe   : > { %v2181_v60 = vsel %vm816_vm1, %v2123_v32, 0.0  ;;  %v1713_v44 = vmul.f32 %v2772_v26, %v4488_v43  ;;  %v2124_v15 = vmul.f32 %v2837_v53, %v3275_v13  ;;  %v2117_v32 = vmul.f32 %v2846_v11, %v3187_v34 }
 0x2ff   : > { %v2125_v33 = vmul.f32 %v2847_v54, %v4472_v57 }
 0x300   : > { %1754 = vadd.xlane.f32.xlu0 %v1753_v46  ;;  %1730 = vadd.xlane.f32.xlu1 %v1729_v25  ;;  %v2139_v46 = vmul.f32 %v2832_v8, %v4487_v50  ;;  %v2131_v25 = vmul.f32 %v2831_v58, %v4479_v35  ;;  %v1807_v59 = vsel %vm816_vm1, %v1713_v44, 0.0  ;;  %v2184_v13 = vsel %vm816_vm1, %v2124_v15, 0.0 }
 0x301   : > { %v2852_v8 = vunpack.i.h.bf16 %v4056_v1  ;;  %v2187_v7 = vsel %vm816_vm1, %v2125_v33, 0.0 }
 0x302   : > { %v2229_v50 = vsel %vm816_vm1, %v2139_v46, 0.0  ;;  %v2205_v35 = vsel %vm816_vm1, %v2131_v25, 0.0 }
 0x303   : > { %v2141_v57 = vmul.f32 %v2852_v8, %v4488_v43 }
 0x304   : > { %1802 = vadd.xlane.f32.xlu0 %v1801_v55  ;;  %1778 = vadd.xlane.f32.xlu1 %v1777_v2  ;;  %v1689_v55 = vmul.f32 %v2712_v28, %v3187_v34  ;;  %v2133_v34 = vmul.f32 %v2851_v14, %v4482_v41 }
 0x305   : > { %v2235_v1 = vsel %vm816_vm1, %v2141_v57, 0.0 }
 0x308   : > { %2179 = vadd.xlane.f32.xlu0 %v2178_v12  ;;  %2155 = vadd.xlane.f32.xlu1 %v2154_v5  ;;  %v1759_v12 = vsel %vm816_vm1, %v1697_v37, 0.0  ;;  %v1735_v5 = vsel %vm816_vm1, %v1689_v55, 0.0 }
 0x30c   : > { %2227 = vadd.xlane.f32.xlu0 %v2226_v48  ;;  %2203 = vadd.xlane.f32.xlu1 %v2202_v51  ;;  %v2116_v48 = vmul.f32 %v2836_v63, %v3185_v30  ;;  %v2842_v51 = vunpack.i.h.bf16 %v4048_v52 }
 0x30e   : > { %v1740_v31 = vpop.xlane.xlu1 %1739  ;;  %v2140_v52 = vmul.f32 %v2842_v51, %v4485_v19 }
 0x30f   : > { %v1877_v2 = vrot.slane %v1740_v31, %v2919_v6 }
 0x310   : > { %1757 = vadd.xlane.f32.xlu0 %v1756_v45  ;;  %1733 = vadd.xlane.f32.xlu1 %v1732_v40  ;;  %v2160_v40 = vsel %vm816_vm1, %v2116_v48, 0.0  ;;  %v2232_v19 = vsel %vm816_vm1, %v2140_v52, 0.0 }
 0x312   : > { %v1767_v42 = vpop.xlane.xlu1 %1766 }
 0x313   : > { %v1913_v27 = vrot.slane %v1767_v42, %v2919_v6 }
 0x314   : > { %1805 = vadd.xlane.f32.xlu0 %v1804_v36  ;;  %1781 = vadd.xlane.f32.xlu1 %v1780_v39  ;;  %v2132_v36 = vmul.f32 %v2841_v9, %v4477_v38 }
 0x316   : > { %v1791_v49 = vpop.xlane.xlu1 %1790  ;;  %v2208_v38 = vsel %vm816_vm1, %v2132_v36, 0.0 }
 0x317   : > { %v1945_v4 = vrot.slane %v1791_v49, %v2919_v6 }
 0x318   : > { %2182 = vadd.xlane.f32.xlu0 %v2181_v60  ;;  %2158 = vadd.xlane.f32.xlu1 %v2157_v3  ;;  %v2163_v60 = vsel %vm816_vm1, %v2117_v32, 0.0  ;;  %v2211_v3 = vsel %vm816_vm1, %v2133_v34, 0.0 }
 0x31a   : > { %v4117_v46 = vpop.xlane.xlu1 %1769 }
 0x31b   : > { %v1743_v16 = vpop.xlane.xlu0 %1742 }
 0x31c   : > { %v1881_v22 = vrot.slane %v1743_v16, %v2919_v6  ;;  %2230 = vadd.xlane.f32.xlu0 %v2229_v50  ;;  %2206 = vadd.xlane.f32.xlu1 %v2205_v35 }
 0x31e   : > { %v1977_v0 = vsel %vm1075_vm2, %v1881_v22, %v1877_v2 }
 0x31f   : > { %v1764_v24 = vpop.xlane.xlu0 %1763 }
 0x320   : > { %v1909_v17 = vrot.slane %v1764_v24, %v2919_v6  ;;  %1760 = vadd.xlane.f32.xlu0 %v1759_v12  ;;  %1736 = vadd.xlane.f32.xlu1 %v1735_v5 }
 0x322   : > { %v4080_v61 = vsel %vm1075_vm2, %v1913_v27, %v1909_v17 }
 0x323   : > { %v1788_v18 = vpop.xlane.xlu0 %1787 }
 0x324   : > { %v1941_v56 = vrot.slane %v1788_v18, %v2919_v6  ;;  %1808 = vadd.xlane.f32.xlu0 %v1807_v59  ;;  %1784 = vadd.xlane.f32.xlu1 %v1783_v20 }
 0x326   : > { %v1991_v47 = vsel %vm1075_vm2, %v1945_v4, %v1941_v56 }
 0x327   : > { %v1746_v45 = vpop.xlane.xlu0 %1745 }
 0x328   : > { %v1885_v30 = vrot.slane %v1746_v45, %v2919_v6  ;;  %2185 = vadd.xlane.f32.xlu0 %v2184_v13  ;;  %2161 = vadd.xlane.f32.xlu1 %v2160_v40 }
 0x32a   : > { %v4099_v39 = vsel %vm1077_vm3, %v1885_v30, %v1977_v0 }
 0x32b   : > { %v1794_v58 = vpop.xlane.xlu0 %1793 }
 0x32c   : > { %v1949_v31 = vrot.slane %v1794_v58, %v2919_v6  ;;  %2233 = vadd.xlane.f32.xlu0 %v2232_v19  ;;  %2209 = vadd.xlane.f32.xlu1 %v2208_v38 }
 0x32e   : > { %v4109_v28 = vsel %vm1077_vm3, %v1949_v31, %v1991_v47 }
 0x330   : > { %2188 = vadd.xlane.f32.xlu0 %v2187_v7  ;;  %2164 = vadd.xlane.f32.xlu1 %v2163_v60 }
 0x334   : > { %2236 = vadd.xlane.f32.xlu0 %v2235_v1  ;;  %2212 = vadd.xlane.f32.xlu1 %v2211_v3 }
 0x35d   : > { %v2147_v25 = vpop.xlane.xlu0 %2146  ;;  %v2144_v62 = vpop.xlane.xlu1 %2143 }
 0x35e   : > { %v2277_v26 = vrot.slane %v2147_v25, %v2919_v6  ;;  %v2273_v42 = vrot.slane %v2144_v62, %v2919_v6 }
 0x360   : > { %v2398_v43 = vsel %vm1075_vm2, %v2277_v26, %v2273_v42  ;;  %v1917_v26 = vrot.slane %v4117_v46, %v2919_v6 }
 0x361   : > { %v2171_v16 = vpop.xlane.xlu0 %2170  ;;  %v2168_v41 = vpop.xlane.xlu1 %2167 }
 0x362   : > { %v2309_v37 = vrot.slane %v2171_v16, %v2919_v6  ;;  %v2305_v55 = vrot.slane %v2168_v41, %v2919_v6 }
 0x364   : > { %v4125_v2 = vsel %vm1075_vm2, %v2309_v37, %v2305_v55  ;;  %v1985_v37 = vsel %vm1077_vm3, %v1917_v26, %v4080_v61 }
 0x365   : > { %v2195_v22 = vpop.xlane.xlu0 %2194  ;;  %v2192_v50 = vpop.xlane.xlu1 %2191 }
 0x366   : > { %v2341_v35 = vrot.slane %v2195_v22, %v2919_v6  ;;  %v2337_v0 = vrot.slane %v2192_v50, %v2919_v6 }
 0x368   : > { %v2412_v53 = vsel %vm1075_vm2, %v2341_v35, %v2337_v0 }
 0x369   : > { %v2219_v63 = vpop.xlane.xlu0 %2218  ;;  %v2216_v24 = vpop.xlane.xlu1 %2215 }
 0x36a   : > { %v2373_v44 = vrot.slane %v2219_v63, %v2919_v6  ;;  %v2369_v21 = vrot.slane %v2216_v24, %v2919_v6 }
 0x36c   : > { %v4133_v27 = vsel %vm1075_vm2, %v2373_v44, %v2369_v21 }
 0x36d   : > { %v4135_v17 = vpop.xlane.xlu0 %1772  ;;  %v1749_v12 = vpop.xlane.xlu1 %1748 }
 0x36e   : > { %v1889_v57 = vrot.slane %v1749_v12, %v2919_v6  ;;  %v1921_v55 = vrot.slane %v4135_v17, %v2919_v6 }
 0x371   : > { %v2150_v5 = vpop.xlane.xlu0 %2149  ;;  %v1797_v49 = vpop.xlane.xlu1 %1796 }
 0x372   : > { %v2281_v18 = vrot.slane %v2150_v5, %v2919_v6  ;;  %v1953_v1 = vrot.slane %v1797_v49, %v2919_v6  ;;  %v1986_v49 = vsel %vm1079_vm4, %v1921_v55, %v1985_v37 }
 0x374   : > { %v4139_v59 = vsel %vm1077_vm3, %v2281_v18, %v2398_v43  ;;  %v1979_v43 = vsel %vm1079_vm4, %v1889_v57, %v4099_v39  ;;  %v1993_v46 = vsel %vm1079_vm4, %v1953_v1, %v4109_v28 }
 0x375   : > { %v2198_v20 = vpop.xlane.xlu0 %2197  ;;  %v4141_v15 = vpop.xlane.xlu1 %2173 }
 0x376   : > { %v2345_v48 = vrot.slane %v2198_v20, %v2919_v6 }
 0x378   : > { %v4145_v51 = vsel %vm1077_vm3, %v2345_v48, %v2412_v53 }
 0x379   : > { %v1752_v9 = vpop.xlane.xlu0 %1751  ;;  %v4147_v4 = vpop.xlane.xlu1 %2221 }
 0x37a   : > { %v1893_v34 = vrot.slane %v1752_v9, %v2919_v6 }
 0x37c   : > { %v1980_v22 = vsel %vm1081_vm5, %v1893_v34, %v1979_v43  ;;  %v2377_v43 = vrot.slane %v4147_v4, %v2919_v6 }
 0x37d   : > { %v1800_v56 = vpop.xlane.xlu0 %1799  ;;  %v1776_v47 = vpop.xlane.xlu1 %1775 }
 0x37e   : > { %v1957_v50 = vrot.slane %v1800_v56, %v2919_v6  ;;  %v1925_v35 = vrot.slane %v1776_v47, %v2919_v6 }
 0x380   : > { %v1994_v18 = vsel %vm1081_vm5, %v1957_v50, %v1993_v46  ;;  %v1987_v48 = vsel %vm1081_vm5, %v1925_v35, %v1986_v49 }
 0x381   : > { %v4149_v54 = vpop.xlane.xlu0 %2176  ;;  %v4151_v11 = vpop.xlane.xlu1 %2152 }
 0x385   : > { %v4153_v45 = vpop.xlane.xlu0 %2224  ;;  %v4155_v13 = vpop.xlane.xlu1 %2200 }
 0x386   : > { %v2381_v37 = vrot.slane %v4153_v45, %v2919_v6  ;;  %v2349_v55 = vrot.slane %v4155_v13, %v2919_v6  ;;  %v2420_v45 = vsel %vm1077_vm3, %v2377_v43, %v4133_v27 }
 0x388   : > { %v2421_v35 = vsel %vm1079_vm4, %v2381_v37, %v2420_v45  ;;  %v4553_v45 = vld [vmem:[#allocation36_spill] sm:$0xff] }
 0x389   : > { %v1755_v30 = vpop.xlane.xlu0 %1754  ;;  %v1731_v40 = vpop.xlane.xlu1 %1730 }
 0x38a   : > { %v1897_v3 = vrot.slane %v1755_v30, %v2919_v6  ;;  %v1865_v42 = vrot.slane %v1731_v40, %v2919_v6 }
 0x38c   : > { %v1981_v39 = vsel %vm1083_vm6, %v1897_v3, %v1980_v22  ;;  %v1974_v61 = vsel %vm1083_vm6, %v1865_v42, %v3962_v23  ;;  %v2313_v42 = vrot.slane %v4141_v15, %v2919_v6 }
 0x38d   : > { %v1803_v52 = vpop.xlane.xlu0 %1802  ;;  %v1779_v36 = vpop.xlane.xlu1 %1778 }
 0x38e   : > { %v1961_v0 = vrot.slane %v1803_v52, %v2919_v6  ;;  %v1929_v24 = vrot.slane %v1779_v36, %v2919_v6 }
 0x390   : > { %v1995_v9 = vsel %vm1083_vm6, %v1961_v0, %v1994_v18  ;;  %v1988_v52 = vsel %vm1083_vm6, %v1929_v24, %v1987_v48 }
 0x391   : > { %v4157_v8 = vpop.xlane.xlu0 %2179  ;;  %v4159_v58 = vpop.xlane.xlu1 %2155 }
 0x392   : > { %v2321_v15 = vrot.slane %v4157_v8, %v2919_v6  ;;  %v2289_v4 = vrot.slane %v4159_v58, %v2919_v6 }
 0x395   : > { %v4161_v33 = vpop.xlane.xlu0 %2227  ;;  %v4163_v32 = vpop.xlane.xlu1 %2203 }
 0x396   : > { %v2385_v27 = vrot.slane %v4161_v33, %v2919_v6  ;;  %v2353_v0 = vrot.slane %v4163_v32, %v2919_v6 }
 0x399   : > { %v1758_v14 = vpop.xlane.xlu0 %1757  ;;  %v1734_v31 = vpop.xlane.xlu1 %1733 }
 0x39a   : > { %v1901_v16 = vrot.slane %v1758_v14, %v2919_v6  ;;  %v1869_v41 = vrot.slane %v1734_v31, %v2919_v6 }
 0x39c   : > { %v1982_v12 = vsel %vm1085_vm7, %v1901_v16, %v1981_v39  ;;  %v1975_v5 = vsel %vm1085_vm7, %v1869_v41, %v1974_v61  ;;  %v2317_v16 = vrot.slane %v4149_v54, %v2919_v6  ;;  %v2285_v41 = vrot.slane %v4151_v11, %v2919_v6 }
 0x39d   : > { %v1806_v19 = vpop.xlane.xlu0 %1805  ;;  %v1782_v38 = vpop.xlane.xlu1 %1781  ;;  %v2406_v11 = vsel %vm1077_vm3, %v2313_v42, %v4125_v2  ;;  %v2414_v2 = vsel %vm1079_vm4, %v2349_v55, %v4145_v51 }
 0x39e   : > { %v1965_v17 = vrot.slane %v1806_v19, %v2919_v6  ;;  %v1933_v28 = vrot.slane %v1782_v38, %v2919_v6  ;;  %v2407_v46 = vsel %vm1079_vm4, %v2317_v16, %v2406_v11  ;;  %v2400_v8 = vsel %vm1079_vm4, %v2285_v41, %v4139_v59 }
 0x39f   : > { %v2408_v39 = vsel %vm1081_vm5, %v2321_v15, %v2407_v46 }
 0x3a0   : > { %v1996_v31 = vsel %vm1085_vm7, %v1965_v17, %v1995_v9  ;;  %v1989_v19 = vsel %vm1085_vm7, %v1933_v28, %v1988_v52  ;;  %v2882_v9 = vmov 0.0  }
 0x3a1   : > { %v4165_v7 = vpop.xlane.xlu0 %2182  ;;  %v4167_v60 = vpop.xlane.xlu1 %2158  ;;  %204 = vst.msk [vmem:[#allocation2 + $0x8] sm:$0xff] %vm202_vm0, %v2882_v9  ;;  %203 = vst.msk [vmem:[#allocation2] sm:$0xff] %vm202_vm0, %v2882_v9 }
 0x3a2   : > { %v2325_v22 = vrot.slane %v4165_v7, %v2919_v6  ;;  %v2293_v13 = vrot.slane %v4167_v60, %v2919_v6  ;;  %v2401_v60 = vsel %vm1081_vm5, %v2289_v4, %v2400_v8  ;;  %205 = vst.msk [vmem:[#allocation2 + $0x10] sm:$0xff] %vm202_vm0, %v2882_v9  ;;  %206 = vst.msk [vmem:[#allocation2 + $0x18] sm:$0xff] %vm202_vm0, %v2882_v9 }
 0x3a4   : > { %v2409_v59 = vsel %vm1083_vm6, %v2325_v22, %v2408_v39  ;;  %v2402_v24 = vsel %vm1083_vm6, %v2293_v13, %v2401_v60  ;;  %v4554_v13 = vld [vmem:[#allocation60_spill] sm:$0xff] }
 0x3a5   : > { %v4173_v25 = vpop.xlane.xlu0 %2230  ;;  %v4175_v62 = vpop.xlane.xlu1 %2206  ;;  %v2446_v46 = vsel %vm2442_vm9, %v4554_v13, %v4553_v45 }
 0x3a6   : > { %v2357_v51 = vrot.slane %v4175_v62, %v2919_v6  ;;  %v2415_v62 = vsel %vm1081_vm5, %v2353_v0, %v2414_v2 }
 0x3a8   : > { %v2458_v43 = vld [vmem:[#allocation2 + $0x8] sm:$0xff]  ;;  %v2457_v16 = vld [vmem:[#allocation2] sm:$0xff] }
 0x3a9   : > { %v1761_v53 = vpop.xlane.xlu0 %1760  ;;  %v1737_v63 = vpop.xlane.xlu1 %1736  ;;  %v2460_v8 = vld [vmem:[#allocation2 + $0x18] sm:$0xff] }
 0x3aa   : > { %v1905_v44 = vrot.slane %v1761_v53, %v2919_v6  ;;  %v1873_v21 = vrot.slane %v1737_v63, %v2919_v6  ;;  %v2389_v53 = vrot.slane %v4173_v25, %v2919_v6  ;;  %v2422_v25 = vsel %vm1081_vm5, %v2385_v27, %v2421_v35 }
 0x3ac   : > { %v1983_v23 = vsel %vm1087_vm8, %v1905_v44, %v1982_v12  ;;  %v1976_v20 = vsel %vm1087_vm8, %v1873_v21, %v1975_v5  ;;  %v2423_v49 = vsel %vm1083_vm6, %v2389_v53, %v2422_v25 }
 0x3ad   : > { %v1809_v56 = vpop.xlane.xlu0 %1808  ;;  %v1785_v47 = vpop.xlane.xlu1 %1784  ;;  %v2005_v30 = vsel %vm202_vm0, %v1983_v23, 0.0  ;;  %v2002_v40 = vsel %vm202_vm0, %v1976_v20, 0.0 }
 0x3ae   : > { %v1969_v36 = vrot.slane %v1809_v56, %v2919_v6  ;;  %v1937_v14 = vrot.slane %v1785_v47, %v2919_v6  ;;  %2006 = vadd.xlane.f32.xlu0 %v2005_v30  ;;  %2003 = vadd.xlane.f32.xlu1 %v2002_v40  ;;  %v2416_v56 = vsel %vm1083_vm6, %v2357_v51, %v2415_v62 }
 0x3b0   : > { %v1997_v38 = vsel %vm1087_vm8, %v1969_v36, %v1996_v31  ;;  %v1990_v57 = vsel %vm1087_vm8, %v1937_v14, %v1989_v19 }
 0x3b1   : > { %v2186_v34 = vpop.xlane.xlu0 %2185  ;;  %v2162_v1 = vpop.xlane.xlu1 %2161  ;;  %v2011_v3 = vsel %vm202_vm0, %v1997_v38, 0.0  ;;  %v2008_v26 = vsel %vm202_vm0, %v1990_v57, 0.0 }
 0x3b2   : > { %2012 = vadd.xlane.f32.xlu0 %v2011_v3  ;;  %2009 = vadd.xlane.f32.xlu1 %v2008_v26  ;;  %v2329_v58 = vrot.slane %v2186_v34, %v2919_v6  ;;  %v2297_v7 = vrot.slane %v2162_v1, %v2919_v6  ;;  %v2443_v1 = vsel %vm2442_vm9, %v3793_v29, %v3943_v10  ;;  %v4549_v3 = vld [vmem:[#allocation31_spill] sm:$0xff]  ;;  %v4550_v26 = vld [vmem:[#allocation25_spill] sm:$0xff] }
 0x3b3   : > { %v2444_v42 = vsel %vm2442_vm9, %v4550_v26, %v4549_v3  ;;  %v4551_v29 = vld [vmem:[#allocation61_spill] sm:$0xff] }
 0x3b4   : > { %v2410_v17 = vsel %vm1085_vm7, %v2329_v58, %v2409_v59  ;;  %v2403_v28 = vsel %vm1085_vm7, %v2297_v7, %v2402_v24  ;;  %v4552_v10 = vld [vmem:[#allocation21_spill] sm:$0xff] }
 0x3b5   : > { %v2234_v50 = vpop.xlane.xlu0 %2233  ;;  %v2210_v54 = vpop.xlane.xlu1 %2209  ;;  %v2445_v11 = vsel %vm2442_vm9, %v4552_v10, %v4551_v29  ;;  %v2459_v58 = vld [vmem:[#allocation2 + $0x10] sm:$0xff] }
 0x3b6   : > { %v2393_v21 = vrot.slane %v2234_v50, %v2919_v6  ;;  %v2361_v32 = vrot.slane %v2210_v54, %v2919_v6 }
 0x3b8   : > { %v2424_v40 = vsel %vm1085_vm7, %v2393_v21, %v2423_v49  ;;  %v2417_v52 = vsel %vm1085_vm7, %v2361_v32, %v2416_v56 }
 0x3b9   : > { %v2189_v63 = vpop.xlane.xlu0 %2188  ;;  %v2165_v61 = vpop.xlane.xlu1 %2164 }
 0x3ba   : > { %v2333_v44 = vrot.slane %v2189_v63, %v2919_v6  ;;  %v2301_v33 = vrot.slane %v2165_v61, %v2919_v6 }
 0x3bc   : > { %v2411_v12 = vsel %vm1087_vm8, %v2333_v44, %v2410_v17  ;;  %v2404_v5 = vsel %vm1087_vm8, %v2301_v33, %v2403_v28 }
 0x3bd   : > { %v2237_v18 = vpop.xlane.xlu0 %2236  ;;  %v2213_v23 = vpop.xlane.xlu1 %2212  ;;  %v2433_v20 = vsel %vm202_vm0, %v2411_v12, 0.0  ;;  %v2430_v48 = vsel %vm202_vm0, %v2404_v5, 0.0 }
 0x3be   : > { %v2397_v47 = vrot.slane %v2237_v18, %v2919_v6  ;;  %v2365_v30 = vrot.slane %v2213_v23, %v2919_v6  ;;  %2434 = vadd.xlane.f32.xlu0 %v2433_v20  ;;  %2431 = vadd.xlane.f32.xlu1 %v2430_v48 }
 0x3c0   : > { %v2425_v36 = vsel %vm1087_vm8, %v2397_v47, %v2424_v40  ;;  %v2418_v14 = vsel %vm1087_vm8, %v2365_v30, %v2417_v52 }
 0x3c1   : > { %v2439_v31 = vsel %vm202_vm0, %v2425_v36, 0.0  ;;  %v2436_v19 = vsel %vm202_vm0, %v2418_v14, 0.0 }
 0x3c2   : > { %2440 = vadd.xlane.f32.xlu0 %v2439_v31  ;;  %2437 = vadd.xlane.f32.xlu1 %v2436_v19 }
 0x437   : > { %v2007_v38 = vpop.xlane.xlu0 %2006  ;;  %v2004_v57 = vpop.xlane.xlu1 %2003 }
 0x438   : > { %v2449_v41 = vsel %vm2447_vm10, %v2444_v42, %v2007_v38  ;;  %v2448_v37 = vsel %vm2447_vm10, %v2443_v1, %v2004_v57 }
 0x43b   : > { %v2013_v6 = vpop.xlane.xlu0 %2012  ;;  %v2010_v34 = vpop.xlane.xlu1 %2009 }
 0x43c   : > { %v2451_v7 = vsel %vm2447_vm10, %v2446_v46, %v2013_v6  ;;  %v2450_v35 = vsel %vm2447_vm10, %v2445_v11, %v2010_v34 }
 0x447   : > { %v2435_v55 = vpop.xlane.xlu0 %2434  ;;  %v2432_v15 = vpop.xlane.xlu1 %2431 }
 0x448   : > { %v2454_v4 = vsel %vm2452_vm11, %v2449_v41, %v2435_v55  ;;  %v2453_v22 = vsel %vm2452_vm11, %v2448_v37, %v2432_v15 }
 0x449   : > { %v2462_v50 = vadd.f32 %v2458_v43, %v2454_v4  ;;  %v2461_v54 = vadd.f32 %v2457_v16, %v2453_v22 }
 0x44b   : > { %2466 = vst.msk [vmem:[#allocation2 + $0x8] sm:$0xff] %vm202_vm0, %v2462_v50  ;;  %2465 = vst.msk [vmem:[#allocation2] sm:$0xff] %vm202_vm0, %v2461_v54  ;;  %v2441_v2 = vpop.xlane.xlu0 %2440  ;;  %v2438_v39 = vpop.xlane.xlu1 %2437 }
 0x44c   : > { %v2456_v27 = vsel %vm2452_vm11, %v2451_v7, %v2441_v2  ;;  %v2455_v60 = vsel %vm2452_vm11, %v2450_v35, %v2438_v39 }
 0x44d   : > { %v2464_v0 = vadd.f32 %v2460_v8, %v2456_v27  ;;  %v2463_v59 = vadd.f32 %v2459_v58, %v2455_v60 }
 0x44f   : > { %2468 = vst.msk [vmem:[#allocation2 + $0x18] sm:$0xff] %vm202_vm0, %v2464_v0  ;;  %2467 = vst.msk [vmem:[#allocation2 + $0x10] sm:$0xff] %vm202_vm0, %v2463_v59 }
 0x452   : > { %v2473_v53 = vld [vmem:[#allocation2 + $0x8] sm:$0xff]  ;;  %v2472_v63 = vld [vmem:[#allocation2] sm:$0xff] }
 0x453   : > { %2477 = vst.msk [vmem:[%s197_s27 + $0x8] sm:$0xff] %vm202_vm0, %v2473_v53  ;;  %2476 = vst.msk [vmem:[%s197_s27] sm:$0xff] %vm202_vm0, %v2472_v63 }
 0x456   : > { %v2475_v61 = vld [vmem:[#allocation2 + $0x18] sm:$0xff]  ;;  %v2474_v24 = vld [vmem:[#allocation2 + $0x10] sm:$0xff] }
 0x457   : > { %2479 = vst.msk [vmem:[%s197_s27 + $0x18] sm:$0xff] %vm202_vm0, %v2475_v61  ;;  %2478 = vst.msk [vmem:[%s197_s27 + $0x10] sm:$0xff] %vm202_vm0, %v2474_v24 }
 0x458 PF: > { %s12_s11 = sadd.s32 1, %s2875_s11   ;;  %s4555_s9 = smov %s2871_s10 }
 0x459   : > { %p9_p5 = scmp.ge.s32.totalorder %s12_s11, 4   ;;  %s4556_s10 = smov %s4558_s12 }
 0x45b   :  { %11 = sbr.rel (!%p9_p5) target bundleno = 2 (0x2), region = 69 }

// kernel: all_model_forward.8
= control target key start
LH: loop header
LB: loop body
LE: loop exit
PB: predicated region body
PF: predicated region fallthrough
CT: control target
= control target key end

     0   :  { %vm66_vm0 = vcmask 261120   ;;  %s327_s1 = inlined_call_operand.vmem [shape: bf16[32,128], index: 1, kind: input, shape index: {}]   ;;  %s328_s0 = inlined_call_operand.vmem [shape: bf16[64,32], index: 0, kind: input, shape index: {}]   ;;  %s329_s2 = inlined_call_operand.vmem [shape: f32[1,128], index: 2, kind: input, shape index: {}]   ;;  %s330_s3 = inlined_call_operand.vmem [shape: bf16[64,128], index: 3, kind: output, shape index: {}]  }
   0x1   :  { %v268_v0 = vld [vmem:[%s327_s1 + $0x8] sm:$0xff]   ;;  %v269_v1 = vld [vmem:[%s327_s1] sm:$0xff]   ;;  %v271_v3 = vld [vmem:[%s328_s0 + $0x10] sm:$0xff]  }
   0x2   :  { %252 = vmatprep.subr.bf16.mxu0 %v268_v0  ;;  %264 = vmatprep.subr.bf16.mxu1 %v268_v0  ;;  %v270_v2 = vld [vmem:[%s328_s0] sm:$0xff]   ;;  %v272_v4 = vld [vmem:[%s328_s0 + $0x8] sm:$0xff]   ;;  %v273_v5 = vld [vmem:[%s328_s0 + $0x18] sm:$0xff]  }
   0x3   :  { %253 = vmatpush3.bf16.msra.mxu0 %v268_v0  ;;  %266 = vmatpush3.bf16.msra.mxu1 %v268_v0  ;;  %v196_v6 = vld [vmem:[%s329_s2] ss:$0 sm:$0xff] }
   0x4   :  { %254 = vmatprep.subr.bf16.mxu0 %v269_v1  ;;  %265 = vmatprep.subr.bf16.mxu1 %v269_v1 }
   0x5   :  { %256 = vmatprep.mubr.msk.bf16.mxu0 %vm66_vm0, %v270_v2  ;;  %260 = vmatprep.mubr.msk.bf16.mxu1 %vm66_vm0, %v271_v3 }
   0x7   :  { %255 = vmatpush3.bf16.msra.mxu0 %v269_v1  ;;  %267 = vmatpush3.bf16.msra.mxu1 %v269_v1 }
   0xa   :  { %257 = vmatmul.mubr.msk.bf16.vlgmr.msra.gmra.mxu0 %vm66_vm0, %v272_v4  ;;  %261 = vmatmul.mubr.msk.bf16.vlgmr.msra.gmra.mxu1 %vm66_vm0, %v273_v5 }
  0xca   :  { %v258_v7 = vpop.f32.mrf.mxu0  ;;  %v262_v8 = vpop.f32.mrf.mxu1 }
  0xcb   :  { %v122_v9 = vadd.f32 %v258_v7, %v196_v6  ;;  %v138_v10 = vadd.f32 %v262_v8, %v196_v6 }
  0xcc   :  { %v113_v11 = vpop.f32.mrf.mxu0  ;;  %v129_v12 = vpop.f32.mrf.mxu1 }
  0xcd   :  { %v114_v13 = vadd.f32 %v196_v6, %v113_v11  ;;  %v130_v14 = vadd.f32 %v196_v6, %v129_v12  ;;  %v146_v19 = vmax.f32 %v122_v9, 0.0  ;;  %v150_v20 = vmax.f32 %v138_v10, 0.0 }
  0xce   :  { %v259_v15 = vpop.f32.mrf.mxu0  ;;  %v263_v16 = vpop.f32.mrf.mxu1 }
  0xcf   :  { %v125_v17 = vadd.f32 %v259_v15, %v196_v6  ;;  %v141_v18 = vadd.f32 %v263_v16, %v196_v6  ;;  %v144_v27 = vmax.f32 %v114_v13, 0.0  ;;  %v148_v28 = vmax.f32 %v130_v14, 0.0 }
  0xd0   :  { %v116_v21 = vpop.f32.mrf.mxu0  ;;  %v132_v22 = vpop.f32.mrf.mxu1 }
  0xd1   :  { %v147_v23 = vmax.f32 %v125_v17, 0.0  ;;  %v151_v24 = vmax.f32 %v141_v18, 0.0  ;;  %v117_v25 = vadd.f32 %v196_v6, %v116_v21  ;;  %v133_v26 = vadd.f32 %v196_v6, %v132_v22 }
  0xd3   :  { %v231_v29 = vpack.c.bf16 %v147_v23, %v146_v19  ;;  %v241_v30 = vpack.c.bf16 %v151_v24, %v150_v20  ;;  %v145_v31 = vmax.f32 %v117_v25, 0.0  ;;  %v149_v32 = vmax.f32 %v133_v26, 0.0 }
  0xd5   :  { %243 = vst [vmem:[%s330_s3 + $0x8] sm:$0xff] %v231_v29   ;;  %245 = vst [vmem:[%s330_s3 + $0x18] sm:$0xff] %v241_v30   ;;  %v226_v33 = vpack.c.bf16 %v145_v31, %v144_v27  ;;  %v236_v34 = vpack.c.bf16 %v149_v32, %v148_v28 }
  0xd7   :  { %227 = vst [vmem:[%s330_s3] sm:$0xff] %v226_v33   ;;  %244 = vst [vmem:[%s330_s3 + $0x10] sm:$0xff] %v236_v34  }

// kernel: all_model_forward.9
= control target key start
LH: loop header
LB: loop body
LE: loop exit
PB: predicated region body
PF: predicated region fallthrough
CT: control target
= control target key end

     0   :  { %vm150_vm0 = vcmask 261120   ;;  %s730_s1 = inlined_call_operand.vmem [shape: bf16[32,128], index: 1, kind: input, shape index: {}]   ;;  %s731_s0 = inlined_call_operand.vmem [shape: bf16[256,32], index: 0, kind: input, shape index: {}]   ;;  %s732_s2 = inlined_call_operand.vmem [shape: f32[1,128], index: 2, kind: input, shape index: {}]   ;;  %s733_s3 = inlined_call_operand.vmem [shape: f32[256,128], index: 3, kind: output, shape index: {}]  }
   0x1   :  { %v489_v0 = vld [vmem:[%s730_s1 + $0x8] sm:$0xff]   ;;  %v490_v1 = vld [vmem:[%s730_s1] sm:$0xff]   ;;  %v495_v6 = vld [vmem:[%s731_s0 + $0x10] sm:$0xff]  }
   0x2   :  { %449 = vmatprep.subr.bf16.mxu0 %v489_v0  ;;  %485 = vmatprep.subr.bf16.mxu1 %v489_v0  ;;  %v491_v2 = vld [vmem:[%s731_s0] sm:$0xff]   ;;  %v493_v4 = vld [vmem:[%s731_s0 + $0x8] sm:$0xff]   ;;  %v496_v7 = vld [vmem:[%s731_s0 + $0x50] sm:$0xff]  }
   0x3   :  { %450 = vmatpush3.bf16.msra.mxu0 %v489_v0  ;;  %487 = vmatpush3.bf16.msra.mxu1 %v489_v0  ;;  %v492_v3 = vld [vmem:[%s731_s0 + $0x40] sm:$0xff]   ;;  %v494_v5 = vld [vmem:[%s731_s0 + $0x48] sm:$0xff]   ;;  %v497_v8 = vld [vmem:[%s731_s0 + $0x18] sm:$0xff]  }
   0x4   :  { %451 = vmatprep.subr.bf16.mxu0 %v490_v1  ;;  %486 = vmatprep.subr.bf16.mxu1 %v490_v1  ;;  %v498_v9 = vld [vmem:[%s731_s0 + $0x58] sm:$0xff]   ;;  %v499_v10 = vld [vmem:[%s731_s0 + $0x20] sm:$0xff]   ;;  %v501_v12 = vld [vmem:[%s731_s0 + $0x28] sm:$0xff]  }
   0x5   :  { %453 = vmatprep.mubr.msk.bf16.mxu0 %vm150_vm0, %v491_v2  ;;  %469 = vmatprep.mubr.msk.bf16.mxu1 %vm150_vm0, %v492_v3  ;;  %v500_v11 = vld [vmem:[%s731_s0 + $0x60] sm:$0xff]   ;;  %v502_v13 = vld [vmem:[%s731_s0 + $0x68] sm:$0xff]   ;;  %v503_v14 = vld [vmem:[%s731_s0 + $0x30] sm:$0xff]  }
   0x6   :  { %v504_v15 = vld [vmem:[%s731_s0 + $0x70] sm:$0xff]   ;;  %v505_v16 = vld [vmem:[%s731_s0 + $0x38] sm:$0xff]   ;;  %v600_v18 = vld [vmem:[%s732_s2] ss:$0 sm:$0xff] }
   0x7   :  { %452 = vmatpush3.bf16.msra.mxu0 %v490_v1  ;;  %488 = vmatpush3.bf16.msra.mxu1 %v490_v1  ;;  %v506_v17 = vld [vmem:[%s731_s0 + $0x78] sm:$0xff]  }
   0xa   :  { %454 = vmatmul.mubr.msk.bf16.vlgmr.msra.gmra.mxu0 %vm150_vm0, %v493_v4  ;;  %470 = vmatmul.mubr.msk.bf16.vlgmr.msra.gmra.mxu1 %vm150_vm0, %v494_v5 }
   0xb   :  { %457 = vmatprep.mubr.msk.bf16.mxu0 %vm150_vm0, %v495_v6  ;;  %473 = vmatprep.mubr.msk.bf16.mxu1 %vm150_vm0, %v496_v7 }
  0x12   :  { %458 = vmatmul.mubr.msk.bf16.gmra.mxu0 %vm150_vm0, %v497_v8  ;;  %474 = vmatmul.mubr.msk.bf16.gmra.mxu1 %vm150_vm0, %v498_v9 }
  0x13   :  { %461 = vmatprep.mubr.msk.bf16.mxu0 %vm150_vm0, %v499_v10  ;;  %477 = vmatprep.mubr.msk.bf16.mxu1 %vm150_vm0, %v500_v11 }
  0x1a   :  { %462 = vmatmul.mubr.msk.bf16.gmra.mxu0 %vm150_vm0, %v501_v12  ;;  %478 = vmatmul.mubr.msk.bf16.gmra.mxu1 %vm150_vm0, %v502_v13 }
  0x1b   :  { %465 = vmatprep.mubr.msk.bf16.mxu0 %vm150_vm0, %v503_v14  ;;  %481 = vmatprep.mubr.msk.bf16.mxu1 %vm150_vm0, %v504_v15 }
  0x22   :  { %466 = vmatmul.mubr.msk.bf16.gmra.mxu0 %vm150_vm0, %v505_v16  ;;  %482 = vmatmul.mubr.msk.bf16.gmra.mxu1 %vm150_vm0, %v506_v17 }
  0xca   :  { %v455_v19 = vpop.f32.mrf.mxu0  ;;  %v471_v20 = vpop.f32.mrf.mxu1 }
  0xcb   :  { %v242_v21 = vadd.f32 %v455_v19, %v600_v18  ;;  %v306_v22 = vadd.f32 %v471_v20, %v600_v18 }
  0xcc   :  { %v233_v23 = vpop.f32.mrf.mxu0  ;;  %v297_v24 = vpop.f32.mrf.mxu1 }
  0xcd   :  { %362 = vst [vmem:[%s733_s3 + $0x10] sm:$0xff] %v242_v21  ;;  %378 = vst [vmem:[%s733_s3 + $0x90] sm:$0xff] %v306_v22  ;;  %v234_v25 = vadd.f32 %v600_v18, %v233_v23  ;;  %v298_v26 = vadd.f32 %v600_v18, %v297_v24 }
  0xce   :  { %v456_v27 = vpop.f32.mrf.mxu0  ;;  %v472_v28 = vpop.f32.mrf.mxu1 }
  0xcf   :  { %360 = vst [vmem:[%s733_s3] sm:$0xff] %v234_v25  ;;  %376 = vst [vmem:[%s733_s3 + $0x80] sm:$0xff] %v298_v26  ;;  %v245_v29 = vadd.f32 %v456_v27, %v600_v18  ;;  %v309_v30 = vadd.f32 %v472_v28, %v600_v18 }
  0xd0   :  { %v236_v31 = vpop.f32.mrf.mxu0  ;;  %v300_v32 = vpop.f32.mrf.mxu1 }
  0xd1   :  { %363 = vst [vmem:[%s733_s3 + $0x18] sm:$0xff] %v245_v29  ;;  %379 = vst [vmem:[%s733_s3 + $0x98] sm:$0xff] %v309_v30  ;;  %v237_v33 = vadd.f32 %v600_v18, %v236_v31  ;;  %v301_v34 = vadd.f32 %v600_v18, %v300_v32 }
  0xd2   :  { %v459_v35 = vpop.f32.mrf.mxu0  ;;  %v475_v36 = vpop.f32.mrf.mxu1 }
  0xd3   :  { %361 = vst [vmem:[%s733_s3 + $0x8] sm:$0xff] %v237_v33  ;;  %377 = vst [vmem:[%s733_s3 + $0x88] sm:$0xff] %v301_v34  ;;  %v258_v37 = vadd.f32 %v459_v35, %v600_v18  ;;  %v322_v38 = vadd.f32 %v475_v36, %v600_v18 }
  0xd4   :  { %v249_v39 = vpop.f32.mrf.mxu0  ;;  %v313_v40 = vpop.f32.mrf.mxu1 }
  0xd5   :  { %366 = vst [vmem:[%s733_s3 + $0x30] sm:$0xff] %v258_v37  ;;  %382 = vst [vmem:[%s733_s3 + $0xb0] sm:$0xff] %v322_v38  ;;  %v250_v41 = vadd.f32 %v600_v18, %v249_v39  ;;  %v314_v42 = vadd.f32 %v600_v18, %v313_v40 }
  0xd6   :  { %v460_v43 = vpop.f32.mrf.mxu0  ;;  %v476_v44 = vpop.f32.mrf.mxu1 }
  0xd7   :  { %364 = vst [vmem:[%s733_s3 + $0x20] sm:$0xff] %v250_v41  ;;  %380 = vst [vmem:[%s733_s3 + $0xa0] sm:$0xff] %v314_v42  ;;  %v261_v45 = vadd.f32 %v460_v43, %v600_v18  ;;  %v325_v46 = vadd.f32 %v476_v44, %v600_v18 }
  0xd8   :  { %v252_v47 = vpop.f32.mrf.mxu0  ;;  %v316_v48 = vpop.f32.mrf.mxu1 }
  0xd9   :  { %367 = vst [vmem:[%s733_s3 + $0x38] sm:$0xff] %v261_v45  ;;  %383 = vst [vmem:[%s733_s3 + $0xb8] sm:$0xff] %v325_v46  ;;  %v253_v49 = vadd.f32 %v600_v18, %v252_v47  ;;  %v317_v50 = vadd.f32 %v600_v18, %v316_v48 }
  0xda   :  { %v463_v51 = vpop.f32.mrf.mxu0  ;;  %v479_v52 = vpop.f32.mrf.mxu1 }
  0xdb   :  { %365 = vst [vmem:[%s733_s3 + $0x28] sm:$0xff] %v253_v49  ;;  %381 = vst [vmem:[%s733_s3 + $0xa8] sm:$0xff] %v317_v50  ;;  %v274_v53 = vadd.f32 %v463_v51, %v600_v18  ;;  %v338_v54 = vadd.f32 %v479_v52, %v600_v18 }
  0xdc   :  { %v265_v55 = vpop.f32.mrf.mxu0  ;;  %v329_v56 = vpop.f32.mrf.mxu1 }
  0xdd   :  { %370 = vst [vmem:[%s733_s3 + $0x50] sm:$0xff] %v274_v53  ;;  %386 = vst [vmem:[%s733_s3 + $0xd0] sm:$0xff] %v338_v54  ;;  %v266_v57 = vadd.f32 %v600_v18, %v265_v55  ;;  %v330_v58 = vadd.f32 %v600_v18, %v329_v56 }
  0xde   :  { %v464_v59 = vpop.f32.mrf.mxu0  ;;  %v480_v60 = vpop.f32.mrf.mxu1 }
  0xdf   :  { %368 = vst [vmem:[%s733_s3 + $0x40] sm:$0xff] %v266_v57  ;;  %384 = vst [vmem:[%s733_s3 + $0xc0] sm:$0xff] %v330_v58  ;;  %v277_v61 = vadd.f32 %v464_v59, %v600_v18  ;;  %v341_v62 = vadd.f32 %v480_v60, %v600_v18 }
  0xe0   :  { %v268_v63 = vpop.f32.mrf.mxu0  ;;  %v332_v0 = vpop.f32.mrf.mxu1 }
  0xe1   :  { %371 = vst [vmem:[%s733_s3 + $0x58] sm:$0xff] %v277_v61  ;;  %387 = vst [vmem:[%s733_s3 + $0xd8] sm:$0xff] %v341_v62  ;;  %v269_v1 = vadd.f32 %v600_v18, %v268_v63  ;;  %v333_v2 = vadd.f32 %v600_v18, %v332_v0 }
  0xe2   :  { %v467_v3 = vpop.f32.mrf.mxu0  ;;  %v483_v4 = vpop.f32.mrf.mxu1 }
  0xe3   :  { %369 = vst [vmem:[%s733_s3 + $0x48] sm:$0xff] %v269_v1  ;;  %385 = vst [vmem:[%s733_s3 + $0xc8] sm:$0xff] %v333_v2  ;;  %v290_v5 = vadd.f32 %v467_v3, %v600_v18  ;;  %v354_v6 = vadd.f32 %v483_v4, %v600_v18 }
  0xe4   :  { %v281_v7 = vpop.f32.mrf.mxu0  ;;  %v345_v8 = vpop.f32.mrf.mxu1 }
  0xe5   :  { %374 = vst [vmem:[%s733_s3 + $0x70] sm:$0xff] %v290_v5  ;;  %390 = vst [vmem:[%s733_s3 + $0xf0] sm:$0xff] %v354_v6  ;;  %v282_v9 = vadd.f32 %v600_v18, %v281_v7  ;;  %v346_v10 = vadd.f32 %v600_v18, %v345_v8 }
  0xe6   :  { %v468_v11 = vpop.f32.mrf.mxu0  ;;  %v484_v12 = vpop.f32.mrf.mxu1 }
  0xe7   :  { %372 = vst [vmem:[%s733_s3 + $0x60] sm:$0xff] %v282_v9  ;;  %388 = vst [vmem:[%s733_s3 + $0xe0] sm:$0xff] %v346_v10  ;;  %v293_v13 = vadd.f32 %v468_v11, %v600_v18  ;;  %v357_v14 = vadd.f32 %v484_v12, %v600_v18 }
  0xe8   :  { %v284_v15 = vpop.f32.mrf.mxu0  ;;  %v348_v16 = vpop.f32.mrf.mxu1 }
  0xe9   :  { %375 = vst [vmem:[%s733_s3 + $0x78] sm:$0xff] %v293_v13  ;;  %391 = vst [vmem:[%s733_s3 + $0xf8] sm:$0xff] %v357_v14  ;;  %v285_v17 = vadd.f32 %v600_v18, %v284_v15  ;;  %v349_v19 = vadd.f32 %v600_v18, %v348_v16 }
  0xeb   :  { %373 = vst [vmem:[%s733_s3 + $0x68] sm:$0xff] %v285_v17  ;;  %389 = vst [vmem:[%s733_s3 + $0xe8] sm:$0xff] %v349_v19 }

</bundles_post_ra>
